<compile_context>
chip_gen: v5e
topology: v5e:2x2
jax: 0.10.0
libtpu: 0.0.40
codegen_flags: <defaults>
</compile_context>

<pallas_src>
import functools
import math

import jax
import jax.numpy as jnp
from jax.experimental import pallas as pl
from jax.experimental.pallas import tpu as pltpu

# ------------------------- module constants (matches __init__) ---------------
STEP = 0.5
D_MAX = 12.0
D_MIN = -D_MAX
HIDDEN = 128
LN_EPS = 1e-5
NBINS_PAD = 128          # per-atom logit chunk padded to one full lane tile
_SQRT2 = math.sqrt(2.0)


def make_bins() -> jnp.ndarray:
    # torch.arange(d_min - step, d_max + 2*step, step); midpoints of edges
    edges = jnp.arange(D_MIN - STEP, D_MAX + 2 * STEP, STEP, dtype=jnp.float32)
    return (edges[:-1] + edges[1:]) / 2.0


BINS = make_bins()
NBINS = int(BINS.shape[0])   # 50
BIN0 = float(BINS[0])        # -12.25; bins are uniformly spaced by STEP


# ----------------------------- GELU (exact, erf) ------------------------------
# Abramowitz & Stegun 7.1.26 rational approximation, |err| < 1.5e-7
_A1, _A2, _A3, _A4, _A5 = 0.254829592, -0.284496736, 1.421413741, -1.453152027, 1.061405429
_P = 0.3275911


def _erf_ref(x):
    sgn = jnp.where(x >= 0, 1.0, -1.0)
    ax = jnp.abs(x)
    t = 1.0 / (1.0 + _P * ax)
    poly = ((((_A5 * t + _A4) * t + _A3) * t + _A2) * t + _A1) * t
    return sgn * (1.0 - poly * jnp.exp(-ax * ax))


def _gelu_ref(x):
    # PyTorch nn.GELU() default (erf-based) -- pure-JAX reference version
    return 0.5 * x * (1.0 + _erf_ref(x / _SQRT2))


def _gelu_kernel(x):
    # Same erf formula; reciprocal/exp go to the EUP (own VLIW slot) so most of
    # the polynomial overlaps with other VALU work.
    z = x * (1.0 / _SQRT2)
    sgn = jnp.where(z >= 0, 1.0, -1.0)
    az = jnp.abs(z)
    t = pl.reciprocal(1.0 + _P * az, approx=True)
    poly = ((((_A5 * t + _A4) * t + _A3) * t + _A2) * t + _A1) * t
    erf = sgn * (1.0 - poly * jnp.exp(-az * az))
    return 0.5 * x * (1.0 + erf)


# ------------------------------- Pallas kernel --------------------------------
def _pae_ce_kernel(x_ref, enc_ref, w1_ref, b1_ref, w2_ref, b2_ref, out_ref,
                   *, n_atom_pairs: int, nbins_pad: int, num_rows: int,
                   ragged: bool):
    tm = x_ref.shape[0]

    x = x_ref[...].astype(jnp.float32)            # bf16 -> f32
    enc = enc_ref[...].astype(jnp.int32)          # int8 -> int32 (label+1, 0 = masked)

    if ragged:
        # Ragged last tile: out-of-bounds rows contain garbage.  Zero the
        # features (so no NaN/Inf can reach the masked CE) and force the
        # encoded labels to 0 (masked out).  Generated only when R % TM != 0.
        row0 = pl.program_id(0) * tm
        rid = jax.lax.broadcasted_iota(jnp.int32, (tm, 1), 0) + row0
        valid = rid < num_rows
        x = jnp.where(valid, x, 0.0)
        enc = jnp.where(valid, enc, 0)

    # LayerNorm statistics only -- gamma/beta were folded into W1'/b1'.
    mu = jnp.mean(x, axis=-1, keepdims=True)
    var = jnp.mean((x - mu) ** 2, axis=-1, keepdims=True)
    xn = (x - mu) * jax.lax.rsqrt(var + LN_EPS)

    # Linear -> GELU, bf16 MXU operands, f32 accumulation.
    h = jnp.dot(xn.astype(jnp.bfloat16), w1_ref[...],
                preferred_element_type=jnp.float32) + b1_ref[...]
    h = _gelu_kernel(h).astype(jnp.bfloat16)

    # Hoisted out of the per-atom loop (JAX does not CSE broadcast_in_dim).
    iota = jax.lax.broadcasted_iota(jnp.int32, (tm, nbins_pad), 1)

    row_loss = jnp.zeros((tm, 1), jnp.float32)
    # TODO(synk): switch to lax.fori_loop with a VMEM accumulator if the number
    # of atom pairs ever grows beyond ~4 (static unroll is fine at P == 2).
    for a in range(n_atom_pairs):
        # Per-atom logits computed inside the loop: small live buffer and the
        # MXU push interleaves with the CE VPU/EUP work of the previous atom.
        lg = jnp.dot(h, w2_ref[:, a * nbins_pad:(a + 1) * nbins_pad],
                     preferred_element_type=jnp.float32)
        lg = lg + b2_ref[:, a * nbins_pad:(a + 1) * nbins_pad]

        code = enc[:, a:a + 1]                       # (TM, 1): label+1, 0 = masked
        mcol = (code > 0).astype(jnp.float32)
        lab = code - 1                               # -1 for masked rows -> never hit

        # softmax cross entropy = lse - logits[label]; padded lanes carry a
        # -1e9 bias (finite, NOT -inf) so they vanish from both terms.
        mx = jnp.max(lg, axis=-1, keepdims=True)
        lse = mx + jnp.log(jnp.sum(jnp.exp(lg - mx), axis=-1, keepdims=True))
        picked = jnp.sum(jnp.where(iota == lab, lg, 0.0), axis=-1, keepdims=True)
        row_loss = row_loss + mcol * (lse - picked)

    # One scalar per tile, written into an (8, 128)-aligned output block
    # (tiny: 4 KiB/tile).  Final reduction + division happen in JAX.
    total = jnp.sum(row_loss)
    r8 = jax.lax.broadcasted_iota(jnp.int32, (8, nbins_pad), 0)
    c0 = jax.lax.broadcasted_iota(jnp.int32, (8, nbins_pad), 1)
    out_ref[...] = jnp.where((r8 == 0) & (c0 == 0), total, 0.0)


def _round_up(x: int, m: int) -> int:
    return ((x + m - 1) // m) * m


def pae_ce_sum_pallas(x2d, enc2d, params, *, tile_rows=1024):
    """x2d: (R, C) bf16 pair features; enc2d: (R, P) int8 'label+1' codes
    (0 == masked).  Returns the masked cross-entropy SUM over all rows/atoms."""
    R, C = x2d.shape
    P = enc2d.shape[1]
    NB = params["bins"].shape[-1]
    H = params["w1"].shape[1]

    # Tile selection: as large as possible, but >= 2 roughly even tiles when R
    # allows it (v7x has 2 TensorCores sharing the grid); a single full-extent
    # block for tiny inputs (block dim == array dim is always legal).
    if R <= tile_rows:
        tile_rows = R
    elif R < 2 * tile_rows:
        tile_rows = max(128, _round_up((R + 1) // 2, 128))
    num_tiles = -(-R // tile_rows)
    ragged = (R % tile_rows) != 0

    # Fold LayerNorm affine into the first Linear (exact):
    #   (z*gamma + beta) @ W1 + b1 == z @ (gamma[:, None] * W1) + (beta @ W1 + b1)
    gamma = params["gamma"].reshape(-1).astype(jnp.float32)
    beta = params["beta"].reshape(1, -1).astype(jnp.float32)
    w1 = params["w1"].astype(jnp.float32)
    w1f = (gamma[:, None] * w1).astype(jnp.bfloat16)
    b1f = (beta @ w1 + params["b1"].reshape(1, -1)).astype(jnp.float32)

    # Lane-align per-atom logit chunks: pad NBINS -> 128; padded bias = -1e9 so
    # the extra logits never affect logsumexp and are never selected.
    w2p = jnp.pad(params["w2"].reshape(H, P, NB),
                  ((0, 0), (0, 0), (0, NBINS_PAD - NB))
                  ).reshape(H, P * NBINS_PAD).astype(jnp.bfloat16)
    b2p = jnp.pad(params["b2"].reshape(1, P, NB),
                  ((0, 0), (0, 0), (0, NBINS_PAD - NB)),
                  constant_values=-1e9).reshape(1, P * NBINS_PAD).astype(jnp.float32)

    kernel = functools.partial(_pae_ce_kernel, n_atom_pairs=P,
                               nbins_pad=NBINS_PAD, num_rows=R, ragged=ragged)

    partials = pl.pallas_call(
        kernel,
        out_shape=jax.ShapeDtypeStruct((num_tiles * 8, NBINS_PAD), jnp.float32),
        grid=(num_tiles,),
        in_specs=[
            pl.BlockSpec((tile_rows, C), lambda i: (i, 0)),      # features (bf16)
            pl.BlockSpec((tile_rows, P), lambda i: (i, 0)),      # label+mask (int8)
            pl.BlockSpec((C, H), lambda i: (0, 0)),              # W1' (bf16, LN folded)
            pl.BlockSpec((1, H), lambda i: (0, 0)),              # b1' (f32)
            pl.BlockSpec((H, P * NBINS_PAD), lambda i: (0, 0)),  # W2 (bf16, lane-padded)
            pl.BlockSpec((1, P * NBINS_PAD), lambda i: (0, 0)),  # b2 (f32, lane-padded)
        ],
        out_specs=pl.BlockSpec((8, NBINS_PAD), lambda i: (i, 0)),
        compiler_params=pltpu.CompilerParams(
            dimension_semantics=("parallel",),        # independent tiles -> megacore OK
            vmem_limit_bytes=32 * 1024 * 1024),       # <= 50% of v7x per-TC VMEM
    )(x2d, enc2d, w1f, b1f, w2p, b2p)

    return jnp.sum(partials, dtype=jnp.float32)


# --------------------------------- glue ---------------------------------------
def _cdist(c):  # (b, n, 3) -> (b, n, n) Euclidean pairwise distances
    d2 = jnp.sum((c[:, :, None, :] - c[:, None, :, :]) ** 2, axis=-1)
    return jnp.sqrt(d2)


def _true_dists_and_mask(true_coords, pred_coords, atom_masks, pair_mask):
    """Mirrors _get_true_dists_n_masks for rigids=None (no-grad label prep).

    Note: as in the PyTorch branch being mirrored, pair_mask is only applied
    when atom_masks is given (otherwise every pair contributes)."""
    b, n, P, _ = true_coords.shape
    dists, masks = [], []
    for a in range(P):
        c_true, c_pred = true_coords[:, :, a], pred_coords[:, :, a]
        dists.append(_cdist(c_pred) - _cdist(c_true))
        if atom_masks is not None:
            m = atom_masks[:, :, a]
            mm = jnp.einsum('bi,bj->bij', m, m)
            if pair_mask is not None:
                mm = jnp.logical_and(mm, pair_mask)
            masks.append(mm)
    full_dists = jnp.stack(dists, axis=-1)                       # (b, n, n, P)
    full_mask = (jnp.stack(masks, axis=-1) if masks
                 else jnp.ones((b, n, n, P), dtype=bool))
    return jax.lax.stop_gradient(full_dists), full_mask


def predicted_aligned_error_loss(pair_output, true_coords, pred_coords, params,
                                 atom_masks=None, pair_mask=None, tile_rows=1024):
    b, n, m, C = pair_output.shape
    assert n == m and true_coords.ndim == 4
    P = true_coords.shape[2]
    full_dists, full_mask = _true_dists_and_mask(true_coords, pred_coords,
                                                 atom_masks, pair_mask)
    R = b * n * n

    # Nearest-bin labels computed here, in f32, BEFORE any downcast.  Bins are
    # uniform, so ceil(t - 0.5) reproduces argmin's first-occurrence tie-break.
    t = (full_dists.astype(jnp.float32) - BIN0) * (1.0 / STEP)
    lab = jnp.clip(jnp.ceil(t - 0.5), 0.0, NBINS - 1).astype(jnp.int32)
    # Single label+mask stream: int8 "label+1", 0 == masked.  128 B/row of HBM
    # (int8 lane padding) vs 1024 B/row for the previous two f32 arrays.
    enc = jnp.where(full_mask, lab + 1, 0).astype(jnp.int8).reshape(R, P)

    # Denominator of the masked mean (exact, independent of tiling).
    cnt = jnp.sum(full_mask, dtype=jnp.float32)

    # Dominant HBM stream (pair features) in bf16; upcast in-kernel.
    x2d = pair_output.reshape(R, C).astype(jnp.bfloat16)

    ce_sum = pae_ce_sum_pallas(x2d, enc, params, tile_rows=tile_rows)
    # NOTE: unguarded division -> NaN for an all-zero mask, matching
    # torch.mean over an empty selection in the original module.
    return ce_sum / cnt


# --------------------------- pure-JAX reference --------------------------------
def reference_loss(pair_output, true_coords, pred_coords, params,
                   atom_masks=None, pair_mask=None):
    full_dists, full_mask = _true_dists_and_mask(true_coords, pred_coords,
                                                 atom_masks, pair_mask)
    x = pair_output.astype(jnp.float32)
    mu = x.mean(-1, keepdims=True)
    var = ((x - mu) ** 2).mean(-1, keepdims=True)
    xn = (x - mu) / jnp.sqrt(var + LN_EPS) * params["gamma"][0] + params["beta"][0]
    h = _gelu_ref(xn @ params["w1"] + params["b1"][0])
    logits = h @ params["w2"] + params["b2"][0]
    b, n, m, _ = logits.shape
    P = full_dists.shape[-1]
    logits = logits.reshape(b, n, m, P, NBINS)
    bins = params["bins"][0]
    lab = jnp.argmin(jnp.abs(full_dists[..., None] - bins), axis=-1)
    onehot = jax.nn.one_hot(lab, NBINS, dtype=jnp.float32)
    ce = -jnp.sum(onehot * jax.nn.log_softmax(logits, axis=-1), axis=-1)
    msk = full_mask.astype(jnp.float32)
    return jnp.sum(ce * msk) / jnp.sum(msk)


# --------------------------- deterministic params -------------------------------
def init_params(key, dim_in, n_atom_pairs, hidden=HIDDEN):
    out_dim = NBINS * n_atom_pairs
    k1, k2, k3, k4 = jax.random.split(key, 4)
    lim1 = 1.0 / math.sqrt(dim_in)
    lim2 = 1.0 / math.sqrt(hidden)
    return dict(
        gamma=jnp.ones((1, dim_in), jnp.float32),
        beta=jnp.zeros((1, dim_in), jnp.float32),
        w1=jax.random.uniform(k1, (dim_in, hidden), jnp.float32, -lim1, lim1),
        b1=jax.random.uniform(k2, (1, hidden), jnp.float32, -lim1, lim1),
        w2=jax.random.uniform(k3, (hidden, out_dim), jnp.float32, -lim2, lim2),
        b2=jax.random.uniform(k4, (1, out_dim), jnp.float32, -lim2, lim2),
        bins=BINS.reshape(1, -1),
    )


if __name__ == "__main__":
    key = jax.random.PRNGKey(0)
    b, n, dim_in = 2, 8, 32
    atom_tys = ["CA", "CB"]
    P = len(atom_tys)

    ks = jax.random.split(key, 6)
    params = init_params(ks[0], dim_in, P)

    # pair features produced in bf16 (as an upstream pair stack would emit them)
    pair_output = jax.random.normal(ks[1], (b, n, n, dim_in),
                                    jnp.float32).astype(jnp.bfloat16)
    true_coords = 5.0 * jax.random.normal(ks[2], (b, n, P, 3), jnp.float32)
    pred_coords = true_coords + 0.7 * jax.random.normal(ks[3], (b, n, P, 3), jnp.float32)
    atom_masks = jax.random.bernoulli(ks[4], 0.9, (b, n, P))
    pair_mask = jnp.broadcast_to(~jnp.eye(n, dtype=bool), (b, n, n))

    fwd = jax.jit(functools.partial(predicted_aligned_error_loss,
                                    atom_masks=atom_masks, pair_mask=pair_mask))
    loss = fwd(pair_output, true_coords, pred_coords, params)
    loss = jax.block_until_ready(loss)

    ref = reference_loss(pair_output, true_coords, pred_coords, params,
                         atom_masks=atom_masks, pair_mask=pair_mask)
    assert jnp.isfinite(loss), "non-finite loss"
    assert jnp.allclose(loss, ref, rtol=1e-3, atol=5e-2), (loss, ref)
    print("KERNEL_OK")
</pallas_src>

<mosaic_0001>
module attributes {stable_mosaic.version = 11 : i64} {
  func.func @_pae_ce_kernel(%arg0: i32, %arg1: memref<128x32xbf16, #tpu.memory_space<vmem>>, %arg2: memref<128x2xi8, #tpu.memory_space<vmem>>, %arg3: memref<32x128xbf16, #tpu.memory_space<vmem>>, %arg4: memref<1x128xf32, #tpu.memory_space<vmem>>, %arg5: memref<128x256xbf16, #tpu.memory_space<vmem>>, %arg6: memref<1x256xf32, #tpu.memory_space<vmem>>, %arg7: memref<8x128xf32, #tpu.memory_space<vmem>>) attributes {dimension_semantics = [#tpu.dimension_semantics<parallel>], iteration_bounds = array<i64: 1>, scalar_prefetch = 0 : i64, scratch_operands = 0 : i64, tpu.core_type = #tpu.core_type<tc>, window_params = [{transform_indices = @transform_0, window_bounds = array<i64: 128, 32>}, {transform_indices = @transform_1, window_bounds = array<i64: 128, 2>}, {pipeline_mode = #tpu.pipeline_mode<synchronous>, transform_indices = @transform_2, window_bounds = array<i64: 32, 128>}, {pipeline_mode = #tpu.pipeline_mode<synchronous>, transform_indices = @transform_3, window_bounds = array<i64: 1, 128>}, {pipeline_mode = #tpu.pipeline_mode<synchronous>, transform_indices = @transform_4, window_bounds = array<i64: 128, 256>}, {pipeline_mode = #tpu.pipeline_mode<synchronous>, transform_indices = @transform_5, window_bounds = array<i64: 1, 256>}, {transform_indices = @transform_6, window_bounds = array<i64: 8, 128>}]} {
    %c0 = arith.constant 0 : index
    %c0_0 = arith.constant 0 : index
    %0 = vector.load %arg1[%c0, %c0_0] : memref<128x32xbf16, #tpu.memory_space<vmem>>, vector<128x32xbf16>
    %1 = arith.extf %0 : vector<128x32xbf16> to vector<128x32xf32>
    %c0_1 = arith.constant 0 : index
    %c0_2 = arith.constant 0 : index
    %2 = vector.load %arg2[%c0_1, %c0_2] : memref<128x2xi8, #tpu.memory_space<vmem>>, vector<128x2xi8>
    %3 = arith.extsi %2 : vector<128x2xi8> to vector<128x2xi32>
    %cst = arith.constant dense<0.000000e+00> : vector<128xf32>
    %4 = vector.multi_reduction <add>, %1, %cst [1] : vector<128x32xf32> to vector<128xf32>
    %5 = vector.shape_cast %4 : vector<128xf32> to vector<128x1xf32>
    %cst_3 = arith.constant 3.200000e+01 : f32
    %6 = vector.broadcast %cst_3 : f32 to vector<128x1xf32>
    %7 = arith.divf %5, %6 : vector<128x1xf32>
    %8 = vector.broadcast %7 : vector<128x1xf32> to vector<128x32xf32>
    %9 = arith.subf %1, %8 : vector<128x32xf32>
    %10 = arith.mulf %9, %9 : vector<128x32xf32>
    %cst_4 = arith.constant dense<0.000000e+00> : vector<128xf32>
    %11 = vector.multi_reduction <add>, %10, %cst_4 [1] : vector<128x32xf32> to vector<128xf32>
    %12 = vector.shape_cast %11 : vector<128xf32> to vector<128x1xf32>
    %cst_5 = arith.constant 3.200000e+01 : f32
    %13 = vector.broadcast %cst_5 : f32 to vector<128x1xf32>
    %14 = arith.divf %12, %13 : vector<128x1xf32>
    %15 = vector.broadcast %7 : vector<128x1xf32> to vector<128x32xf32>
    %16 = arith.subf %1, %15 : vector<128x32xf32>
    %cst_6 = arith.constant 9.99999974E-6 : f32
    %17 = vector.broadcast %cst_6 : f32 to vector<128x1xf32>
    %18 = arith.addf %14, %17 : vector<128x1xf32>
    %19 = math.rsqrt %18 : vector<128x1xf32>
    %20 = vector.broadcast %19 : vector<128x1xf32> to vector<128x32xf32>
    %21 = arith.mulf %16, %20 : vector<128x32xf32>
    %22 = arith.truncf %21 : vector<128x32xf32> to vector<128x32xbf16>
    %c0_7 = arith.constant 0 : index
    %c0_8 = arith.constant 0 : index
    %23 = vector.load %arg3[%c0_7, %c0_8] : memref<32x128xbf16, #tpu.memory_space<vmem>>, vector<32x128xbf16>
    %cst_9 = arith.constant dense<0.000000e+00> : vector<128x128xf32>
    %24 = tpu.matmul %22, %23, %cst_9 {dimension_numbers = #tpu.dot_dimension_numbers<[1], [0], [0], [1], [0, 0, 1, 1], [], []>} : vector<128x32xbf16>, vector<32x128xbf16>, vector<128x128xf32> -> vector<128x128xf32>
    %c0_10 = arith.constant 0 : index
    %c0_11 = arith.constant 0 : index
    %25 = vector.load %arg4[%c0_10, %c0_11] : memref<1x128xf32, #tpu.memory_space<vmem>>, vector<1x128xf32>
    %26 = vector.broadcast %25 : vector<1x128xf32> to vector<128x128xf32>
    %27 = arith.addf %24, %26 : vector<128x128xf32>
    %cst_12 = arith.constant 0.707106769 : f32
    %28 = vector.broadcast %cst_12 : f32 to vector<128x128xf32>
    %29 = arith.mulf %27, %28 : vector<128x128xf32>
    %cst_13 = arith.constant 0.000000e+00 : f32
    %30 = vector.broadcast %cst_13 : f32 to vector<128x128xf32>
    %31 = arith.cmpf oge, %29, %30 : vector<128x128xf32>
    %cst_14 = arith.constant 1.000000e+00 : f32
    %cst_15 = arith.constant -1.000000e+00 : f32
    %32 = vector.broadcast %cst_14 : f32 to vector<128x128xf32>
    %33 = vector.broadcast %cst_15 : f32 to vector<128x128xf32>
    %34 = arith.select %31, %32, %33 : vector<128x128xi1>, vector<128x128xf32>
    %35 = math.absf %29 : vector<128x128xf32>
    %cst_16 = arith.constant 0.327591091 : f32
    %36 = vector.broadcast %cst_16 : f32 to vector<128x128xf32>
    %37 = arith.mulf %36, %35 : vector<128x128xf32>
    %cst_17 = arith.constant 1.000000e+00 : f32
    %38 = vector.broadcast %cst_17 : f32 to vector<128x128xf32>
    %39 = arith.addf %38, %37 : vector<128x128xf32>
    %40 = tpu.reciprocal %39 {approx = true} : vector<128x128xf32> -> vector<128x128xf32>
    %cst_18 = arith.constant 1.06140542 : f32
    %41 = vector.broadcast %cst_18 : f32 to vector<128x128xf32>
    %42 = arith.mulf %41, %40 : vector<128x128xf32>
    %cst_19 = arith.constant -1.45315206 : f32
    %43 = vector.broadcast %cst_19 : f32 to vector<128x128xf32>
    %44 = arith.addf %42, %43 : vector<128x128xf32>
    %45 = arith.mulf %44, %40 : vector<128x128xf32>
    %cst_20 = arith.constant 1.42141378 : f32
    %46 = vector.broadcast %cst_20 : f32 to vector<128x128xf32>
    %47 = arith.addf %45, %46 : vector<128x128xf32>
    %48 = arith.mulf %47, %40 : vector<128x128xf32>
    %cst_21 = arith.constant -0.284496725 : f32
    %49 = vector.broadcast %cst_21 : f32 to vector<128x128xf32>
    %50 = arith.addf %48, %49 : vector<128x128xf32>
    %51 = arith.mulf %50, %40 : vector<128x128xf32>
    %cst_22 = arith.constant 0.254829586 : f32
    %52 = vector.broadcast %cst_22 : f32 to vector<128x128xf32>
    %53 = arith.addf %51, %52 : vector<128x128xf32>
    %54 = arith.mulf %53, %40 : vector<128x128xf32>
    %cst_23 = arith.constant 0.000000e+00 : f32
    %55 = vector.broadcast %cst_23 : f32 to vector<128x128xf32>
    %56 = arith.subf %55, %35 : vector<128x128xf32>
    %57 = arith.mulf %56, %35 : vector<128x128xf32>
    %58 = math.exp %57 : vector<128x128xf32>
    %59 = arith.mulf %54, %58 : vector<128x128xf32>
    %cst_24 = arith.constant 1.000000e+00 : f32
    %60 = vector.broadcast %cst_24 : f32 to vector<128x128xf32>
    %61 = arith.subf %60, %59 : vector<128x128xf32>
    %62 = arith.mulf %34, %61 : vector<128x128xf32>
    %cst_25 = arith.constant 5.000000e-01 : f32
    %63 = vector.broadcast %cst_25 : f32 to vector<128x128xf32>
    %64 = arith.mulf %63, %27 : vector<128x128xf32>
    %cst_26 = arith.constant 1.000000e+00 : f32
    %65 = vector.broadcast %cst_26 : f32 to vector<128x128xf32>
    %66 = arith.addf %65, %62 : vector<128x128xf32>
    %67 = arith.mulf %64, %66 : vector<128x128xf32>
    %68 = arith.truncf %67 : vector<128x128xf32> to vector<128x128xbf16>
    %69 = tpu.iota {dimensions = array<i32: 1>} : vector<128x128xi32>
    %cst_27 = arith.constant 0.000000e+00 : f32
    %70 = vector.broadcast %cst_27 : f32 to vector<128x1xf32>
    %c0_28 = arith.constant 0 : index
    %c0_29 = arith.constant 0 : index
    %71 = vector.load %arg5[%c0_28, %c0_29] : memref<128x256xbf16, #tpu.memory_space<vmem>>, vector<128x128xbf16>
    %cst_30 = arith.constant dense<0.000000e+00> : vector<128x128xf32>
    %72 = tpu.matmul %68, %71, %cst_30 {dimension_numbers = #tpu.dot_dimension_numbers<[1], [0], [0], [1], [0, 0, 1, 1], [], []>} : vector<128x128xbf16>, vector<128x128xbf16>, vector<128x128xf32> -> vector<128x128xf32>
    %c0_31 = arith.constant 0 : index
    %c0_32 = arith.constant 0 : index
    %73 = vector.load %arg6[%c0_31, %c0_32] : memref<1x256xf32, #tpu.memory_space<vmem>>, vector<1x128xf32>
    %74 = vector.broadcast %73 : vector<1x128xf32> to vector<128x128xf32>
    %75 = arith.addf %72, %74 : vector<128x128xf32>
    %76 = vector.extract_strided_slice %3 {offsets = [0, 0], sizes = [128, 1], strides = [1, 1]} : vector<128x2xi32> to vector<128x1xi32>
    %c0_i32 = arith.constant 0 : i32
    %77 = vector.broadcast %c0_i32 : i32 to vector<128x1xi32>
    %78 = arith.cmpi sgt, %76, %77 : vector<128x1xi32>
    %79 = arith.extui %78 : vector<128x1xi1> to vector<128x1xi32>
    %80 = arith.sitofp %79 : vector<128x1xi32> to vector<128x1xf32>
    %c1_i32 = arith.constant 1 : i32
    %81 = vector.broadcast %c1_i32 : i32 to vector<128x1xi32>
    %82 = arith.subi %76, %81 : vector<128x1xi32>
    %cst_33 = arith.constant dense<0xFF800000> : vector<128xf32>
    %83 = vector.multi_reduction <maximumf>, %75, %cst_33 [1] : vector<128x128xf32> to vector<128xf32>
    %84 = vector.shape_cast %83 : vector<128xf32> to vector<128x1xf32>
    %85 = vector.broadcast %84 : vector<128x1xf32> to vector<128x128xf32>
    %86 = arith.subf %75, %85 : vector<128x128xf32>
    %87 = math.exp %86 : vector<128x128xf32>
    %cst_34 = arith.constant dense<0.000000e+00> : vector<128xf32>
    %88 = vector.multi_reduction <add>, %87, %cst_34 [1] : vector<128x128xf32> to vector<128xf32>
    %89 = vector.shape_cast %88 : vector<128xf32> to vector<128x1xf32>
    %90 = math.log %89 : vector<128x1xf32>
    %91 = arith.addf %84, %90 : vector<128x1xf32>
    %92 = vector.broadcast %82 : vector<128x1xi32> to vector<128x128xi32>
    %93 = arith.cmpi eq, %69, %92 : vector<128x128xi32>
    %cst_35 = arith.constant 0.000000e+00 : f32
    %94 = vector.broadcast %cst_35 : f32 to vector<128x128xf32>
    %95 = arith.select %93, %75, %94 : vector<128x128xi1>, vector<128x128xf32>
    %cst_36 = arith.constant dense<0.000000e+00> : vector<128xf32>
    %96 = vector.multi_reduction <add>, %95, %cst_36 [1] : vector<128x128xf32> to vector<128xf32>
    %97 = vector.shape_cast %96 : vector<128xf32> to vector<128x1xf32>
    %98 = arith.subf %91, %97 : vector<128x1xf32>
    %99 = arith.mulf %80, %98 : vector<128x1xf32>
    %100 = arith.addf %70, %99 : vector<128x1xf32>
    %c0_37 = arith.constant 0 : index
    %c128 = arith.constant 128 : index
    %101 = vector.load %arg5[%c0_37, %c128] : memref<128x256xbf16, #tpu.memory_space<vmem>>, vector<128x128xbf16>
    %cst_38 = arith.constant dense<0.000000e+00> : vector<128x128xf32>
    %102 = tpu.matmul %68, %101, %cst_38 {dimension_numbers = #tpu.dot_dimension_numbers<[1], [0], [0], [1], [0, 0, 1, 1], [], []>} : vector<128x128xbf16>, vector<128x128xbf16>, vector<128x128xf32> -> vector<128x128xf32>
    %c0_39 = arith.constant 0 : index
    %c128_40 = arith.constant 128 : index
    %103 = vector.load %arg6[%c0_39, %c128_40] : memref<1x256xf32, #tpu.memory_space<vmem>>, vector<1x128xf32>
    %104 = vector.broadcast %103 : vector<1x128xf32> to vector<128x128xf32>
    %105 = arith.addf %102, %104 : vector<128x128xf32>
    %106 = vector.extract_strided_slice %3 {offsets = [0, 1], sizes = [128, 1], strides = [1, 1]} : vector<128x2xi32> to vector<128x1xi32>
    %c0_i32_41 = arith.constant 0 : i32
    %107 = vector.broadcast %c0_i32_41 : i32 to vector<128x1xi32>
    %108 = arith.cmpi sgt, %106, %107 : vector<128x1xi32>
    %109 = arith.extui %108 : vector<128x1xi1> to vector<128x1xi32>
    %110 = arith.sitofp %109 : vector<128x1xi32> to vector<128x1xf32>
    %c1_i32_42 = arith.constant 1 : i32
    %111 = vector.broadcast %c1_i32_42 : i32 to vector<128x1xi32>
    %112 = arith.subi %106, %111 : vector<128x1xi32>
    %cst_43 = arith.constant dense<0xFF800000> : vector<128xf32>
    %113 = vector.multi_reduction <maximumf>, %105, %cst_43 [1] : vector<128x128xf32> to vector<128xf32>
    %114 = vector.shape_cast %113 : vector<128xf32> to vector<128x1xf32>
    %115 = vector.broadcast %114 : vector<128x1xf32> to vector<128x128xf32>
    %116 = arith.subf %105, %115 : vector<128x128xf32>
    %117 = math.exp %116 : vector<128x128xf32>
    %cst_44 = arith.constant dense<0.000000e+00> : vector<128xf32>
    %118 = vector.multi_reduction <add>, %117, %cst_44 [1] : vector<128x128xf32> to vector<128xf32>
    %119 = vector.shape_cast %118 : vector<128xf32> to vector<128x1xf32>
    %120 = math.log %119 : vector<128x1xf32>
    %121 = arith.addf %114, %120 : vector<128x1xf32>
    %122 = vector.broadcast %112 : vector<128x1xi32> to vector<128x128xi32>
    %123 = arith.cmpi eq, %69, %122 : vector<128x128xi32>
    %cst_45 = arith.constant 0.000000e+00 : f32
    %124 = vector.broadcast %cst_45 : f32 to vector<128x128xf32>
    %125 = arith.select %123, %105, %124 : vector<128x128xi1>, vector<128x128xf32>
    %cst_46 = arith.constant dense<0.000000e+00> : vector<128xf32>
    %126 = vector.multi_reduction <add>, %125, %cst_46 [1] : vector<128x128xf32> to vector<128xf32>
    %127 = vector.shape_cast %126 : vector<128xf32> to vector<128x1xf32>
    %128 = arith.subf %121, %127 : vector<128x1xf32>
    %129 = arith.mulf %110, %128 : vector<128x1xf32>
    %130 = arith.addf %100, %129 : vector<128x1xf32>
    %131 = vector.shape_cast %130 : vector<128x1xf32> to vector<1x128x1xf32>
    %cst_47 = arith.constant dense<0.000000e+00> : vector<1xf32>
    %132 = vector.multi_reduction <add>, %131, %cst_47 [1, 2] : vector<1x128x1xf32> to vector<1xf32>
    %133 = vector.shape_cast %132 : vector<1xf32> to vector<1x1x1xf32>
    %134 = vector.extract %133[0, 0, 0] : f32 from vector<1x1x1xf32>
    %135 = tpu.iota {dimensions = array<i32: 0>} : vector<8x128xi32>
    %136 = tpu.iota {dimensions = array<i32: 1>} : vector<8x128xi32>
    %c0_i32_48 = arith.constant 0 : i32
    %137 = vector.broadcast %c0_i32_48 : i32 to vector<8x128xi32>
    %138 = arith.cmpi eq, %135, %137 : vector<8x128xi32>
    %c0_i32_49 = arith.constant 0 : i32
    %139 = vector.broadcast %c0_i32_49 : i32 to vector<8x128xi32>
    %140 = arith.cmpi eq, %136, %139 : vector<8x128xi32>
    %141 = arith.andi %138, %140 : vector<8x128xi1>
    %cst_50 = arith.constant 0.000000e+00 : f32
    %142 = vector.broadcast %134 : f32 to vector<8x128xf32>
    %143 = vector.broadcast %cst_50 : f32 to vector<8x128xf32>
    %144 = arith.select %141, %142, %143 : vector<8x128xi1>, vector<8x128xf32>
    %c0_51 = arith.constant 0 : index
    %c0_52 = arith.constant 0 : index
    %145 = vector.load %arg7[%c0_51, %c0_52] : memref<8x128xf32, #tpu.memory_space<vmem>>, vector<8x128xf32>
    tpu.vector_store %arg7[%c0_51, %c0_52], %144 {strides = array<i32>} : memref<8x128xf32, #tpu.memory_space<vmem>>, vector<8x128xf32>,
    return
  }
  func.func @transform_0(%arg0: i32) -> (i32, i32) {
    %c0_i32 = arith.constant 0 : i32
    %c0_i32_0 = arith.constant 0 : i32
    return %arg0, %c0_i32 : i32, i32
  }
  func.func @transform_1(%arg0: i32) -> (i32, i32) {
    %c0_i32 = arith.constant 0 : i32
    %c0_i32_0 = arith.constant 0 : i32
    return %arg0, %c0_i32 : i32, i32
  }
  func.func @transform_2(%arg0: i32) -> (i32, i32) {
    %c0_i32 = arith.constant 0 : i32
    %c0_i32_0 = arith.constant 0 : i32
    %c0_i32_1 = arith.constant 0 : i32
    return %c0_i32, %c0_i32_0 : i32, i32
  }
  func.func @transform_3(%arg0: i32) -> (i32, i32) {
    %c0_i32 = arith.constant 0 : i32
    %c0_i32_0 = arith.constant 0 : i32
    %c0_i32_1 = arith.constant 0 : i32
    return %c0_i32, %c0_i32_0 : i32, i32
  }
  func.func @transform_4(%arg0: i32) -> (i32, i32) {
    %c0_i32 = arith.constant 0 : i32
    %c0_i32_0 = arith.constant 0 : i32
    %c0_i32_1 = arith.constant 0 : i32
    return %c0_i32, %c0_i32_0 : i32, i32
  }
  func.func @transform_5(%arg0: i32) -> (i32, i32) {
    %c0_i32 = arith.constant 0 : i32
    %c0_i32_0 = arith.constant 0 : i32
    %c0_i32_1 = arith.constant 0 : i32
    return %c0_i32, %c0_i32_0 : i32, i32
  }
  func.func @transform_6(%arg0: i32) -> (i32, i32) {
    %c0_i32 = arith.constant 0 : i32
    %c0_i32_0 = arith.constant 0 : i32
    return %arg0, %c0_i32 : i32, i32
  }
}

</mosaic_0001>

<bundles_post_ra>
// kernel: predicted_aligned_error_loss.1
= control target key start
LH: loop header
LB: loop body
LE: loop exit
PB: predicated region body
PF: predicated region fallthrough
CT: control target
= control target key end

     0   :  { %vm76_vm0 = vcmask 261120   ;;  %v2447_v18 = vmov 32.0   ;;  %s4167_s0 = inlined_call_operand.vmem [shape: bf16[128,32], index: 0, kind: input, shape index: {}]   ;;  %s4168_s2 = inlined_call_operand.vmem [shape: bf16[32,128], index: 2, kind: input, shape index: {}]   ;;  %s4169_s3 = inlined_call_operand.vmem [shape: f32[1,128], index: 3, kind: input, shape index: {}]   ;;  %s4170_s4 = inlined_call_operand.vmem [shape: bf16[128,256], index: 4, kind: input, shape index: {}]   ;;  %s4171_s1 = inlined_call_operand.vmem [shape: s8[128,2], index: 1, kind: input, shape index: {}]   ;;  %s4172_s5 = inlined_call_operand.vmem [shape: f32[1,256], index: 5, kind: input, shape index: {}]   ;;  %s4173_s6 = inlined_call_operand.vmem [shape: f32[8,128], index: 6, kind: output, shape index: {}]  }
   0x1   :  { %v2180_v0 = vld [vmem:[%s4167_s0 + $0x8] sm:$0xff]   ;;  %v2149_v1 = vld [vmem:[%s4167_s0] sm:$0xff]   ;;  %v2497_v2 = vld [vmem:[%s4167_s0 + $0x10] sm:$0xff]   ;;  %2220 = vrcp.f32 %v2447_v18 }
   0x2   :  { %v2154_v3 = vunpack.c.l.bf16 %v2180_v0  ;;  %v2150_v4 = vunpack.c.l.bf16 %v2149_v1  ;;  %v2158_v5 = vunpack.c.l.bf16 %v2497_v2  ;;  %v2155_v9 = vunpack.c.h.bf16 %v2180_v0  ;;  %v2510_v15 = vld [vmem:[%s4167_s0 + $0x18] sm:$0xff]   ;;  %v2545_v47 = vld [vmem:[%s4167_s0 + $0x20] sm:$0xff]   ;;  %v2565_v59 = vld [vmem:[%s4167_s0 + $0x28] sm:$0xff]  }
   0x3   :  { %v2151_v10 = vunpack.c.h.bf16 %v2149_v1  ;;  %v2159_v11 = vunpack.c.h.bf16 %v2497_v2  ;;  %v2162_v16 = vunpack.c.l.bf16 %v2510_v15  ;;  %v2163_v37 = vunpack.c.h.bf16 %v2510_v15  ;;  %v2130_v18 = vld [vmem:[%s4168_s2] sm:$0xff] }
   0x4   :  { %v83_v6 = vsel %vm76_vm0, %v2154_v3, 0.0  ;;  %v77_v7 = vsel %vm76_vm0, %v2150_v4, 0.0  ;;  %v89_v8 = vsel %vm76_vm0, %v2158_v5, 0.0  ;;  %v86_v12 = vsel %vm76_vm0, %v2155_v9, 0.0 }
   0x5   :  { %84 = vadd.xlane.f32.xlu1 %v83_v6  ;;  %78 = vadd.xlane.f32.xlu0 %v77_v7  ;;  %v80_v13 = vsel %vm76_vm0, %v2151_v10, 0.0  ;;  %v92_v14 = vsel %vm76_vm0, %v2159_v11, 0.0  ;;  %v95_v17 = vsel %vm76_vm0, %v2162_v16, 0.0  ;;  %v98_v44 = vsel %vm76_vm0, %v2163_v37, 0.0 }
   0x6   :  { %90 = vadd.xlane.f32.xlu2 %v89_v8  ;;  %v2166_v52 = vunpack.c.l.bf16 %v2545_v47  ;;  %v2171_v61 = vunpack.c.h.bf16 %v2565_v59  ;;  %v2167_v63 = vunpack.c.h.bf16 %v2545_v47  ;;  %v2170_v7 = vunpack.c.l.bf16 %v2565_v59 }
   0x7   :  { %v2221_v19 = vpop.eup %2220 }
   0x8   :  { %v126_v20 = vmul.f32 32.0, %v2221_v19  ;;  %vm130_vm1 = vweird.f32 %v2221_v19  ;;  %v101_v56 = vsel %vm76_vm0, %v2166_v52, 0.0  ;;  %v110_v1 = vsel %vm76_vm0, %v2171_v61, 0.0 }
   0xa   :  { %v127_v21 = vsub.f32 1.0, %v126_v20 }
   0xc   :  { %v128_v22 = vmul.f32 %v2221_v19, %v127_v21 }
   0xd   :  { %87 = vadd.xlane.f32.xlu1 %v86_v12  ;;  %81 = vadd.xlane.f32.xlu0 %v80_v13  ;;  %v2604_v13 = vld [vmem:[%s4167_s0 + $0x38] sm:$0xff]  }
   0xe   :  { %93 = vadd.xlane.f32.xlu2 %v92_v14  ;;  %v129_v23 = vadd.f32 %v2221_v19, %v128_v22  ;;  %v2178_v14 = vunpack.c.l.bf16 %v2604_v13 }
  0x10   :  { %v2514_v24 = vsel %vm130_vm1, %v2221_v19, %v129_v23 }
  0x16   :  { %96 = vadd.xlane.f32.xlu2 %v95_v17  ;;  %v2131_v17 = vld [vmem:[%s4168_s2 + $0x8] sm:$0xff] }
  0x17   :  { %494 = vmatpush.bf16.msra.mxu0 %v2131_v17 }
  0x1b   :  { %495 = vmatpush.bf16.msra.mxu0 %v2130_v18 }
  0x78   :  { %v85_v25 = vpop.xlane.xlu1 %84  ;;  %v79_v26 = vpop.xlane.xlu0 %78 }
  0x79   :  { %v132_v27 = vmul.f32 %v2514_v24, %v79_v26  ;;  %v91_v28 = vpop.xlane.xlu2 %90  ;;  %v134_v38 = vmul.f32 %v2514_v24, %v85_v25 }
  0x7a   :  { %v136_v36 = vmul.f32 %v2514_v24, %v91_v28 }
  0x7b   :  { %v2517_v29 = vsub.f32 %v2150_v4, %v132_v27  ;;  %v2540_v46 = vsub.f32 %v2154_v3, %v134_v38  ;;  %v104_v3 = vsel %vm76_vm0, %v2167_v63, 0.0  ;;  %v2584_v4 = vld [vmem:[%s4167_s0 + $0x30] sm:$0xff]  }
  0x7c   :  { %v2531_v42 = vsub.f32 %v2158_v5, %v136_v36  ;;  %v2174_v5 = vunpack.c.l.bf16 %v2584_v4 }
  0x7d   :  { %v164_v30 = vmul.f32 %v2517_v29, %v2517_v29  ;;  %v166_v53 = vmul.f32 %v2540_v46, %v2540_v46 }
  0x7e   :  { %v168_v51 = vmul.f32 %v2531_v42, %v2531_v42  ;;  %v113_v8 = vsel %vm76_vm0, %v2174_v5, 0.0 }
  0x7f   :  { %v180_v31 = vsel %vm76_vm0, %v164_v30, 0.0  ;;  %v186_v57 = vsel %vm76_vm0, %v166_v53, 0.0 }
  0x80   :  { %v88_v32 = vpop.xlane.xlu1 %87  ;;  %181 = vadd.xlane.f32.xlu0 %v180_v31  ;;  %v82_v33 = vpop.xlane.xlu0 %81  ;;  %v192_v55 = vsel %vm76_vm0, %v168_v51, 0.0 }
  0x81   :  { %v135_v34 = vmul.f32 %v2514_v24, %v88_v32  ;;  %v133_v35 = vmul.f32 %v2514_v24, %v82_v33  ;;  %v94_v41 = vpop.xlane.xlu2 %93 }
  0x82   :  { %v137_v50 = vmul.f32 %v2514_v24, %v94_v41 }
  0x83   :  { %v2527_v39 = vsub.f32 %v2155_v9, %v135_v34  ;;  %v2529_v40 = vsub.f32 %v2151_v10, %v133_v35  ;;  %v107_v10 = vsel %vm76_vm0, %v2170_v7, 0.0 }
  0x84   :  { %v2555_v54 = vsub.f32 %v2159_v11, %v137_v50  ;;  %v2175_v11 = vunpack.c.h.bf16 %v2584_v4 }
  0x85   :  { %v167_v43 = vmul.f32 %v2527_v39, %v2527_v39  ;;  %v165_v45 = vmul.f32 %v2529_v40, %v2529_v40 }
  0x86   :  { %v169_v62 = vmul.f32 %v2555_v54, %v2555_v54  ;;  %v116_v12 = vsel %vm76_vm0, %v2175_v11, 0.0 }
  0x87   :  { %v189_v48 = vsel %vm76_vm0, %v167_v43, 0.0  ;;  %v183_v49 = vsel %vm76_vm0, %v165_v45, 0.0 }
  0x88   :  { %190 = vadd.xlane.f32.xlu2 %v189_v48  ;;  %99 = vadd.xlane.f32.xlu0 %v98_v44  ;;  %v195_v2 = vsel %vm76_vm0, %v169_v62, 0.0 }
  0x89   :  { %184 = vadd.xlane.f32.xlu1 %v183_v49  ;;  %v97_v58 = vpop.xlane.xlu2 %96 }
  0x8a   :  { %v138_v60 = vmul.f32 %v2514_v24, %v97_v58 }
  0x8c   :  { %v2572_v0 = vsub.f32 %v2162_v16, %v138_v60  ;;  %v119_v16 = vsel %vm76_vm0, %v2178_v14, 0.0 }
  0x8e   :  { %v170_v6 = vmul.f32 %v2572_v0, %v2572_v0 }
  0x90   :  { %193 = vadd.xlane.f32.xlu2 %v192_v55  ;;  %102 = vadd.xlane.f32.xlu0 %v101_v56  ;;  %v198_v9 = vsel %vm76_vm0, %v170_v6, 0.0 }
  0x91   :  { %187 = vadd.xlane.f32.xlu1 %v186_v57 }
  0x98   :  { %111 = vadd.xlane.f32.xlu2 %v110_v1  ;;  %196 = vadd.xlane.f32.xlu0 %v195_v2  ;;  %v2179_v1 = vunpack.c.h.bf16 %v2604_v13 }
  0x99   :  { %105 = vadd.xlane.f32.xlu1 %v104_v3 }
  0xa0   :  { %114 = vadd.xlane.f32.xlu2 %v113_v8  ;;  %199 = vadd.xlane.f32.xlu0 %v198_v9 }
  0xa1   :  { %108 = vadd.xlane.f32.xlu1 %v107_v10 }
  0xa8   :  { %117 = vadd.xlane.f32.xlu0 %v116_v12 }
  0xb0   :  { %120 = vadd.xlane.f32.xlu0 %v119_v16 }
  0xf3   :  { %v182_v19 = vpop.xlane.xlu0 %181 }
  0xf4   :  { %v228_v20 = vmul.f32 %v182_v19, %v2514_v24 }
  0xf6   :  { %v244_v21 = vadd.f32 1e-05, %v228_v20 }
  0xf8   :  { %2222 = vrsqrt.f32 %v244_v21  ;;  %vm266_vm5 = vweird.f32 %v244_v21 }
  0xfb   :  { %v191_v22 = vpop.xlane.xlu2 %190  ;;  %v100_v23 = vpop.xlane.xlu0 %99 }
  0xfc   :  { %v231_v25 = vmul.f32 %v191_v22, %v2514_v24  ;;  %v185_v26 = vpop.xlane.xlu1 %184  ;;  %v139_v27 = vmul.f32 %v2514_v24, %v100_v23 }
  0xfd   :  { %v229_v28 = vmul.f32 %v185_v26, %v2514_v24 }
  0xfe   :  { %v2620_v30 = vpop.eup %2222  ;;  %v2624_v31 = vsub.f32 %v2163_v37, %v139_v27  ;;  %v2627_v33 = vadd.f32 1e-05, %v231_v25 }
  0xff   :  { %v261_v32 = vmul.f32 %v2620_v30, %v244_v21  ;;  %v245_v34 = vadd.f32 1e-05, %v229_v28  ;;  %vm267_vm2 = vweird.f32 %v2620_v30 }
 0x100   :  { %v171_v35 = vmul.f32 %v2624_v31, %v2624_v31  ;;  %vm2667_vm6 = vmor %vm266_vm5, %vm267_vm2  ;;  %vm296_vm10 = vweird.f32 %v2627_v33 }
 0x101   :  { %v262_v36 = vmul.f32 %v2620_v30, %v261_v32  ;;  %2224 = vrsqrt.f32 %v245_v34  ;;  %vm276_vm3 = vweird.f32 %v245_v34  ;;  %v122_v32 = vsel %vm76_vm0, %v2179_v1, 0.0 }
 0x102   :  { %v201_v38 = vsel %vm76_vm0, %v171_v35, 0.0  ;;  %2226 = vrsqrt.f32 %v2627_v33 }
 0x103   :  { %v194_v41 = vpop.xlane.xlu2 %193  ;;  %202 = vadd.xlane.f32.xlu1 %v201_v38  ;;  %v103_v15 = vpop.xlane.xlu0 %102  ;;  %v263_v44 = vmul.f32 0.5, %v262_v36 }
 0x104   :  { %v188_v37 = vpop.xlane.xlu1 %187  ;;  %v140_v43 = vmul.f32 %v2514_v24, %v103_v15  ;;  %v232_v58 = vmul.f32 %v194_v41, %v2514_v24 }
 0x105   :  { %v230_v45 = vmul.f32 %v188_v37, %v2514_v24  ;;  %v264_v55 = vsub.f32 1.5, %v263_v44 }
 0x106   :  { %v2638_v48 = vsub.f32 %v2166_v52, %v140_v43  ;;  %v2671_v22 = vadd.f32 1e-05, %v232_v58 }
 0x107   :  { %v2225_v49 = vpop.eup %2224  ;;  %v2640_v50 = vadd.f32 1e-05, %v230_v45  ;;  %v265_v12 = vmul.f32 %v2620_v30, %v264_v55 }
 0x108   :  { %v271_v51 = vmul.f32 %v2225_v49, %v245_v34  ;;  %v2642_v53 = vpop.eup %2226  ;;  %v172_v56 = vmul.f32 %v2638_v48, %v2638_v48  ;;  %vm277_vm4 = vweird.f32 %v2225_v49  ;;  %vm306_vm1 = vweird.f32 %v2671_v22 }
 0x109   :  { %2228 = vrsqrt.f32 %v2640_v50  ;;  %v291_v2 = vmul.f32 %v2642_v53, %v2627_v33  ;;  %vm2678_vm7 = vmor %vm276_vm3, %vm277_vm4  ;;  %v269_v47 = vsel %vm2667_vm6, %v2620_v30, %v265_v12  ;;  %vm286_vm8 = vweird.f32 %v2640_v50 }
 0x10a   :  { %v272_v57 = vmul.f32 %v2225_v49, %v271_v51  ;;  %v204_v52 = vsel %vm76_vm0, %v172_v56, 0.0  ;;  %v420_v43 = vmul.f32 %v269_v47, %v2517_v29  ;;  %vm297_vm11 = vweird.f32 %v2642_v53 }
 0x10b   :  { %v112_v60 = vpop.xlane.xlu2 %111  ;;  %v197_v62 = vpop.xlane.xlu0 %196  ;;  %205 = vadd.xlane.f32.xlu1 %v204_v52  ;;  %v292_v23 = vmul.f32 %v2642_v53, %v291_v2  ;;  %vm298_vm13 = vmor %vm296_vm10, %vm297_vm11 }
 0x10c   :  { %v273_v3 = vmul.f32 0.5, %v272_v57  ;;  %v143_v6 = vmul.f32 %v2514_v24, %v112_v60  ;;  %v106_v8 = vpop.xlane.xlu1 %105  ;;  %v233_v9 = vmul.f32 %v197_v62, %v2514_v24 }
 0x10d   :  { %v141_v10 = vmul.f32 %v2514_v24, %v106_v8  ;;  %v293_v45 = vmul.f32 0.5, %v292_v23 }
 0x10e   :  { %v274_v16 = vsub.f32 1.5, %v273_v3  ;;  %v2659_v17 = vsub.f32 %v2171_v61, %v143_v6  ;;  %v2661_v18 = vadd.f32 1e-05, %v233_v9 }
 0x10f   :  { %v2663_v19 = vpop.eup %2228  ;;  %v2675_v21 = vsub.f32 %v2167_v63, %v141_v10  ;;  %v294_v60 = vsub.f32 1.5, %v293_v45 }
 0x110   :  { %v281_v25 = vmul.f32 %v2663_v19, %v2640_v50  ;;  %v175_v26 = vmul.f32 %v2659_v17, %v2659_v17  ;;  %v275_v63 = vmul.f32 %v2225_v49, %v274_v16  ;;  %2230 = vrsqrt.f32 %v2661_v18 }
 0x111   :  { %v173_v27 = vmul.f32 %v2675_v21, %v2675_v21  ;;  %2232 = vrsqrt.f32 %v2671_v22  ;;  %vm287_vm9 = vweird.f32 %v2663_v19  ;;  %v295_v33 = vmul.f32 %v2642_v53, %v294_v60 }
 0x112   :  { %v282_v28 = vmul.f32 %v2663_v19, %v281_v25  ;;  %v213_v35 = vsel %vm76_vm0, %v175_v26, 0.0  ;;  %v279_v30 = vsel %vm2678_vm7, %v2225_v49, %v275_v63  ;;  %vm288_vm12 = vmor %vm286_vm8, %vm287_vm9  ;;  %vm316_vm14 = vweird.f32 %v2661_v18 }
 0x113   :  { %v115_v34 = vpop.xlane.xlu2 %114  ;;  %v207_v36 = vsel %vm76_vm0, %v173_v27, 0.0  ;;  %v2699_v38 = vpop.xlane.xlu0 %199  ;;  %214 = vadd.xlane.f32.xlu0 %v213_v35  ;;  %v421_v44 = vmul.f32 %v279_v30, %v2529_v40  ;;  %123 = vadd.xlane.f32.xlu1 %v122_v32  ;;  %v299_v16 = vsel %vm298_vm13, %v2642_v53, %v295_v33 }
 0x114   :  { %v283_v41 = vmul.f32 0.5, %v282_v28  ;;  %v144_v15 = vmul.f32 %v2514_v24, %v115_v34  ;;  %208 = vadd.xlane.f32.xlu2 %v207_v36  ;;  %v109_v37 = vpop.xlane.xlu1 %108 }
 0x115   :  { %v142_v51 = vmul.f32 %v2514_v24, %v109_v37  ;;  %v436_v56 = vpack.c.bf16 %v421_v44, %v420_v43 }
 0x116   :  { %v2709_v55 = vsub.f32 %v2174_v5, %v144_v15  ;;  %v284_v49 = vsub.f32 1.5, %v283_v41  ;;  %v2231_v58 = vpop.eup %2230 }
 0x117   :  { %v2713_v57 = vsub.f32 %v2170_v7, %v142_v51  ;;  %2026 = vmatmul.msk.bf16.vlgmr.msra.gmra.mxu0 %vm76_vm0, %v436_v56  ;;  %v2233_v40 = vpop.eup %2232  ;;  %v311_v7 = vmul.f32 %v2231_v58, %v2661_v18  ;;  %vm317_vm15 = vweird.f32 %v2231_v58  ;;  %v234_v18 = vmul.f32 %v2699_v38, %v2514_v24 }
 0x118   :  { %v176_v29 = vmul.f32 %v2709_v55, %v2709_v55  ;;  %v285_v2 = vmul.f32 %v2663_v19, %v284_v49  ;;  %v301_v3 = vmul.f32 %v2233_v40, %v2671_v22  ;;  %vm307_vm2 = vweird.f32 %v2233_v40  ;;  %vm318_vm3 = vmor %vm316_vm14, %vm317_vm15 }
 0x119   :  { %v174_v5 = vmul.f32 %v2713_v57, %v2713_v57  ;;  %v312_v8 = vmul.f32 %v2231_v58, %v311_v7  ;;  %vm308_vm4 = vmor %vm306_vm1, %vm307_vm2  ;;  %v250_v30 = vadd.f32 1e-05, %v234_v18 }
 0x11a   :  { %v216_v59 = vsel %vm76_vm0, %v176_v29, 0.0  ;;  %v289_v9 = vsel %vm288_vm12, %v2663_v19, %v285_v2  ;;  %v302_v12 = vmul.f32 %v2233_v40, %v301_v3 }
 0x11b   :  { %v210_v52 = vsel %vm76_vm0, %v174_v5, 0.0  ;;  %v118_v62 = vpop.xlane.xlu0 %117  ;;  %217 = vadd.xlane.f32.xlu1 %v216_v59  ;;  %v422_v23 = vmul.f32 %v289_v9, %v2540_v46  ;;  %v313_v61 = vmul.f32 0.5, %v312_v8  ;;  %2234 = vrsqrt.f32 %v250_v30 }
 0x11c   :  { %211 = vadd.xlane.f32.xlu2 %v210_v52  ;;  %v145_v50 = vmul.f32 %v2514_v24, %v118_v62  ;;  %v303_v26 = vmul.f32 0.5, %v302_v12  ;;  %vm326_vm5 = vweird.f32 %v250_v30 }
 0x11d   :  { %v314_v47 = vsub.f32 1.5, %v313_v61  ;;  %v2139_v61 = vld [vmem:[%s4170_s4 + $0x74] sm:$0xf0] }
 0x11e   :  { %v2733_v6 = vsub.f32 %v2175_v11, %v145_v50  ;;  %v423_v11 = vmul.f32 %v299_v16, %v2527_v39  ;;  %v304_v46 = vsub.f32 1.5, %v303_v26  ;;  %v2147_v26 = vld [vmem:[%s4170_s4 + $0x78] sm:$0xf0] }
 0x11f   :  { %v315_v39 = vmul.f32 %v2231_v58, %v314_v47 }
 0x120   :  { %v177_v10 = vmul.f32 %v2733_v6, %v2733_v6  ;;  %v437_v27 = vpack.c.bf16 %v423_v11, %v422_v23  ;;  %v2064_v23 = vld [vmem:[%s4170_s4 + $0x70] sm:$0xf]  ;;  %v2128_v11 = vld [vmem:[%s4170_s4 + $0x74] sm:$0xf] }
 0x121   :  { %v319_v28 = vsel %vm318_vm3, %v2231_v58, %v315_v39  ;;  %v2235_v22 = vpop.eup %2234  ;;  %v2803_v47 = vor.u32 %v2147_v26, %v2128_v11  ;;  %v2060_v39 = vld [vmem:[%s4170_s4 + $0x60] sm:$0xf]  ;;  %v2137_v11 = vld [vmem:[%s4170_s4 + $0x54] sm:$0xf0] }
 0x122   :  { %v219_v20 = vsel %vm76_vm0, %v177_v10, 0.0  ;;  %v425_v34 = vmul.f32 %v319_v28, %v2555_v54  ;;  %v321_v41 = vmul.f32 %v2235_v22, %v250_v30  ;;  %vm327_vm6 = vweird.f32 %v2235_v22  ;;  %v2124_v28 = vld [vmem:[%s4170_s4 + $0x64] sm:$0xf] }
 0x123   :  { %v121_v25 = vpop.xlane.xlu0 %120  ;;  %vm2763_vm7 = vmor %vm326_vm5, %vm327_vm6  ;;  %1532 = vmatpush.bf16.msra.mxu2 %v2803_v47 }
 0x124   :  { %220 = vadd.xlane.f32.xlu2 %v219_v20  ;;  %v146_v4 = vmul.f32 %v2514_v24, %v121_v25  ;;  %v322_v43 = vmul.f32 %v2235_v22, %v321_v41 }
 0x126   :  { %v2745_v19 = vsub.f32 %v2178_v14, %v146_v4  ;;  %v305_v14 = vmul.f32 %v2233_v40, %v304_v46  ;;  %v323_v45 = vmul.f32 0.5, %v322_v43  ;;  %v2832_v43 = vld [vmem:[%s4169_s3] ss:$0 sm:$0xff] }
 0x127   :  { %2027 = vmatmul.msk.bf16.gmra.mxu0 %vm76_vm0, %v437_v27  ;;  %v2065_v27 = vor.u32 %v2139_v61, %v2064_v23 }
 0x128   :  { %v178_v53 = vmul.f32 %v2745_v19, %v2745_v19  ;;  %v309_v32 = vsel %vm308_vm4, %v2233_v40, %v305_v14  ;;  %v324_v56 = vsub.f32 1.5, %v323_v45  ;;  %v2138_v14 = vld [vmem:[%s4170_s4 + $0x64] sm:$0xf0] }
 0x129   :  { %v424_v35 = vmul.f32 %v309_v32, %v2531_v42  ;;  %1031 = vmatpush.bf16.msra.mxu1 %v2065_v27  ;;  %v2061_v32 = vor.u32 %v2138_v14, %v2060_v39  ;;  %2187 = vmatpush.bf16.msra.mxu3 %v2065_v27  ;;  %v2145_v27 = vld [vmem:[%s4170_s4 + $0x58] sm:$0xf0] }
 0x12a   :  { %v222_v63 = vsel %vm76_vm0, %v178_v53, 0.0  ;;  %v325_v29 = vmul.f32 %v2235_v22, %v324_v56 }
 0x12b   :  { %223 = vadd.xlane.f32.xlu0 %v222_v63  ;;  %v438_v36 = vpack.c.bf16 %v425_v34, %v424_v35  ;;  %v2146_v34 = vld [vmem:[%s4170_s4 + $0x68] sm:$0xf0] }
 0x12c   :  { %v329_v3 = vsel %vm2763_vm7, %v2235_v22, %v325_v29  ;;  %v2823_v18 = vor.u32 %v2146_v34, %v2124_v28 }
 0x12d   :  { %v426_v13 = vmul.f32 %v329_v3, %v2572_v0  ;;  %1032 = vmatpush.bf16.msra.mxu1 %v2061_v32  ;;  %2188 = vmatpush.bf16.msra.mxu3 %v2061_v32 }
 0x12e   :  { %1533 = vmatpush.bf16.msra.mxu2 %v2823_v18 }
 0x137   :  { %2028 = vmatmul.msk.bf16.gmra.mxu0 %vm76_vm0, %v438_v36 }
 0x176   :  { %v203_v15 = vpop.xlane.xlu1 %202 }
 0x177   :  { %v235_v37 = vmul.f32 %v203_v15, %v2514_v24 }
 0x179   :  { %v251_v44 = vadd.f32 1e-05, %v235_v37 }
 0x17b   :  { %2236 = vrsqrt.f32 %v251_v44  ;;  %vm336_vm9 = vweird.f32 %v251_v44 }
 0x17e   :  { %v206_v54 = vpop.xlane.xlu1 %205 }
 0x17f   :  { %v236_v42 = vmul.f32 %v206_v54, %v2514_v24 }
 0x181   :  { %v2237_v51 = vpop.eup %2236  ;;  %v2760_v58 = vadd.f32 1e-05, %v236_v42 }
 0x182   :  { %v331_v49 = vmul.f32 %v2237_v51, %v251_v44  ;;  %vm337_vm8 = vweird.f32 %v2237_v51 }
 0x183   :  { %2238 = vrsqrt.f32 %v2760_v58  ;;  %vm338_vm10 = vmor %vm336_vm9, %vm337_vm8  ;;  %vm346_vm14 = vweird.f32 %v2760_v58 }
 0x184   :  { %v332_v38 = vmul.f32 %v2237_v51, %v331_v49 }
 0x186   :  { %v333_v60 = vmul.f32 0.5, %v332_v38  ;;  %v215_v59 = vpop.xlane.xlu0 %214  ;;  %v124_v62 = vpop.xlane.xlu1 %123 }
 0x187   :  { %v209_v5 = vpop.xlane.xlu2 %208  ;;  %v239_v2 = vmul.f32 %v215_v59, %v2514_v24  ;;  %v147_v50 = vmul.f32 %v2514_v24, %v124_v62 }
 0x188   :  { %v334_v7 = vsub.f32 1.5, %v333_v60  ;;  %v237_v52 = vmul.f32 %v209_v5, %v2514_v24 }
 0x189   :  { %v2772_v33 = vpop.eup %2238  ;;  %v2776_v9 = vadd.f32 1e-05, %v239_v2  ;;  %v2782_v16 = vsub.f32 %v2179_v1, %v147_v50 }
 0x18a   :  { %v2774_v8 = vadd.f32 1e-05, %v237_v52  ;;  %v335_v10 = vmul.f32 %v2237_v51, %v334_v7  ;;  %v341_v12 = vmul.f32 %v2772_v33, %v2760_v58  ;;  %vm347_vm11 = vweird.f32 %v2772_v33 }
 0x18b   :  { %v179_v4 = vmul.f32 %v2782_v16, %v2782_v16  ;;  %vm2848_vm15 = vmor %vm346_vm14, %vm347_vm11  ;;  %vm376_vm4 = vweird.f32 %v2776_v9 }
 0x18c   :  { %2240 = vrsqrt.f32 %v2774_v8  ;;  %v339_v20 = vsel %vm338_vm10, %v2237_v51, %v335_v10  ;;  %v342_v25 = vmul.f32 %v2772_v33, %v341_v12  ;;  %vm356_vm12 = vweird.f32 %v2774_v8 }
 0x18d   :  { %v427_v1 = vmul.f32 %v339_v20, %v2624_v31  ;;  %2242 = vrsqrt.f32 %v2776_v9  ;;  %v225_v63 = vsel %vm76_vm0, %v179_v4, 0.0 }
 0x18e   :  { %v343_v53 = vmul.f32 0.5, %v342_v25  ;;  %226 = vadd.xlane.f32.xlu1 %v225_v63  ;;  %v218_v22 = vpop.xlane.xlu1 %217  ;;  %v2052_v63 = vld [vmem:[%s4170_s4 + $0x40] sm:$0xf] }
 0x18f   :  { %v212_v46 = vpop.xlane.xlu2 %211  ;;  %v439_v0 = vpack.c.bf16 %v427_v1, %v426_v13  ;;  %v240_v45 = vmul.f32 %v218_v22, %v2514_v24  ;;  %v2056_v1 = vld [vmem:[%s4170_s4 + $0x50] sm:$0xf] }
 0x190   :  { %v238_v31 = vmul.f32 %v212_v46, %v2514_v24  ;;  %v344_v15 = vsub.f32 1.5, %v343_v53  ;;  %v2057_v28 = vor.u32 %v2137_v11, %v2056_v1 }
 0x191   :  { %2029 = vmatmul.msk.bf16.gmra.mxu0 %vm76_vm0, %v439_v0  ;;  %v2852_v5 = vadd.f32 1e-05, %v240_v45  ;;  %v2136_v0 = vld [vmem:[%s4170_s4 + $0x44] sm:$0xf0]  ;;  %v2937_v45 = vld [vmem:[%s4171_s1] sm:$0xff] }
 0x192   :  { %v2241_v35 = vpop.eup %2240  ;;  %v2821_v36 = vadd.f32 1e-05, %v238_v31  ;;  %v345_v49 = vmul.f32 %v2772_v33, %v344_v15  ;;  %1033 = vmatpush.bf16.msra.mxu1 %v2057_v28  ;;  %2189 = vmatpush.bf16.msra.mxu3 %v2057_v28  ;;  %v2040_v28 = vld [vmem:[%s4170_s4 + $0x10] sm:$0xf] }
 0x193   :  { %v351_v30 = vmul.f32 %v2241_v35, %v2774_v8  ;;  %v2826_v41 = vpop.eup %2242  ;;  %vm357_vm13 = vweird.f32 %v2241_v35  ;;  %vm386_vm8 = vweird.f32 %v2852_v5 }
 0x194   :  { %2244 = vrsqrt.f32 %v2821_v36  ;;  %v497_v44 = vpop.f32.mrf.mxu0  ;;  %v371_v42 = vmul.f32 %v2826_v41, %v2776_v9  ;;  %vm358_vm1 = vmor %vm356_vm12, %vm357_vm13  ;;  %v349_v62 = vsel %vm2848_vm15, %v2772_v33, %v345_v49  ;;  %vm366_vm2 = vweird.f32 %v2821_v36  ;;  %v2112_v9 = vld [vmem:[%s4170_s4 + $0x34] sm:$0xf] }
 0x195   :  { %v352_v37 = vmul.f32 %v2241_v35, %v351_v30  ;;  %v2844_v29 = vadd.f32 %v2832_v43, %v497_v44  ;;  %v428_v23 = vmul.f32 %v349_v62, %v2638_v48  ;;  %vm377_vm5 = vweird.f32 %v2826_v41  ;;  %v2144_v30 = vld [vmem:[%s4170_s4 + $0x48] sm:$0xf0]  ;;  %v2143_v62 = vld [vmem:[%s4170_s4 + $0x38] sm:$0xf0] }
 0x196   :  { %v372_v7 = vmul.f32 %v2826_v41, %v371_v42  ;;  %v2053_v44 = vor.u32 %v2136_v0, %v2052_v63  ;;  %v2048_v42 = vld [vmem:[%s4170_s4 + $0x30] sm:$0xf]  ;;  %vm2951_vm7 = vmor %vm376_vm4, %vm377_vm5 }
 0x197   :  { %v353_v54 = vmul.f32 0.5, %v352_v37  ;;  %v221_v51 = vpop.xlane.xlu2 %220  ;;  %v2864_v50 = vmul.f32 0.70710677, %v2844_v29 }
 0x198   :  { %v241_v56 = vmul.f32 %v221_v51, %v2514_v24  ;;  %v373_v12 = vmul.f32 0.5, %v372_v7  ;;  %v2135_v51 = vld [vmem:[%s4170_s4 + $0x34] sm:$0xf0]  ;;  %1034 = vmatpush.bf16.msra.mxu1 %v2053_v44  ;;  %2190 = vmatpush.bf16.msra.mxu3 %v2053_v44 }
 0x199   :  { %v354_v38 = vsub.f32 1.5, %v353_v54  ;;  %v2877_v25 = vand.u32 2147483647, %v2864_v50  ;;  %vm553_vm14 = vcmp.ge.f32.partialorder %v2864_v50, 0.0 }
 0x19a   :  { %v2846_v40 = vpop.eup %2244  ;;  %v2854_v59 = vadd.f32 1e-05, %v241_v56  ;;  %v374_v48 = vsub.f32 1.5, %v373_v12 }
 0x19b   :  { %v361_v58 = vmul.f32 %v2846_v40, %v2821_v36  ;;  %v355_v52 = vmul.f32 %v2241_v35, %v354_v38  ;;  %vm367_vm3 = vweird.f32 %v2846_v40  ;;  %v601_v31 = vmul.f32 0.3275911, %v2877_v25 }
 0x19c   :  { %2246 = vrsqrt.f32 %v2854_v59  ;;  %v499_v3 = vpop.f32.mrf.mxu0  ;;  %vm2926_vm6 = vmor %vm366_vm2, %vm367_vm3  ;;  %v375_v54 = vmul.f32 %v2826_v41, %v374_v48  ;;  %vm396_vm9 = vweird.f32 %v2854_v59 }
 0x19d   :  { %v362_v2 = vmul.f32 %v2846_v40, %v361_v58  ;;  %2248 = vrsqrt.f32 %v2852_v5  ;;  %v2869_v8 = vadd.f32 %v2832_v43, %v499_v3  ;;  %v359_v10 = vsel %vm358_vm1, %v2241_v35, %v355_v52  ;;  %v2116_v35 = vld [vmem:[%s4170_s4 + $0x44] sm:$0xf] }
 0x19e   :  { %v429_v33 = vmul.f32 %v359_v10, %v2675_v21  ;;  %v2120_v21 = vld [vmem:[%s4170_s4 + $0x54] sm:$0xf]  ;;  %v617_v49 = vadd.f32 1.0, %v601_v31  ;;  %v2957_v60 = vor.u32 %v2144_v30, %v2116_v35  ;;  %v2448_v52 = vmov 0  }
 0x19f   :  { %v363_v20 = vmul.f32 0.5, %v362_v2  ;;  %v2874_v61 = vmul.f32 0.70710677, %v2869_v8  ;;  %v2932_v37 = vor.u32 %v2145_v27, %v2120_v21  ;;  %2211 = vset.pattern.permute.xlu1 %v2448_v52  ;;  %2213 = vset.pattern.permute.xlu0 %v2448_v52  ;;  %v2049_v3 = vor.u32 %v2135_v51, %v2048_v42  ;;  %v2108_v27 = vld [vmem:[%s4170_s4 + $0x24] sm:$0xf] }
 0x1a0   :  { %v440_v4 = vpack.c.bf16 %v429_v33, %v428_v23  ;;  %v4190_v10 = vunpack.c.0.s8 %v2937_v45  ;;  %2212 = vset.pattern.permute.xlu2 %v2448_v52  ;;  %v2134_v23 = vld [vmem:[%s4170_s4 + $0x24] sm:$0xf0]  ;;  %2250 = vrcp.f32 %v617_v49  ;;  %v2036_v52 = vld [vmem:[%s4170_s4] sm:$0xf]  ;;  %v906_v50 = vmul.f32 0.5, %v2869_v8 }
 0x1a1   :  { %v364_v13 = vsub.f32 1.5, %v363_v20  ;;  %v2899_v46 = vand.u32 2147483647, %v2874_v61  ;;  %1534 = vmatpush.bf16.msra.mxu2 %v2932_v37  ;;  %v2044_v20 = vld [vmem:[%s4170_s4 + $0x20] sm:$0xf]  ;;  %v2985_v33 = vld [vmem:[%s4171_s1 + $0x8] sm:$0xff]  ;;  %1035 = vmatpush.bf16.msra.mxu1 %v2049_v3 }
 0x1a2   :  { %v2885_v26 = vpop.eup %2246  ;;  %2030 = vmatmul.msk.bf16.gmra.mxu0 %vm76_vm0, %v440_v4  ;;  %4212 = vst [vmem:[#allocation2_spill] sm:$0xff] %v2985_v33  ;;  %v2993_v11 = vadd.s32 4294967295, %v4190_v10  ;;  %v2045_v31 = vor.u32 %v2134_v23, %v2044_v20  ;;  %2191 = vmatpush.bf16.msra.mxu3 %v2049_v3  ;;  %v2140_v20 = vld [vmem:[%s4170_s4 + $0x8] sm:$0xf0]  ;;  %vm554_vm15 = vcmp.ge.f32.partialorder %v2874_v61, 0.0 }
 0x1a3   :  { %v2894_v53 = vpop.eup %2248  ;;  %v391_v39 = vmul.f32 %v2885_v26, %v2854_v59  ;;  %v365_v34 = vmul.f32 %v2846_v40, %v364_v13  ;;  %v602_v36 = vmul.f32 0.3275911, %v2899_v46  ;;  %vm397_vm10 = vweird.f32 %v2885_v26  ;;  %v3091_v59 = vld [vmem:[%s4171_s1 + $0x10] sm:$0xff] }
 0x1a4   :  { %v502_v14 = vpop.f32.mrf.mxu0  ;;  %v381_v15 = vmul.f32 %v2894_v53, %v2852_v5  ;;  %vm387_vm11 = vweird.f32 %v2894_v53  ;;  %vm3074_vm12 = vmor %vm396_vm9, %vm397_vm10  ;;  %4215 = vst [vmem:[#allocation3_spill] sm:$0xff] %v3091_v59 }
 0x1a5   :  { %v2913_v32 = vadd.f32 %v2832_v43, %v502_v14  ;;  %v392_v38 = vmul.f32 %v2885_v26, %v391_v39  ;;  %v369_v58 = vsel %vm2926_vm6, %v2846_v40, %v365_v34  ;;  %v618_v12 = vadd.f32 1.0, %v602_v36  ;;  %1535 = vmatpush.bf16.msra.mxu2 %v2957_v60  ;;  %v2133_v34 = vld [vmem:[%s4170_s4 + $0x14] sm:$0xf0]  ;;  %v2141_v36 = vld [vmem:[%s4170_s4 + $0x18] sm:$0xf0]  ;;  %1036 = vmatpush.bf16.msra.mxu1 %v2045_v31  ;;  %vm3103_vm13 = vmor %vm386_vm8, %vm387_vm11 }
 0x1a6   :  { %v382_v2 = vmul.f32 %v2894_v53, %v381_v15  ;;  %v379_v40 = vsel %vm2951_vm7, %v2826_v41, %v375_v54  ;;  %v430_v1 = vmul.f32 %v369_v58, %v2713_v57  ;;  %v2989_v41 = vor.u32 %v2143_v62, %v2112_v9  ;;  %v2142_v57 = vld [vmem:[%s4170_s4 + $0x28] sm:$0xf0]  ;;  %v2104_v15 = vld [vmem:[%s4170_s4 + $0x14] sm:$0xf]  ;;  %v3039_v49 = vpop.eup %2250  ;;  %v2132_v9 = vld [vmem:[%s4170_s4 + $0x4] sm:$0xf0]  ;;  %2192 = vmatpush.bf16.msra.mxu3 %v2045_v31 }
 0x1a7   :  { %v2960_v7 = vmul.f32 0.70710677, %v2913_v32  ;;  %v393_v4 = vmul.f32 0.5, %v392_v38  ;;  %v431_v0 = vmul.f32 %v379_v40, %v2659_v17  ;;  %1305 = vperm.xlu1 %2211, %v2993_v11   ;;  %v4178_v39 = vunpack.c.0.s8 %v2985_v33  ;;  %v2100_v40 = vld [vmem:[%s4170_s4 + $0x4] sm:$0xf] }
 0x1a8   :  { %v383_v63 = vmul.f32 0.5, %v382_v2  ;;  %2252 = vrcp.f32 %v618_v12  ;;  %v793_v17 = vsub.f32 0.0, %v2877_v25  ;;  %v3021_v22 = vor.u32 %v2142_v57, %v2108_v27 }
 0x1a9   :  { %v2996_v48 = vand.u32 2147483647, %v2960_v7  ;;  %v394_v35 = vsub.f32 1.5, %v393_v4  ;;  %v441_v30 = vpack.c.bf16 %v431_v0, %v430_v1  ;;  %1536 = vmatpush.bf16.msra.mxu2 %v2989_v41  ;;  %v2041_v51 = vor.u32 %v2133_v34, %v2040_v28 }
 0x1aa   :  { %v384_v42 = vsub.f32 1.5, %v383_v63  ;;  %v3037_v56 = vadd.s32 4294967295, %v4178_v39  ;;  %v4189_v58 = vunpack.c.1.s8 %v2937_v45  ;;  %v809_v62 = vmul.f32 %v793_v17, %v2877_v25 }
 0x1ab   :  { %v603_v44 = vmul.f32 0.3275911, %v2996_v48  ;;  %v3054_v3 = vor.u32 %v2141_v36, %v2104_v15  ;;  %v4188_v12 = vunpack.c.2.s8 %v2937_v45  ;;  %v794_v4 = vsub.f32 0.0, %v2899_v46  ;;  %1037 = vmatpush.bf16.msra.mxu1 %v2041_v51  ;;  %2193 = vmatpush.bf16.msra.mxu3 %v2041_v51 }
 0x1ac   :  { %v504_v13 = vpop.f32.mrf.mxu0  ;;  %v395_v1 = vmul.f32 %v2885_v26, %v394_v35  ;;  %v3081_v57 = vadd.s32 4294967295, %v4189_v58  ;;  %v2037_v0 = vor.u32 %v2132_v9, %v2036_v52  ;;  %v649_v31 = vmul.f32 1.0614054, %v3039_v49 }
 0x1ad   :  { %v2999_v21 = vadd.f32 %v2832_v43, %v504_v13  ;;  %1537 = vmatpush.bf16.msra.mxu2 %v3021_v22  ;;  %v619_v25 = vadd.f32 1.0, %v603_v44  ;;  %v3085_v63 = vadd.s32 4294967295, %v4188_v12  ;;  %v385_v17 = vmul.f32 %v2894_v53, %v384_v42 }
 0x1ae   :  { %v3063_v23 = vpop.eup %2252  ;;  %v3097_v35 = vor.u32 %v2140_v20, %v2100_v40  ;;  %1308 = vperm.xlu2 %2212, %v3081_v57   ;;  %v665_v44 = vadd.f32 -1.4531521, %v649_v31  ;;  %v4176_v36 = vunpack.c.2.s8 %v2985_v33  ;;  %v4179_v42 = vunpack.c.3.s8 %v2937_v45 }
 0x1af   :  { %v3011_v14 = vmul.f32 0.70710677, %v2999_v21  ;;  %1317 = vperm.xlu1 %2211, %v3037_v56   ;;  %v650_v15 = vmul.f32 1.0614054, %v3063_v23  ;;  %v810_v51 = vmul.f32 %v794_v4, %v2899_v46  ;;  %v399_v5 = vsel %vm3074_vm12, %v2885_v26, %v395_v1  ;;  %1311 = vperm.xlu0 %2213, %v3085_v63  }
 0x1b0   :  { %v4175_v52 = vunpack.c.1.s8 %v3091_v59  ;;  %2254 = vrcp.f32 %v619_v25  ;;  %1038 = vmatpush.bf16.msra.mxu1 %v2037_v0  ;;  %v825_v40 = vmul.f32 1.442695, %v809_v62  ;;  %v389_v46 = vsel %vm3103_vm13, %v2894_v53, %v385_v17  ;;  %2194 = vmatpush.bf16.msra.mxu3 %v2037_v0 }
 0x1b1   :  { %v3028_v54 = vand.u32 2147483647, %v3011_v14  ;;  %1538 = vmatpush.bf16.msra.mxu2 %v3054_v3  ;;  %v666_v9 = vadd.f32 -1.4531521, %v650_v15  ;;  %v3127_v20 = vadd.s32 4294967295, %v4176_v36  ;;  %v433_v4 = vmul.f32 %v399_v5, %v2733_v6 }
 0x1b2   :  { %2031 = vmatmul.msk.bf16.gmra.mxu0 %vm76_vm0, %v441_v30  ;;  %v3134_v62 = vadd.s32 4294967295, %v4179_v42  ;;  %v827_v53 = vmul.f32 1.442695, %v810_v51  ;;  %v3143_v6 = vadd.s32 4294967295, %v4175_v52  ;;  %v432_v0 = vmul.f32 %v389_v46, %v2709_v55 }
 0x1b3   :  { %v604_v38 = vmul.f32 0.3275911, %v3028_v54  ;;  %v682_v25 = vmul.f32 %v3063_v23, %v666_v9  ;;  %v4174_v30 = vunpack.c.0.s8 %v3091_v59  ;;  %v4177_v9 = vunpack.c.1.s8 %v2985_v33 }
 0x1b4   :  { %v507_v2 = vpop.f32.mrf.mxu0  ;;  %2195 = vmatpush.bf16.msrb.mxu3 %v2803_v47  ;;  %v3151_v47 = vmul.f32 0.5, %v2844_v29  ;;  %v442_v51 = vpack.c.bf16 %v433_v4, %v432_v0  ;;  %v795_v46 = vsub.f32 0.0, %v2996_v48  ;;  %vm555_vm1 = vcmp.ge.f32.partialorder %v2960_v7, 0.0 }
 0x1b5   :  { %v3067_v13 = vadd.f32 %v2832_v43, %v507_v2  ;;  %v620_v28 = vadd.f32 1.0, %v604_v38  ;;  %v681_v2 = vmul.f32 %v3039_v49, %v665_v44  ;;  %1539 = vmatpush.bf16.msra.mxu2 %v3097_v35  ;;  %vm556_vm2 = vcmp.ge.f32.partialorder %v3011_v14, 0.0 }
 0x1b6   :  { %v3156_v44 = vpop.eup %2254  ;;  %1314 = vperm.xlu2 %2212, %v3134_v62  }
 0x1b7   :  { %v3094_v34 = vmul.f32 0.70710677, %v3067_v13  ;;  %2256 = vrcp.f32 %v620_v28  ;;  %v697_v1 = vadd.f32 1.4214138, %v681_v2  ;;  %v698_v28 = vadd.f32 1.4214138, %v682_v25  ;;  %1323 = vperm.xlu1 %2211, %v3127_v20   ;;  %1332 = vperm.xlu0 %2213, %v3143_v6  }
 0x1b8   :  { %v3164_v2 = vld [vmem:[%s4171_s1 + $0x18] sm:$0xff]  ;;  %2196 = vmatpush.bf16.msrb.mxu3 %v2823_v18  ;;  %2258 = vpow2.f32 %v825_v40  ;;  %v3178_v18 = vadd.s32 4294967295, %v4174_v30  ;;  %v796_v40 = vsub.f32 0.0, %v3028_v54 }
 0x1b9   :  { %v3114_v38 = vand.u32 2147483647, %v3094_v34  ;;  %v713_v17 = vmul.f32 %v3039_v49, %v697_v1  ;;  %v714_v55 = vmul.f32 %v3063_v23, %v698_v28  ;;  %4218 = vst [vmem:[#allocation4_spill] sm:$0xff] %v3164_v2  ;;  %2260 = vpow2.f32 %v827_v53 }
 0x1ba   :  { %v651_v28 = vmul.f32 1.0614054, %v3156_v44  ;;  %v812_v42 = vmul.f32 %v796_v40, %v3028_v54  ;;  %vm557_vm4 = vcmp.ge.f32.partialorder %v3094_v34, 0.0 }
 0x1bb   :  { %v605_v27 = vmul.f32 0.3275911, %v3114_v38  ;;  %v729_v5 = vadd.f32 -0.28449672, %v713_v17  ;;  %v730_v25 = vadd.f32 -0.28449672, %v714_v55 }
 0x1bc   :  { %v509_v26 = vpop.f32.mrf.mxu0  ;;  %2197 = vmatpush.bf16.msrb.mxu3 %v2932_v37  ;;  %v4180_v37 = vunpack.c.3.s8 %v3091_v59  ;;  %v797_v8 = vsub.f32 0.0, %v3114_v38 }
 0x1bd   :  { %v3139_v31 = vadd.f32 %v2832_v43, %v509_v26  ;;  %v3167_v29 = vpop.eup %2256  ;;  %v621_v26 = vadd.f32 1.0, %v605_v27  ;;  %v745_v1 = vmul.f32 %v3039_v49, %v729_v5  ;;  %v4181_v27 = vunpack.c.0.s8 %v3164_v2 }
 0x1be   :  { %v746_v17 = vmul.f32 %v3063_v23, %v730_v25  ;;  %v652_v55 = vmul.f32 1.0614054, %v3167_v29  ;;  %v811_v5 = vmul.f32 %v795_v46, %v2996_v48  ;;  %v2259_v39 = vpop.eup %2258  ;;  %v4183_v48 = vunpack.c.3.s8 %v2985_v33 }
 0x1bf   :  { %v3154_v15 = vmul.f32 0.70710677, %v3139_v31  ;;  %v761_v53 = vadd.f32 0.2548296, %v745_v1  ;;  %2262 = vrcp.f32 %v621_v26  ;;  %v3194_v52 = vadd.s32 4294967295, %v4181_v27  ;;  %1329 = vperm.xlu1 %2211, %v3178_v18   ;;  %v2261_v46 = vpop.eup %2260 }
 0x1c0   :  { %v762_v36 = vadd.f32 0.2548296, %v746_v17  ;;  %v667_v1 = vadd.f32 -1.4531521, %v651_v28  ;;  %v2449_v28 = vmov -1.0   ;;  %2198 = vmatpush.bf16.msrb.mxu3 %v2957_v60  ;;  %v910_v34 = vmul.f32 0.5, %v3139_v31 }
 0x1c1   :  { %v3171_v4 = vand.u32 2147483647, %v3154_v15  ;;  %v777_v25 = vmul.f32 %v3039_v49, %v761_v53  ;;  %v569_v54 = vsel %vm553_vm14, 1.0, %v2449_v28  ;;  %1341 = vperm.xlu0 %2213, %v3194_v52   ;;  %vm558_vm3 = vcmp.ge.f32.partialorder %v3154_v15, 0.0 }
 0x1c2   :  { %2032 = vmatmul.msk.bf16.gmra.mxu0 %vm76_vm0, %v442_v51  ;;  %v3187_v51 = vadd.s32 4294967295, %v4177_v9  ;;  %v668_v9 = vadd.f32 -1.4531521, %v652_v55  ;;  %v778_v26 = vmul.f32 %v3063_v23, %v762_v36  ;;  %v683_v49 = vmul.f32 %v3156_v44, %v667_v1 }
 0x1c3   :  { %v606_v0 = vmul.f32 0.3275911, %v3171_v4  ;;  %v3212_v23 = vadd.s32 4294967295, %v4180_v37  ;;  %v831_v55 = vmul.f32 1.442695, %v812_v42  ;;  %v798_v61 = vsub.f32 0.0, %v3171_v4 }
 0x1c4   :  { %1320 = vperm.xlu2 %2212, %v3187_v51   ;;  %v684_v17 = vmul.f32 %v3167_v29, %v668_v9  ;;  %v699_v40 = vadd.f32 1.4214138, %v683_v49  ;;  %2199 = vmatpush.bf16.msrb.mxu3 %v2989_v41 }
 0x1c5   :  { %v622_v30 = vadd.f32 1.0, %v606_v0  ;;  %v857_v0 = vmul.f32 %v2259_v39, %v777_v25  ;;  %v858_v39 = vmul.f32 %v2261_v46, %v778_v26  ;;  %v3215_v53 = vpop.eup %2262  ;;  %v4182_v25 = vunpack.c.3.s8 %v3164_v2 }
 0x1c6   :  { %v700_v9 = vadd.f32 1.4214138, %v684_v17  ;;  %v715_v27 = vmul.f32 %v3156_v44, %v699_v40  ;;  %v570_v26 = vsel %vm554_vm15, 1.0, %v2449_v28 }
 0x1c7   :  { %2264 = vrcp.f32 %v622_v30  ;;  %v829_v30 = vmul.f32 1.442695, %v811_v5  ;;  %v873_v36 = vsub.f32 1.0, %v857_v0  ;;  %v3220_v5 = vadd.s32 4294967295, %v4183_v48  ;;  %1338 = vperm.xlu1 %2211, %v3212_v23  }
 0x1c8   :  { %v874_v1 = vsub.f32 1.0, %v858_v39  ;;  %v716_v60 = vmul.f32 %v3167_v29, %v700_v9  ;;  %v3233_v42 = vadd.s32 4294967295, %v4182_v25  ;;  %v731_v17 = vadd.f32 -0.28449672, %v715_v27  ;;  %2200 = vmatpush.bf16.msrb.mxu3 %v3021_v22 }
 0x1c9   :  { %v889_v37 = vmul.f32 %v873_v36, %v569_v54  ;;  %2266 = vpow2.f32 %v829_v30  ;;  %v4185_v30 = vunpack.c.2.s8 %v3164_v2  ;;  %v653_v39 = vmul.f32 1.0614054, %v3215_v53 }
 0x1ca   :  { %v890_v0 = vmul.f32 %v874_v1, %v570_v26  ;;  %v732_v54 = vadd.f32 -0.28449672, %v716_v60  ;;  %2268 = vpow2.f32 %v831_v55  ;;  %v747_v40 = vmul.f32 %v3156_v44, %v731_v17  ;;  %1350 = vperm.xlu0 %2213, %v3233_v42  }
 0x1cb   :  { %v921_v49 = vadd.f32 1.0, %v889_v37  ;;  %v4187_v37 = vunpack.c.2.s8 %v3091_v59  ;;  %v813_v27 = vmul.f32 %v797_v8, %v3114_v38  ;;  %v669_v55 = vadd.f32 -1.4531521, %v653_v39 }
 0x1cc   :  { %v922_v36 = vadd.f32 1.0, %v890_v0  ;;  %v748_v41 = vmul.f32 %v3167_v29, %v732_v54  ;;  %1326 = vperm.xlu2 %2212, %v3220_v5   ;;  %v763_v26 = vadd.f32 0.2548296, %v747_v40  ;;  %v814_v54 = vmul.f32 %v798_v61, %v3171_v4  ;;  %2201 = vmatpush.bf16.msrb.mxu3 %v3054_v3 }
 0x1cd   :  { %v3225_v46 = vpop.eup %2264  ;;  %v937_v1 = vmul.f32 %v921_v49, %v3151_v47  ;;  %v3254_v25 = vadd.s32 4294967295, %v4185_v30  ;;  %v685_v8 = vmul.f32 %v3215_v53, %v669_v55  ;;  %v3261_v47 = vadd.s32 4294967295, %v4187_v37 }
 0x1ce   :  { %v654_v9 = vmul.f32 1.0614054, %v3225_v46  ;;  %v938_v60 = vmul.f32 %v922_v36, %v906_v50  ;;  %v764_v0 = vadd.f32 0.2548296, %v748_v41  ;;  %v779_v39 = vmul.f32 %v3156_v44, %v763_v26 }
 0x1cf   :  { %v2267_v17 = vpop.eup %2266  ;;  %v701_v4 = vadd.f32 1.4214138, %v685_v8  ;;  %v833_v61 = vmul.f32 1.442695, %v813_v27  ;;  %1347 = vperm.xlu1 %2211, %v3254_v25   ;;  %v835_v41 = vmul.f32 1.442695, %v814_v54 }
 0x1d0   :  { %v670_v38 = vadd.f32 -1.4531521, %v654_v9  ;;  %v953_v48 = vpack.c.bf16 %v938_v60, %v937_v1  ;;  %v780_v22 = vmul.f32 %v3167_v29, %v764_v0  ;;  %v2269_v50 = vpop.eup %2268  ;;  %v859_v36 = vmul.f32 %v2267_v17, %v779_v39  ;;  %2202 = vmatpush.bf16.msrb.mxu3 %v3097_v35 }
 0x1d1   :  { %v717_v29 = vmul.f32 %v3215_v53, %v701_v4  ;;  %v4186_v1 = vunpack.c.1.s8 %v3164_v2  ;;  %v571_v3 = vsel %vm555_vm1, 1.0, %v2449_v28  ;;  %v2450_v27 = vmov 1  }
 0x1d2   :  { %v686_v49 = vmul.f32 %v3225_v46, %v670_v38  ;;  %1039 = vmatmul.bf16.vlgmr.msra.gmra.mxu1 %v953_v48  ;;  %1540 = vmatmul.bf16.vlgmr.msra.gmra.mxu2 %v953_v48  ;;  %v860_v40 = vmul.f32 %v2269_v50, %v780_v22  ;;  %v875_v9 = vsub.f32 1.0, %v859_v36  ;;  %v572_v48 = vsel %vm556_vm2, 1.0, %v2449_v28 }
 0x1d3   :  { %2215 = vset.pattern.permute.xlu0 %v2450_v27  ;;  %v733_v26 = vadd.f32 -0.28449672, %v717_v29  ;;  %2270 = vpow2.f32 %v833_v61  ;;  %v908_v54 = vmul.f32 0.5, %v2999_v21  ;;  %v3282_v39 = vadd.s32 4294967295, %v4186_v1 }
 0x1d4   :  { %v702_v44 = vadd.f32 1.4214138, %v686_v49  ;;  %v876_v55 = vsub.f32 1.0, %v860_v40  ;;  %1335 = vperm.xlu2 %2212, %v3261_v47   ;;  %v891_v0 = vmul.f32 %v875_v9, %v571_v3  ;;  %1745 = vperm.xlu0 %2215, %v3081_v57   ;;  %2272 = vpow2.f32 %v835_v41 }
 0x1d5   :  { %v749_v38 = vmul.f32 %v3215_v53, %v733_v26  ;;  %v907_v50 = vmul.f32 0.5, %v2913_v32  ;;  %v574_v9 = vsel %vm558_vm3, 1.0, %v2449_v28  ;;  %v909_v3 = vmul.f32 0.5, %v3067_v13 }
 0x1d6   :  { %v718_v60 = vmul.f32 %v3225_v46, %v702_v44  ;;  %v892_v17 = vmul.f32 %v876_v55, %v572_v48  ;;  %v923_v14 = vadd.f32 1.0, %v891_v0 }
 0x1d7   :  { %v765_v35 = vadd.f32 0.2548296, %v749_v38  ;;  %2216 = vset.pattern.permute.xlu1 %v2450_v27 }
 0x1d8   :  { %v734_v7 = vadd.f32 -0.28449672, %v718_v60  ;;  %v924_v8 = vadd.f32 1.0, %v892_v17  ;;  %v939_v61 = vmul.f32 %v923_v14, %v907_v50  ;;  %1748 = vperm.xlu1 %2216, %v3085_v63   ;;  %v573_v63 = vsel %vm557_vm4, 1.0, %v2449_v28  ;;  %v224_v60 = vpop.xlane.xlu0 %223 }
 0x1d9   :  { %v781_v57 = vmul.f32 %v3215_v53, %v765_v35  ;;  %v2271_v21 = vpop.eup %2270 }
 0x1da   :  { %v750_v22 = vmul.f32 %v3225_v46, %v734_v7  ;;  %v940_v49 = vmul.f32 %v924_v8, %v908_v54  ;;  %v2273_v44 = vpop.eup %2272 }
 0x1db   :  { %v861_v40 = vmul.f32 %v2271_v21, %v781_v57 }
 0x1dc   :  { %v766_v4 = vadd.f32 0.2548296, %v750_v22  ;;  %1344 = vperm.xlu2 %2212, %v3282_v39   ;;  %v954_v29 = vpack.c.bf16 %v940_v49, %v939_v61  ;;  %1766 = vperm.xlu0 %2215, %v3178_v18  }
 0x1dd   :  { %v877_v53 = vsub.f32 1.0, %v861_v40 }
 0x1de   :  { %v782_v36 = vmul.f32 %v3225_v46, %v766_v4 }
 0x1df   :  { %v893_v46 = vmul.f32 %v877_v53, %v573_v63 }
 0x1e0   :  { %v862_v32 = vmul.f32 %v2273_v44, %v782_v36  ;;  %1754 = vperm.xlu1 %2216, %v3037_v56  }
 0x1e1   :  { %v925_v15 = vadd.f32 1.0, %v893_v46 }
 0x1e2   :  { %v878_v41 = vsub.f32 1.0, %v862_v32  ;;  %1044 = vmatmul.bf16.gmra.mxu1 %v954_v29  ;;  %1545 = vmatmul.bf16.gmra.mxu2 %v954_v29 }
 0x1e3   :  { %v941_v26 = vmul.f32 %v925_v15, %v909_v3 }
 0x1e4   :  { %v894_v55 = vmul.f32 %v878_v41, %v574_v9  ;;  %2214 = vset.pattern.permute.xlu2 %v2450_v27  ;;  %1775 = vperm.xlu0 %2215, %v3212_v23   ;;  %v242_v27 = vmul.f32 %v224_v60, %v2514_v24 }
 0x1e5   :  { %1742 = vperm.xlu2 %2214, %v2993_v11  }
 0x1e6   :  { %v926_v18 = vadd.f32 1.0, %v894_v55  ;;  %v258_v11 = vadd.f32 1e-05, %v242_v27 }
 0x1e8   :  { %v942_v48 = vmul.f32 %v926_v18, %v910_v34  ;;  %1760 = vperm.xlu1 %2216, %v3127_v20   ;;  %2274 = vrsqrt.f32 %v258_v11  ;;  %vm406_vm5 = vweird.f32 %v258_v11 }
 0x1ea   :  { %v955_v56 = vpack.c.bf16 %v942_v48, %v941_v26 }
 0x1ec   :  { %1784 = vperm.xlu0 %2215, %v3254_v25  }
 0x1ed   :  { %1751 = vperm.xlu2 %2214, %v3134_v62  }
 0x1ee   :  { %v2275_v13 = vpop.eup %2274 }
 0x1ef   :  { %v401_v62 = vmul.f32 %v2275_v13, %v258_v11  ;;  %vm407_vm6 = vweird.f32 %v2275_v13 }
 0x1f0   :  { %1769 = vperm.xlu1 %2216, %v3143_v6   ;;  %vm408_vm7 = vmor %vm406_vm5, %vm407_vm6 }
 0x1f1   :  { %v402_v0 = vmul.f32 %v2275_v13, %v401_v62 }
 0x1f2   :  { %1049 = vmatmul.bf16.gmra.mxu1 %v955_v56  ;;  %1550 = vmatmul.bf16.gmra.mxu2 %v955_v56 }
 0x1f3   :  { %v403_v6 = vmul.f32 0.5, %v402_v0 }
 0x1f5   :  { %1757 = vperm.xlu2 %2214, %v3187_v51  }
 0x1f8   :  { %1778 = vperm.xlu1 %2216, %v3194_v52   ;;  %v404_v52 = vsub.f32 1.5, %v403_v6 }
 0x1fd   :  { %1763 = vperm.xlu2 %2214, %v3220_v5  }
 0x200   :  { %1787 = vperm.xlu1 %2216, %v3233_v42  }
 0x201   :  { %v227_v20 = vpop.xlane.xlu1 %226 }
 0x202   :  { %v243_v31 = vmul.f32 %v227_v20, %v2514_v24 }
 0x204   :  { %v259_v23 = vadd.f32 1e-05, %v243_v31 }
 0x205   :  { %1772 = vperm.xlu2 %2214, %v3261_v47   ;;  %v405_v47 = vmul.f32 %v2275_v13, %v404_v52 }
 0x206   :  { %2276 = vrsqrt.f32 %v259_v23  ;;  %vm416_vm9 = vweird.f32 %v259_v23 }
 0x207   :  { %v409_v49 = vsel %vm408_vm7, %v2275_v13, %v405_v47 }
 0x208   :  { %v434_v21 = vmul.f32 %v409_v49, %v2745_v19  ;;  %v3328_v36 = vpop.permute.xlu2 %1308 }
 0x20c   :  { %v2277_v25 = vpop.eup %2276 }
 0x20d   :  { %v411_v17 = vmul.f32 %v2277_v25, %v259_v23  ;;  %1781 = vperm.xlu2 %2214, %v3282_v39   ;;  %vm417_vm8 = vweird.f32 %v2277_v25 }
 0x20e   :  { %v512_v51 = vpop.f32.mrf.mxu0  ;;  %vm418_vm10 = vmor %vm416_vm9, %vm417_vm8 }
 0x20f   :  { %v3312_v54 = vadd.f32 %v2832_v43, %v512_v51  ;;  %v412_v5 = vmul.f32 %v2277_v25, %v411_v17 }
 0x210   :  { %v3338_v34 = vpop.permute.xlu2 %1314 }
 0x211   :  { %v3315_v7 = vmul.f32 0.70710677, %v3312_v54  ;;  %v413_v24 = vmul.f32 0.5, %v412_v5 }
 0x213   :  { %v591_v42 = vand.u32 2147483647, %v3315_v7  ;;  %v414_v38 = vsub.f32 1.5, %v413_v24 }
 0x215   :  { %v607_v14 = vmul.f32 0.3275911, %v591_v42  ;;  %v415_v50 = vmul.f32 %v2277_v25, %v414_v38  ;;  %v799_v29 = vsub.f32 0.0, %v591_v42 }
 0x216   :  { %v514_v8 = vpop.f32.mrf.mxu0 }
 0x217   :  { %v623_v22 = vadd.f32 1.0, %v607_v14  ;;  %v3320_v35 = vadd.f32 %v2832_v43, %v514_v8  ;;  %v419_v4 = vsel %vm418_vm10, %v2277_v25, %v415_v50  ;;  %v815_v55 = vmul.f32 %v799_v29, %v591_v42 }
 0x218   :  { %v435_v61 = vmul.f32 %v419_v4, %v2782_v16 }
 0x219   :  { %2278 = vrcp.f32 %v623_v22  ;;  %v3323_v39 = vmul.f32 0.70710677, %v3320_v35  ;;  %v837_v15 = vmul.f32 1.442695, %v815_v55 }
 0x21a   :  { %v443_v44 = vpack.c.bf16 %v435_v61, %v434_v21 }
 0x21b   :  { %v592_v57 = vand.u32 2147483647, %v3323_v39  ;;  %vm560_vm11 = vcmp.ge.f32.partialorder %v3323_v39, 0.0 }
 0x21c   :  { %2033 = vmatmul.msk.bf16.gmra.mxu0 %vm76_vm0, %v443_v44  ;;  %vm559_vm0 = vcmp.ge.f32.partialorder %v3315_v7, 0.0  ;;  %v3370_v7 = vld [vmem:[%s4169_s3] ss:$0 sm:$0xff] }
 0x21d   :  { %v608_v40 = vmul.f32 0.3275911, %v592_v57  ;;  %v800_v3 = vsub.f32 0.0, %v592_v57 }
 0x21e   :  { %v3347_v42 = vpop.permute.xlu2 %1320 }
 0x21f   :  { %v2279_v32 = vpop.eup %2278  ;;  %v624_v53 = vadd.f32 1.0, %v608_v40  ;;  %v517_v41 = vpop.f32.mrf.mxu0  ;;  %v816_v62 = vmul.f32 %v800_v3, %v592_v57 }
 0x220   :  { %v655_v9 = vmul.f32 1.0614054, %v2279_v32  ;;  %v3332_v63 = vadd.f32 %v2832_v43, %v517_v41 }
 0x221   :  { %2280 = vrcp.f32 %v624_v53  ;;  %v839_v17 = vmul.f32 1.442695, %v816_v62 }
 0x222   :  { %v671_v46 = vadd.f32 -1.4531521, %v655_v9  ;;  %v3335_v19 = vmul.f32 0.70710677, %v3332_v63  ;;  %2282 = vpow2.f32 %v837_v15 }
 0x224   :  { %v687_v16 = vmul.f32 %v2279_v32, %v671_v46  ;;  %v593_v18 = vand.u32 2147483647, %v3335_v19  ;;  %vm561_vm12 = vcmp.ge.f32.partialorder %v3335_v19, 0.0 }
 0x226   :  { %v703_v48 = vadd.f32 1.4214138, %v687_v16  ;;  %v609_v26 = vmul.f32 0.3275911, %v593_v18  ;;  %v801_v61 = vsub.f32 0.0, %v593_v18 }
 0x227   :  { %v2281_v60 = vpop.eup %2280  ;;  %v519_v27 = vpop.f32.mrf.mxu0 }
 0x228   :  { %v656_v56 = vmul.f32 1.0614054, %v2281_v60  ;;  %v719_v11 = vmul.f32 %v2279_v32, %v703_v48  ;;  %v625_v13 = vadd.f32 1.0, %v609_v26  ;;  %v3341_v20 = vadd.f32 %v2832_v43, %v519_v27  ;;  %v2283_v47 = vpop.eup %2282 }
 0x229   :  { %v817_v9 = vmul.f32 %v801_v61, %v593_v18  ;;  %v575_v26 = vsel %vm559_vm0, 1.0, %v2449_v28  ;;  %v3375_v18 = vpop.permute.xlu2 %1326 }
 0x22a   :  { %v672_v31 = vadd.f32 -1.4531521, %v656_v56  ;;  %v735_v23 = vadd.f32 -0.28449672, %v719_v11  ;;  %2284 = vrcp.f32 %v625_v13  ;;  %v3344_v0 = vmul.f32 0.70710677, %v3341_v20 }
 0x22b   :  { %2286 = vpow2.f32 %v839_v17 }
 0x22c   :  { %v688_v6 = vmul.f32 %v2281_v60, %v672_v31  ;;  %v751_v25 = vmul.f32 %v2279_v32, %v735_v23  ;;  %v594_v51 = vand.u32 2147483647, %v3344_v0  ;;  %v841_v31 = vmul.f32 1.442695, %v817_v9  ;;  %v3379_v23 = vpop.permute.xlu1 %1305 }
 0x22d   :  { %vm562_vm13 = vcmp.ge.f32.partialorder %v3344_v0, 0.0 }
 0x22e   :  { %v704_v52 = vadd.f32 1.4214138, %v688_v6  ;;  %v767_v5 = vadd.f32 0.2548296, %v751_v25  ;;  %v610_v24 = vmul.f32 0.3275911, %v594_v51 }
 0x22f   :  { %v522_v38 = vpop.f32.mrf.mxu0  ;;  %v802_v27 = vsub.f32 0.0, %v594_v51 }
 0x230   :  { %v720_v14 = vmul.f32 %v2281_v60, %v704_v52  ;;  %v783_v8 = vmul.f32 %v2279_v32, %v767_v5  ;;  %v3349_v22 = vpop.eup %2284  ;;  %v626_v50 = vadd.f32 1.0, %v610_v24  ;;  %v3352_v49 = vadd.f32 %v2832_v43, %v522_v38 }
 0x231   :  { %v657_v21 = vmul.f32 1.0614054, %v3349_v22  ;;  %v2287_v46 = vpop.eup %2286  ;;  %v576_v5 = vsel %vm560_vm11, 1.0, %v2449_v28  ;;  %v818_v24 = vmul.f32 %v802_v27, %v594_v51 }
 0x232   :  { %v736_v4 = vadd.f32 -0.28449672, %v720_v14  ;;  %v863_v57 = vmul.f32 %v2283_v47, %v783_v8  ;;  %2288 = vrcp.f32 %v626_v50  ;;  %v3356_v40 = vmul.f32 0.70710677, %v3352_v49  ;;  %v3389_v47 = vpop.permute.xlu0 %1311 }
 0x233   :  { %v673_v29 = vadd.f32 -1.4531521, %v657_v21  ;;  %v912_v21 = vmul.f32 0.5, %v3320_v35 }
 0x234   :  { %v752_v44 = vmul.f32 %v2281_v60, %v736_v4  ;;  %v3359_v32 = vand.u32 2147483647, %v3356_v40  ;;  %v879_v43 = vsub.f32 1.0, %v863_v57  ;;  %v911_v4 = vmul.f32 0.5, %v3312_v54 }
 0x235   :  { %v689_v41 = vmul.f32 %v3349_v22, %v673_v29  ;;  %vm563_vm14 = vcmp.ge.f32.partialorder %v3356_v40, 0.0 }
 0x236   :  { %v768_v53 = vadd.f32 0.2548296, %v752_v44  ;;  %v611_v55 = vmul.f32 0.3275911, %v3359_v32  ;;  %v895_v13 = vmul.f32 %v879_v43, %v575_v26  ;;  %v843_v43 = vmul.f32 1.442695, %v818_v24 }
 0x237   :  { %v524_v16 = vpop.f32.mrf.mxu0  ;;  %v705_v3 = vadd.f32 1.4214138, %v689_v41 }
 0x238   :  { %v784_v15 = vmul.f32 %v2281_v60, %v768_v53  ;;  %v3364_v48 = vpop.eup %2288  ;;  %v627_v56 = vadd.f32 1.0, %v611_v55  ;;  %v3373_v11 = vadd.f32 %v3370_v7, %v524_v16  ;;  %v927_v14 = vadd.f32 1.0, %v895_v13  ;;  %v3409_v13 = vpop.permute.xlu1 %1317 }
 0x239   :  { %v658_v62 = vmul.f32 1.0614054, %v3364_v48  ;;  %v721_v52 = vmul.f32 %v3349_v22, %v705_v3 }
 0x23a   :  { %v864_v60 = vmul.f32 %v2287_v46, %v784_v15  ;;  %2290 = vrcp.f32 %v627_v56  ;;  %v3382_v6 = vmul.f32 0.70710677, %v3373_v11  ;;  %v943_v55 = vmul.f32 %v927_v14, %v911_v4  ;;  %v3405_v15 = vpop.permute.xlu2 %1335 }
 0x23b   :  { %v674_v17 = vadd.f32 -1.4531521, %v658_v62  ;;  %v737_v50 = vadd.f32 -0.28449672, %v721_v52  ;;  %2292 = vpow2.f32 %v841_v31  ;;  %v803_v31 = vsub.f32 0.0, %v3359_v32 }
 0x23c   :  { %v880_v25 = vsub.f32 1.0, %v864_v60  ;;  %v3387_v39 = vand.u32 2147483647, %v3382_v6  ;;  %vm564_vm2 = vcmp.ge.f32.partialorder %v3382_v6, 0.0  ;;  %v915_v6 = vmul.f32 0.5, %v3352_v49 }
 0x23d   :  { %v690_v8 = vmul.f32 %v3364_v48, %v674_v17  ;;  %v753_v29 = vmul.f32 %v3349_v22, %v737_v50 }
 0x23e   :  { %v896_v38 = vmul.f32 %v880_v25, %v576_v5  ;;  %v612_v57 = vmul.f32 0.3275911, %v3387_v39 }
 0x23f   :  { %v527_v61 = vpop.f32.mrf.mxu0  ;;  %v706_v51 = vadd.f32 1.4214138, %v690_v8  ;;  %v769_v16 = vadd.f32 0.2548296, %v753_v29  ;;  %v577_v29 = vsel %vm561_vm12, 1.0, %v2449_v28 }
 0x240   :  { %v928_v44 = vadd.f32 1.0, %v896_v38  ;;  %v3396_v53 = vpop.eup %2290  ;;  %v628_v41 = vadd.f32 1.0, %v612_v57  ;;  %v3399_v9 = vadd.f32 %v3370_v7, %v527_v61  ;;  %v804_v61 = vsub.f32 0.0, %v3387_v39 }
 0x241   :  { %v722_v54 = vmul.f32 %v3364_v48, %v706_v51  ;;  %v785_v27 = vmul.f32 %v3349_v22, %v769_v16  ;;  %v659_v56 = vmul.f32 1.0614054, %v3396_v53  ;;  %v2293_v60 = vpop.eup %2292  ;;  %v3415_v22 = vpop.permute.xlu0 %1332  ;;  %v4184_v16 = vlaneseq }
 0x242   :  { %v944_v46 = vmul.f32 %v928_v44, %v912_v21  ;;  %2294 = vrcp.f32 %v628_v41  ;;  %v3403_v35 = vmul.f32 0.70710677, %v3399_v9  ;;  %v819_v21 = vmul.f32 %v803_v31, %v3359_v32 }
 0x243   :  { %v738_v26 = vadd.f32 -0.28449672, %v722_v54  ;;  %2296 = vpow2.f32 %v843_v43  ;;  %v865_v17 = vmul.f32 %v2293_v60, %v785_v27  ;;  %v675_v5 = vadd.f32 -1.4531521, %v659_v56  ;;  %v3435_v54 = vpop.permute.xlu2 %1344  ;;  %v3439_v60 = vpop.permute.xlu1 %1323 }
 0x244   :  { %v956_v3 = vpack.c.bf16 %v944_v46, %v943_v55  ;;  %v597_v62 = vand.u32 2147483647, %v3403_v35  ;;  %v578_v56 = vsel %vm562_vm13, 1.0, %v2449_v28  ;;  %vm565_vm4 = vcmp.ge.f32.partialorder %v3403_v35, 0.0 }
 0x245   :  { %v754_v25 = vmul.f32 %v3364_v48, %v738_v26  ;;  %v881_v14 = vsub.f32 1.0, %v865_v17  ;;  %v691_v57 = vmul.f32 %v3396_v53, %v675_v5  ;;  %v820_v26 = vmul.f32 %v804_v61, %v3387_v39  ;;  %v3448_v5 = vld [vmem:[%s4172_s5] ss:$0 sm:$0xff] }
 0x246   :  { %1054 = vmatmul.bf16.gmra.mxu1 %v956_v3  ;;  %1555 = vmatmul.bf16.gmra.mxu2 %v956_v3  ;;  %v613_v52 = vmul.f32 0.3275911, %v597_v62  ;;  %v845_v3 = vmul.f32 1.442695, %v819_v21  ;;  %v913_v17 = vmul.f32 0.5, %v3332_v63 }
 0x247   :  { %v529_v24 = vpop.f32.mrf.mxu0  ;;  %v770_v38 = vadd.f32 0.2548296, %v754_v25  ;;  %v897_v55 = vmul.f32 %v881_v14, %v577_v29  ;;  %v914_v14 = vmul.f32 0.5, %v3341_v20  ;;  %v847_v61 = vmul.f32 1.442695, %v820_v26 }
 0x248   :  { %v3417_v8 = vpop.eup %2294  ;;  %v629_v50 = vadd.f32 1.0, %v613_v52  ;;  %v3420_v4 = vadd.f32 %v3370_v7, %v529_v24  ;;  %v805_v52 = vsub.f32 0.0, %v597_v62 }
 0x249   :  { %v786_v44 = vmul.f32 %v3364_v48, %v770_v38  ;;  %v660_v19 = vmul.f32 1.0614054, %v3417_v8  ;;  %v2297_v51 = vpop.eup %2296  ;;  %v707_v48 = vadd.f32 1.4214138, %v691_v57  ;;  %v929_v24 = vadd.f32 1.0, %v897_v55 }
 0x24a   :  { %2298 = vrcp.f32 %v629_v50  ;;  %v3429_v43 = vmul.f32 0.70710677, %v3420_v4 }
 0x24b   :  { %v866_v41 = vmul.f32 %v2297_v51, %v786_v44  ;;  %v676_v46 = vadd.f32 -1.4531521, %v660_v19  ;;  %v723_v25 = vmul.f32 %v3396_v53, %v707_v48  ;;  %2300 = vpow2.f32 %v845_v3  ;;  %v3453_v44 = vpop.permute.xlu0 %1341 }
 0x24c   :  { %v3433_v32 = vand.u32 2147483647, %v3429_v43  ;;  %vm566_vm7 = vcmp.ge.f32.partialorder %v3429_v43, 0.0 }
 0x24d   :  { %v882_v27 = vsub.f32 1.0, %v866_v41  ;;  %v692_v31 = vmul.f32 %v3417_v8, %v676_v46  ;;  %v739_v21 = vadd.f32 -0.28449672, %v723_v25  ;;  %v821_v41 = vmul.f32 %v805_v52, %v597_v62  ;;  %v3469_v62 = vld [vmem:[%s4172_s5 + $0x1] ss:$0 sm:$0xff]  ;;  %v1743_v25 = vpop.permute.xlu2 %1742  ;;  %s2452_s5 = smov 127  }
 0x24e   :  { %v614_v0 = vmul.f32 0.3275911, %v3433_v32  ;;  %v945_v46 = vmul.f32 %v929_v24, %v913_v17 }
 0x24f   :  { %v898_v39 = vmul.f32 %v882_v27, %v578_v56  ;;  %v708_v57 = vadd.f32 1.4214138, %v692_v31  ;;  %v755_v29 = vmul.f32 %v3396_v53, %v739_v21  ;;  %v1040_v55 = vpop.f32.mrf.mxu1  ;;  %v3462_v56 = vand.u32 127, %v4184_v16  ;;  %v3477_v21 = vpop.permute.xlu1 %1329 }
 0x250   :  { %v3450_v38 = vpop.eup %2298  ;;  %v630_v50 = vadd.f32 1.0, %v614_v0  ;;  %v3459_v27 = vadd.f32 %v3448_v5, %v1040_v55  ;;  %v849_v24 = vmul.f32 1.442695, %v821_v41 }
 0x251   :  { %v930_v63 = vadd.f32 1.0, %v898_v39  ;;  %v661_v19 = vmul.f32 1.0614054, %v3450_v38  ;;  %v724_v51 = vmul.f32 %v3417_v8, %v708_v57  ;;  %v771_v26 = vadd.f32 0.2548296, %v755_v29  ;;  %4219 = vst [vmem:[#allocation5_spill] sm:$0xff] %v3462_v56  ;;  %v2301_v39 = vpop.eup %2300 }
 0x252   :  { %2302 = vrcp.f32 %v630_v50  ;;  %1144 = vmax.xlane.f32.xlu2 %v3459_v27  ;;  %v806_v57 = vsub.f32 0.0, %v3433_v32  ;;  %vm1352_vm15 = vcmp.eq.s32.totalorder %v3462_v56, %v3379_v23  ;;  %vm1789_vm1 = vcmp.eq.s32.totalorder %v3462_v56, %v1743_v25 }
 0x253   :  { %v946_v48 = vmul.f32 %v930_v63, %v914_v14  ;;  %v677_v20 = vadd.f32 -1.4531521, %v661_v19  ;;  %v740_v3 = vadd.f32 -0.28449672, %v724_v51  ;;  %2304 = vpow2.f32 %v847_v61 }
 0x254   :  { %v787_v52 = vmul.f32 %v3396_v53, %v771_v26  ;;  %v579_v51 = vsel %vm563_vm14, 1.0, %v2449_v28  ;;  %2306 = vpow2.f32 %v849_v24  ;;  %vm1353_vm3 = vcmp.eq.s32.totalorder %v3462_v56, %v3328_v36 }
 0x255   :  { %v957_v0 = vpack.c.bf16 %v946_v48, %v945_v46  ;;  %v693_v31 = vmul.f32 %v3450_v38, %v677_v20  ;;  %v756_v17 = vmul.f32 %v3417_v8, %v740_v3  ;;  %v1541_v19 = vpop.f32.mrf.mxu2  ;;  %v3490_v48 = vpop.permute.xlu0 %1350  ;;  %vm1354_vm6 = vcmp.eq.s32.totalorder %v3462_v56, %v3389_v47 }
 0x256   :  { %v867_v63 = vmul.f32 %v2301_v39, %v787_v52  ;;  %v3486_v29 = vadd.f32 %v3469_v62, %v1541_v19  ;;  %v1368_v52 = vsel %vm1352_vm15, %v3459_v27, 0.0  ;;  %vm1355_vm8 = vcmp.eq.s32.totalorder %v3462_v56, %v3338_v34 }
 0x257   :  { %1059 = vmatmul.bf16.gmra.mxu1 %v957_v0  ;;  %1560 = vmatmul.bf16.gmra.mxu2 %v957_v0  ;;  %v709_v14 = vadd.f32 1.4214138, %v693_v31  ;;  %v772_v61 = vadd.f32 0.2548296, %v756_v17  ;;  %v1042_v20 = vpop.f32.mrf.mxu1  ;;  %v822_v0 = vmul.f32 %v806_v57, %v3433_v32  ;;  %vm1356_vm0 = vcmp.eq.s32.totalorder %v3462_v56, %v3409_v13 }
 0x258   :  { %v3474_v50 = vpop.eup %2302  ;;  %v883_v55 = vsub.f32 1.0, %v867_v63  ;;  %1581 = vmax.xlane.f32.xlu1 %v3486_v29  ;;  %v1805_v31 = vsel %vm1789_vm1, %v3486_v29, 0.0  ;;  %v3507_v25 = vadd.f32 %v3448_v5, %v1042_v20  ;;  %vm1357_vm12 = vcmp.eq.s32.totalorder %v3462_v56, %v3347_v42 }
 0x259   :  { %v662_v40 = vmul.f32 1.0614054, %v3474_v50  ;;  %v725_v53 = vmul.f32 %v3450_v38, %v709_v14  ;;  %v788_v41 = vmul.f32 %v3417_v8, %v772_v61  ;;  %v2305_v46 = vpop.eup %2304  ;;  %1821 = vadd.xlane.f32.xlu0 %v1805_v31  ;;  %v580_v14 = vsel %vm564_vm2, 1.0, %v2449_v28 }
 0x25a   :  { %v899_v8 = vmul.f32 %v883_v55, %v579_v51  ;;  %1384 = vadd.xlane.f32.xlu2 %v1368_v52  ;;  %v851_v63 = vmul.f32 1.442695, %v822_v0  ;;  %v916_v55 = vmul.f32 0.5, %v3373_v11  ;;  %vm1358_vm14 = vcmp.eq.s32.totalorder %v3462_v56, %v3439_v60 }
 0x25b   :  { %v678_v3 = vadd.f32 -1.4531521, %v662_v40  ;;  %v741_v26 = vadd.f32 -0.28449672, %v725_v53  ;;  %v868_v17 = vmul.f32 %v2305_v46, %v788_v41  ;;  %v2307_v40 = vpop.eup %2306  ;;  %v3515_v46 = vpop.permute.xlu1 %1338 }
 0x25c   :  { %v931_v19 = vadd.f32 1.0, %v899_v8  ;;  %2308 = vpow2.f32 %v851_v63 }
 0x25d   :  { %v694_v39 = vmul.f32 %v3474_v50, %v678_v3  ;;  %v757_v24 = vmul.f32 %v3450_v38, %v741_v26  ;;  %v884_v32 = vsub.f32 1.0, %v868_v17  ;;  %v1543_v53 = vpop.f32.mrf.mxu2  ;;  %v1369_v26 = vsel %vm1353_vm3, %v3507_v25, 0.0 }
 0x25e   :  { %v3519_v31 = vadd.f32 %v3469_v62, %v1543_v53  ;;  %v947_v17 = vmul.f32 %v931_v19, %v915_v6  ;;  %v917_v6 = vmul.f32 0.5, %v3399_v9  ;;  %vm1359_vm3 = vcmp.eq.s32.totalorder %v3462_v56, %v3375_v18 }
 0x25f   :  { %v710_v57 = vadd.f32 1.4214138, %v694_v39  ;;  %v773_v61 = vadd.f32 0.2548296, %v757_v24  ;;  %v900_v23 = vmul.f32 %v884_v32, %v580_v14  ;;  %v1045_v3 = vpop.f32.mrf.mxu1 }
 0x260   :  { %1386 = vadd.xlane.f32.xlu1 %v1369_v26  ;;  %v3527_v24 = vadd.f32 %v3448_v5, %v1045_v3 }
 0x261   :  { %v726_v51 = vmul.f32 %v3474_v50, %v710_v57  ;;  %v789_v41 = vmul.f32 %v3450_v38, %v773_v61  ;;  %v932_v20 = vadd.f32 1.0, %v900_v23  ;;  %v1746_v38 = vpop.permute.xlu0 %1745  ;;  %1146 = vmax.xlane.f32.xlu0 %v3507_v25  ;;  %v581_v57 = vsel %vm565_vm4, 1.0, %v2449_v28 }
 0x262   :  { %1583 = vmax.xlane.f32.xlu2 %v3519_v31  ;;  %vm1790_vm5 = vcmp.eq.s32.totalorder %v3462_v56, %v1746_v38  ;;  %v2309_v14 = vpop.eup %2308  ;;  %v1370_v47 = vsel %vm1354_vm6, %v3527_v24, 0.0 }
 0x263   :  { %v742_v0 = vadd.f32 -0.28449672, %v726_v51  ;;  %v869_v36 = vmul.f32 %v2307_v40, %v789_v41  ;;  %v948_v8 = vmul.f32 %v932_v20, %v916_v55  ;;  %v1806_v63 = vsel %vm1790_vm5, %v3519_v31, 0.0  ;;  %v3535_v40 = vpop.permute.xlu1 %1347 }
 0x264   :  { %v582_v51 = vsel %vm566_vm7, 1.0, %v2449_v28  ;;  %v918_v55 = vmul.f32 0.5, %v3420_v4  ;;  %v1752_v4 = vpop.permute.xlu2 %1751  ;;  %vm1360_vm5 = vcmp.eq.s32.totalorder %v3462_v56, %v3477_v21 }
 0x265   :  { %v758_v49 = vmul.f32 %v3474_v50, %v742_v0  ;;  %v958_v11 = vpack.c.bf16 %v948_v8, %v947_v17  ;;  %v885_v39 = vsub.f32 1.0, %v869_v36  ;;  %v1546_v61 = vpop.f32.mrf.mxu2  ;;  %vm1792_vm10 = vcmp.eq.s32.totalorder %v3462_v56, %v1752_v4 }
 0x266   :  { %v3548_v3 = vadd.f32 %v3469_v62, %v1546_v61 }
 0x267   :  { %v774_v52 = vadd.f32 0.2548296, %v758_v49  ;;  %1064 = vmatmul.bf16.gmra.mxu1 %v958_v11  ;;  %1565 = vmatmul.bf16.gmra.mxu2 %v958_v11  ;;  %v1047_v35 = vpop.f32.mrf.mxu1  ;;  %v901_v19 = vmul.f32 %v885_v39, %v581_v57 }
 0x268   :  { %v3538_v53 = vadd.f32 %v3448_v5, %v1047_v35  ;;  %1823 = vadd.xlane.f32.xlu1 %v1806_v63 }
 0x269   :  { %v790_v32 = vmul.f32 %v3474_v50, %v774_v52  ;;  %1388 = vadd.xlane.f32.xlu0 %v1370_v47  ;;  %v933_v41 = vadd.f32 1.0, %v901_v19 }
 0x26a   :  { %1150 = vmax.xlane.f32.xlu2 %v3538_v53  ;;  %v1371_v17 = vsel %vm1355_vm8, %v3538_v53, 0.0  ;;  %vm1361_vm8 = vcmp.eq.s32.totalorder %v3462_v56, %v3415_v22 }
 0x26b   :  { %v870_v23 = vmul.f32 %v2309_v14, %v790_v32  ;;  %v949_v26 = vmul.f32 %v933_v41, %v917_v6  ;;  %v1749_v9 = vpop.permute.xlu1 %1748 }
 0x26c   :  { %vm1791_vm9 = vcmp.eq.s32.totalorder %v3462_v56, %v1749_v9  ;;  %v1758_v47 = vpop.permute.xlu2 %1757 }
 0x26d   :  { %v886_v50 = vsub.f32 1.0, %v870_v23  ;;  %v1548_v36 = vpop.f32.mrf.mxu2  ;;  %v1807_v49 = vsel %vm1791_vm9, %v3548_v3, 0.0  ;;  %vm1794_vm13 = vcmp.eq.s32.totalorder %v3462_v56, %v1758_v47  ;;  %vm1362_vm9 = vcmp.eq.s32.totalorder %v3462_v56, %v3405_v15 }
 0x26e   :  { %v3558_v34 = vadd.f32 %v3469_v62, %v1548_v36 }
 0x26f   :  { %v902_v43 = vmul.f32 %v886_v50, %v582_v51  ;;  %v1050_v38 = vpop.f32.mrf.mxu1 }
 0x270   :  { %1148 = vmax.xlane.f32.xlu1 %v3527_v24  ;;  %v1808_v11 = vsel %vm1792_vm10, %v3558_v34, 0.0  ;;  %v3565_v39 = vadd.f32 %v3448_v5, %v1050_v38 }
 0x271   :  { %v934_v20 = vadd.f32 1.0, %v902_v43  ;;  %1585 = vmax.xlane.f32.xlu0 %v3548_v3 }
 0x272   :  { %1390 = vadd.xlane.f32.xlu2 %v1371_v17  ;;  %v1372_v32 = vsel %vm1356_vm0, %v3565_v39, 0.0  ;;  %vm1363_vm0 = vcmp.eq.s32.totalorder %v3462_v56, %v3515_v46 }
 0x273   :  { %v950_v0 = vmul.f32 %v934_v20, %v918_v55  ;;  %v1755_v57 = vpop.permute.xlu1 %1754 }
 0x274   :  { %vm1793_vm11 = vcmp.eq.s32.totalorder %v3462_v56, %v1755_v57 }
 0x275   :  { %v3553_v8 = vpack.c.bf16 %v950_v0, %v949_v26  ;;  %v1551_v52 = vpop.f32.mrf.mxu2 }
 0x276   :  { %v3571_v14 = vadd.f32 %v3469_v62, %v1551_v52 }
 0x277   :  { %1069 = vmatmul.bf16.vlgmr.msra.gmra.mxu3 %v3553_v8  ;;  %v1052_v61 = vpop.f32.mrf.mxu1 }
 0x278   :  { %1587 = vmax.xlane.f32.xlu1 %v3558_v34  ;;  %v3577_v63 = vadd.f32 %v3448_v5, %v1052_v61  ;;  %v1809_v23 = vsel %vm1793_vm11, %v3571_v14, 0.0  ;;  %vm1364_vm11 = vcmp.eq.s32.totalorder %v3462_v56, %v3453_v44 }
 0x279   :  { %1825 = vadd.xlane.f32.xlu0 %v1807_v49 }
 0x27a   :  { %1827 = vadd.xlane.f32.xlu2 %v1808_v11  ;;  %v1373_v19 = vsel %vm1357_vm12, %v3577_v63, 0.0 }
 0x27d   :  { %v1553_v35 = vpop.f32.mrf.mxu2 }
 0x27e   :  { %v3582_v13 = vadd.f32 %v3469_v62, %v1553_v35 }
 0x280   :  { %1392 = vadd.xlane.f32.xlu1 %v1372_v32  ;;  %v1810_v50 = vsel %vm1794_vm13, %v3582_v13, 0.0  ;;  %vm1365_vm13 = vcmp.eq.s32.totalorder %v3462_v56, %v3435_v54 }
 0x281   :  { %1152 = vmax.xlane.f32.xlu0 %v3565_v39 }
 0x282   :  { %1589 = vmax.xlane.f32.xlu2 %v3571_v14 }
 0x288   :  { %1829 = vadd.xlane.f32.xlu1 %v1809_v23 }
 0x289   :  { %1591 = vmax.xlane.f32.xlu0 %v3582_v13 }
 0x28a   :  { %1394 = vadd.xlane.f32.xlu2 %v1373_v19 }
 0x290   :  { %1154 = vmax.xlane.f32.xlu1 %v3577_v63 }
 0x291   :  { %1831 = vadd.xlane.f32.xlu0 %v1810_v50 }
 0x299   :  { %v532_v42 = vpop.f32.mrf.mxu0 }
 0x29a   :  { %v3591_v51 = vadd.f32 %v3370_v7, %v532_v42 }
 0x29c   :  { %v551_v43 = vmul.f32 0.70710677, %v3591_v51 }
 0x29e   :  { %v599_v41 = vand.u32 2147483647, %v551_v43  ;;  %vm567_vm15 = vcmp.ge.f32.partialorder %v551_v43, 0.0 }
 0x2a0   :  { %v615_v6 = vmul.f32 0.3275911, %v599_v41  ;;  %v807_v4 = vsub.f32 0.0, %v599_v41 }
 0x2a1   :  { %v534_v55 = vpop.f32.mrf.mxu0 }
 0x2a2   :  { %v631_v20 = vadd.f32 1.0, %v615_v6  ;;  %v535_v26 = vadd.f32 %v3370_v7, %v534_v55  ;;  %v823_v52 = vmul.f32 %v807_v4, %v599_v41 }
 0x2a4   :  { %2310 = vrcp.f32 %v631_v20  ;;  %v552_v0 = vmul.f32 0.70710677, %v535_v26  ;;  %v853_v35 = vmul.f32 1.442695, %v823_v52 }
 0x2a6   :  { %v600_v36 = vand.u32 2147483647, %v552_v0  ;;  %vm568_vm1 = vcmp.ge.f32.partialorder %v552_v0, 0.0 }
 0x2a8   :  { %v616_v17 = vmul.f32 0.3275911, %v600_v36  ;;  %v808_v23 = vsub.f32 0.0, %v600_v36 }
 0x2aa   :  { %v2311_v9 = vpop.eup %2310  ;;  %v632_v38 = vadd.f32 1.0, %v616_v17  ;;  %v824_v42 = vmul.f32 %v808_v23, %v600_v36  ;;  %v1761_v23 = vpop.permute.xlu1 %1760 }
 0x2ab   :  { %v663_v49 = vmul.f32 1.0614054, %v2311_v9  ;;  %vm1795_vm2 = vcmp.eq.s32.totalorder %v3462_v56, %v1761_v23 }
 0x2ac   :  { %2312 = vrcp.f32 %v632_v38  ;;  %v855_v17 = vmul.f32 1.442695, %v824_v42 }
 0x2ad   :  { %v679_v11 = vadd.f32 -1.4531521, %v663_v49  ;;  %2314 = vpow2.f32 %v853_v35 }
 0x2ae   :  { %2316 = vpow2.f32 %v855_v17  ;;  %v920_v17 = vmul.f32 0.5, %v535_v26  ;;  %v1764_v26 = vpop.permute.xlu2 %1763 }
 0x2af   :  { %v695_v32 = vmul.f32 %v2311_v9, %v679_v11  ;;  %vm1796_vm4 = vcmp.eq.s32.totalorder %v3462_v56, %v1764_v26 }
 0x2b1   :  { %v711_v57 = vadd.f32 1.4214138, %v695_v32 }
 0x2b2   :  { %v2313_v61 = vpop.eup %2312 }
 0x2b3   :  { %v664_v19 = vmul.f32 1.0614054, %v2313_v61  ;;  %v727_v47 = vmul.f32 %v2311_v9, %v711_v57  ;;  %v2315_v49 = vpop.eup %2314 }
 0x2b5   :  { %v680_v50 = vadd.f32 -1.4531521, %v664_v19  ;;  %v743_v7 = vadd.f32 -0.28449672, %v727_v47 }
 0x2b6   :  { %v1773_v21 = vpop.permute.xlu2 %1772 }
 0x2b7   :  { %v696_v6 = vmul.f32 %v2313_v61, %v680_v50  ;;  %v759_v55 = vmul.f32 %v2311_v9, %v743_v7  ;;  %v584_v7 = vsel %vm568_vm1, 1.0, %v2449_v28  ;;  %vm1799_vm10 = vcmp.eq.s32.totalorder %v3462_v56, %v1773_v21 }
 0x2b9   :  { %v712_v20 = vadd.f32 1.4214138, %v696_v6  ;;  %v775_v16 = vadd.f32 0.2548296, %v759_v55 }
 0x2bb   :  { %v728_v30 = vmul.f32 %v2313_v61, %v712_v20  ;;  %v791_v38 = vmul.f32 %v2311_v9, %v775_v16  ;;  %v2317_v9 = vpop.eup %2316  ;;  %v919_v20 = vmul.f32 0.5, %v3591_v51 }
 0x2bd   :  { %v744_v41 = vadd.f32 -0.28449672, %v728_v30  ;;  %v871_v4 = vmul.f32 %v2315_v49, %v791_v38  ;;  %v583_v30 = vsel %vm567_vm15, 1.0, %v2449_v28  ;;  %vm1367_vm15 = vcmp.eq.s32.totalorder %v3462_v56, %v3490_v48 }
 0x2bf   :  { %v760_v11 = vmul.f32 %v2313_v61, %v744_v41  ;;  %v887_v57 = vsub.f32 1.0, %v871_v4 }
 0x2c1   :  { %v776_v36 = vadd.f32 0.2548296, %v760_v11  ;;  %v903_v60 = vmul.f32 %v887_v57, %v583_v30 }
 0x2c3   :  { %v1055_v52 = vpop.f32.mrf.mxu1  ;;  %v792_v16 = vmul.f32 %v2313_v61, %v776_v36  ;;  %v935_v55 = vadd.f32 1.0, %v903_v60 }
 0x2c4   :  { %v3598_v32 = vadd.f32 %v3448_v5, %v1055_v52 }
 0x2c5   :  { %v872_v19 = vmul.f32 %v2317_v9, %v792_v16  ;;  %v951_v49 = vmul.f32 %v935_v55, %v919_v20  ;;  %v1767_v9 = vpop.permute.xlu0 %1766 }
 0x2c6   :  { %1156 = vmax.xlane.f32.xlu2 %v3598_v32  ;;  %v1374_v35 = vsel %vm1358_vm14, %v3598_v32, 0.0  ;;  %vm1797_vm6 = vcmp.eq.s32.totalorder %v3462_v56, %v1767_v9  ;;  %vm1366_vm14 = vcmp.eq.s32.totalorder %v3462_v56, %v3535_v40 }
 0x2c7   :  { %1396 = vadd.xlane.f32.xlu0 %v1374_v35  ;;  %v888_v50 = vsub.f32 1.0, %v872_v19 }
 0x2c9   :  { %v1556_v43 = vpop.f32.mrf.mxu2  ;;  %v904_v6 = vmul.f32 %v888_v50, %v584_v7 }
 0x2ca   :  { %v3605_v47 = vadd.f32 %v3469_v62, %v1556_v43  ;;  %v1770_v43 = vpop.permute.xlu1 %1769 }
 0x2cb   :  { %v1057_v42 = vpop.f32.mrf.mxu1  ;;  %v936_v38 = vadd.f32 1.0, %v904_v6  ;;  %vm1798_vm7 = vcmp.eq.s32.totalorder %v3462_v56, %v1770_v43 }
 0x2cc   :  { %v3609_v61 = vadd.f32 %v3448_v5, %v1057_v42  ;;  %1593 = vmax.xlane.f32.xlu1 %v3605_v47  ;;  %v1811_v0 = vsel %vm1795_vm2, %v3605_v47, 0.0 }
 0x2cd   :  { %v952_v41 = vmul.f32 %v936_v38, %v920_v17 }
 0x2ce   :  { %1833 = vadd.xlane.f32.xlu2 %v1811_v0  ;;  %v1375_v11 = vsel %vm1359_vm3, %v3609_v61, 0.0  ;;  %v3651_v0 = vpop.permute.xlu2 %1781 }
 0x2cf   :  { %1158 = vmax.xlane.f32.xlu0 %v3609_v61  ;;  %v960_v4 = vpack.c.bf16 %v952_v41, %v951_v49  ;;  %vm1802_vm2 = vcmp.eq.s32.totalorder %v3462_v56, %v3651_v0 }
 0x2d1   :  { %v1558_v28 = vpop.f32.mrf.mxu2  ;;  %1074 = vmatmul.bf16.gmra.mxu3 %v960_v4 }
 0x2d2   :  { %v3619_v52 = vadd.f32 %v3469_v62, %v1558_v28  ;;  %v3678_v26 = vpop.permute.xlu1 %1778 }
 0x2d3   :  { %vm1801_vm1 = vcmp.eq.s32.totalorder %v3462_v56, %v3678_v26 }
 0x2d4   :  { %1398 = vadd.xlane.f32.xlu1 %v1375_v11  ;;  %v1060_v51 = vpop.f32.mrf.mxu1  ;;  %v1812_v18 = vsel %vm1796_vm4, %v3619_v52, 0.0 }
 0x2d5   :  { %v3624_v36 = vadd.f32 %v3448_v5, %v1060_v51  ;;  %v1776_v51 = vpop.permute.xlu0 %1775 }
 0x2d6   :  { %1595 = vmax.xlane.f32.xlu2 %v3619_v52  ;;  %v3664_v38 = vpop.xlane.xlu2 %1144  ;;  %vm1800_vm12 = vcmp.eq.s32.totalorder %v3462_v56, %v1776_v51 }
 0x2d7   :  { %v1376_v16 = vsel %vm1360_vm5, %v3624_v36, 0.0  ;;  %4220 = vst [vmem:[#allocation6_spill] sm:$0xff] %v3664_v38 }
 0x2da   :  { %v1561_v57 = vpop.f32.mrf.mxu2 }
 0x2db   :  { %v3630_v35 = vadd.f32 %v3469_v62, %v1561_v57 }
 0x2dc   :  { %1835 = vadd.xlane.f32.xlu1 %v1812_v18  ;;  %v1062_v30 = vpop.f32.mrf.mxu1 }
 0x2dd   :  { %1597 = vmax.xlane.f32.xlu0 %v3630_v35  ;;  %v3636_v23 = vadd.f32 %v3448_v5, %v1062_v30  ;;  %v1813_v60 = vsel %vm1797_vm6, %v3630_v35, 0.0  ;;  %v1176_v30 = vsub.f32 %v3459_v27, %v3664_v38  ;;  %v3698_v44 = vpop.permute.xlu0 %1784 }
 0x2de   :  { %1400 = vadd.xlane.f32.xlu2 %v1376_v16  ;;  %v3683_v18 = vpop.xlane.xlu2 %1384  ;;  %vm1803_vm3 = vcmp.eq.s32.totalorder %v3462_v56, %v3698_v44 }
 0x2df   :  { %4221 = vst [vmem:[#allocation7_spill] sm:$0xff] %v3683_v18 }
 0x2e1   :  { %1570 = vmatmul.bf16.vlgmr.msrb.gmra.mxu3 %v3553_v8  ;;  %v1377_v8 = vsel %vm1361_vm8, %v3636_v23, 0.0 }
 0x2e2   :  { %v1563_v19 = vpop.f32.mrf.mxu2 }
 0x2e3   :  { %v3643_v50 = vadd.f32 %v3469_v62, %v1563_v19  ;;  %v3700_v19 = vpop.permute.xlu1 %1787 }
 0x2e4   :  { %1160 = vmax.xlane.f32.xlu1 %v3624_v36  ;;  %v1065_v7 = vpop.f32.mrf.mxu1  ;;  %vm1804_vm4 = vcmp.eq.s32.totalorder %v3462_v56, %v3700_v19 }
 0x2e5   :  { %1837 = vadd.xlane.f32.xlu0 %v1813_v60  ;;  %v1814_v42 = vsel %vm1798_vm7, %v3643_v50, 0.0  ;;  %v3654_v6 = vadd.f32 %v3448_v5, %v1065_v7  ;;  %v1192_v60 = vmul.f32 1.442695, %v1176_v30  ;;  %v3707_v27 = vpop.xlane.xlu0 %1821 }
 0x2e6   :  { %1162 = vmax.xlane.f32.xlu2 %v3636_v23  ;;  %v3703_v7 = vpop.xlane.xlu2 %1583 }
 0x2e7   :  { %v1378_v22 = vsel %vm1362_vm9, %v3654_v6, 0.0  ;;  %2318 = vpow2.f32 %v1192_v60 }
 0x2ea   :  { %v1566_v55 = vpop.f32.mrf.mxu2 }
 0x2eb   :  { %v3660_v20 = vadd.f32 %v3469_v62, %v1566_v55 }
 0x2ec   :  { %1599 = vmax.xlane.f32.xlu1 %v3643_v50  ;;  %v1067_v17 = vpop.f32.mrf.mxu1 }
 0x2ed   :  { %1402 = vadd.xlane.f32.xlu0 %v1377_v8  ;;  %v3667_v49 = vadd.f32 %v3448_v5, %v1067_v17  ;;  %v1815_v28 = vsel %vm1799_vm10, %v3660_v20, 0.0  ;;  %v2319_v8 = vpop.eup %2318  ;;  %v3713_v55 = vpop.xlane.xlu0 %1146 }
 0x2ee   :  { %1839 = vadd.xlane.f32.xlu2 %v1814_v42  ;;  %v3709_v42 = vpop.xlane.xlu1 %1581  ;;  %v3711_v54 = vpop.xlane.xlu2 %1150 }
 0x2ef   :  { %v1379_v11 = vsel %vm1363_vm0, %v3667_v49, 0.0 }
 0x2f1   :  { %1575 = vmatmul.bf16.gmra.mxu3 %v960_v4 }
 0x2f2   :  { %v1568_v41 = vpop.f32.mrf.mxu2 }
 0x2f3   :  { %v3674_v4 = vadd.f32 %v3469_v62, %v1568_v41 }
 0x2f4   :  { %1404 = vadd.xlane.f32.xlu1 %v1378_v22 }
 0x2f5   :  { %1164 = vmax.xlane.f32.xlu0 %v3654_v6  ;;  %v1816_v9 = vsel %vm1800_vm12, %v3674_v4, 0.0  ;;  %v3719_v41 = vpop.xlane.xlu0 %1388 }
 0x2f6   :  { %1601 = vmax.xlane.f32.xlu2 %v3660_v20  ;;  %v3715_v22 = vpop.xlane.xlu1 %1386  ;;  %v3717_v17 = vpop.xlane.xlu2 %1390 }
 0x2fa   :  { %v1070_v15 = vpop.f32.mrf.mxu3 }
 0x2fb   :  { %v3681_v57 = vadd.f32 %v3448_v5, %v1070_v15 }
 0x2fc   :  { %1841 = vadd.xlane.f32.xlu1 %v1815_v28 }
 0x2fd   :  { %1603 = vmax.xlane.f32.xlu0 %v3674_v4  ;;  %v1380_v16 = vsel %vm1364_vm11, %v3681_v57, 0.0 }
 0x2fe   :  { %1406 = vadd.xlane.f32.xlu2 %v1379_v11  ;;  %v3721_v15 = vpop.xlane.xlu1 %1823  ;;  %v3723_v28 = vpop.xlane.xlu2 %1827 }
 0x2ff   :  { %4222 = vst [vmem:[#allocation8_spill] sm:$0xff] %v3723_v28  ;;  %v3725_v11 = vpop.xlane.xlu0 %1585 }
 0x302   :  { %v1072_v46 = vpop.f32.mrf.mxu3 }
 0x303   :  { %v3694_v21 = vadd.f32 %v3448_v5, %v1072_v46 }
 0x304   :  { %1166 = vmax.xlane.f32.xlu1 %v3667_v49 }
 0x305   :  { %1408 = vadd.xlane.f32.xlu0 %v1380_v16  ;;  %v1381_v43 = vsel %vm1365_vm13, %v3694_v21, 0.0 }
 0x306   :  { %1843 = vadd.xlane.f32.xlu2 %v1816_v9  ;;  %v3727_v51 = vpop.xlane.xlu1 %1148  ;;  %v3729_v46 = vpop.xlane.xlu2 %1589 }
 0x307   :  { %v3731_v16 = vpop.xlane.xlu0 %1825 }
 0x30c   :  { %1410 = vadd.xlane.f32.xlu1 %v1381_v43 }
 0x30d   :  { %1170 = vmax.xlane.f32.xlu0 %v3694_v21 }
 0x30e   :  { %1168 = vmax.xlane.f32.xlu2 %v3681_v57  ;;  %v3733_v9 = vpop.xlane.xlu1 %1587  ;;  %v3735_v30 = vpop.xlane.xlu2 %1394 }
 0x30f   :  { %4223 = vst [vmem:[#allocation9_spill] sm:$0xff] %v3735_v30  ;;  %v3737_v60 = vpop.xlane.xlu0 %1152  ;;  %v1177_v30 = vsub.f32 %v3507_v25, %v3713_v55 }
 0x315   :  { %1224 = vadd.xlane.f32.xlu0 %v2319_v8 }
 0x316   :  { %v3739_v43 = vpop.xlane.xlu1 %1392 }
 0x317   :  { %4224 = vst [vmem:[#allocation10_spill] sm:$0xff] %v3739_v43  ;;  %v3743_v1 = vpop.xlane.xlu0 %1591 }
 0x31e   :  { %v3745_v37 = vpop.xlane.xlu1 %1829 }
 0x31f   :  { %4225 = vst [vmem:[#allocation11_spill] sm:$0xff] %v3745_v37  ;;  %v3754_v18 = vpop.xlane.xlu0 %1831  ;;  %v1613_v37 = vsub.f32 %v3486_v29, %v3709_v42 }
 0x320   :  { %4227 = vst [vmem:[#allocation13_spill] sm:$0xff] %v3754_v18 }
 0x326   :  { %v3758_v2 = vpop.xlane.xlu1 %1154 }
 0x327   :  { %v1181_v44 = vsub.f32 %v3577_v63, %v3758_v2 }
 0x339   :  { %v3741_v8 = vpop.xlane.xlu2 %1156 }
 0x33a   :  { %v3769_v40 = vpop.xlane.xlu0 %1396 }
 0x33b   :  { %4228 = vst [vmem:[#allocation14_spill] sm:$0xff] %v3769_v40 }
 0x33f   :  { %v3774_v43 = vpop.xlane.xlu1 %1593 }
 0x340   :  { %v1619_v19 = vsub.f32 %v3605_v47, %v3774_v43 }
 0x341   :  { %v3747_v12 = vpop.xlane.xlu2 %1833 }
 0x342   :  { %4226 = vst [vmem:[#allocation12_spill] sm:$0xff] %v3747_v12 }
 0x349   :  { %v3760_v28 = vpop.xlane.xlu2 %1595 }
 0x354   :  { %v1075_v58 = vpop.f32.mrf.mxu3 }
 0x355   :  { %v3750_v10 = vadd.f32 %v3448_v5, %v1075_v58  ;;  %v1629_v58 = vmul.f32 1.442695, %v1613_v37  ;;  %v3779_v37 = vpop.xlane.xlu2 %1400 }
 0x356   :  { %4229 = vst [vmem:[#allocation15_spill] sm:$0xff] %v3779_v37 }
 0x357   :  { %1172 = vmax.xlane.f32.xlu1 %v3750_v10  ;;  %v1382_v38 = vsel %vm1366_vm14, %v3750_v10, 0.0  ;;  %2320 = vpow2.f32 %v1629_v58  ;;  %v3792_v58 = vpop.xlane.xlu1 %1398 }
 0x358   :  { %1412 = vadd.xlane.f32.xlu2 %v1382_v38  ;;  %4230 = vst [vmem:[#allocation16_spill] sm:$0xff] %v3792_v58 }
 0x35c   :  { %v1077_v12 = vpop.f32.mrf.mxu3 }
 0x35d   :  { %v3765_v59 = vadd.f32 %v3448_v5, %v1077_v12  ;;  %v1614_v12 = vsub.f32 %v3519_v31, %v3703_v7  ;;  %v1194_v5 = vmul.f32 1.442695, %v1177_v30  ;;  %v2321_v25 = vpop.eup %2320  ;;  %v1178_v31 = vsub.f32 %v3527_v24, %v3727_v51  ;;  %v3790_v30 = vpop.xlane.xlu0 %1158 }
 0x35e   :  { %v1179_v24 = vsub.f32 %v3538_v53, %v3711_v54  ;;  %v1616_v53 = vsub.f32 %v3558_v34, %v3733_v9 }
 0x35f   :  { %v1383_v18 = vsel %vm1367_vm15, %v3765_v59, 0.0  ;;  %v1631_v48 = vmul.f32 1.442695, %v1614_v12  ;;  %2322 = vpow2.f32 %v1194_v5  ;;  %v3794_v12 = vpop.xlane.xlu2 %1162  ;;  %v1196_v26 = vmul.f32 1.442695, %v1178_v31 }
 0x360   :  { %1414 = vadd.xlane.f32.xlu0 %v1383_v18  ;;  %1174 = vmax.xlane.f32.xlu2 %v3765_v59  ;;  %v1615_v5 = vsub.f32 %v3548_v3, %v3725_v11  ;;  %v1635_v0 = vmul.f32 1.442695, %v1616_v53  ;;  %v1185_v47 = vsub.f32 %v3636_v23, %v3794_v12 }
 0x361   :  { %2324 = vpow2.f32 %v1631_v48 }
 0x362   :  { %2326 = vpow2.f32 %v1196_v26 }
 0x364   :  { %v1571_v29 = vpop.f32.mrf.mxu3 }
 0x365   :  { %v3782_v38 = vadd.f32 %v3469_v62, %v1571_v29  ;;  %v2323_v40 = vpop.eup %2322  ;;  %v3804_v48 = vpop.xlane.xlu0 %1597 }
 0x367   :  { %1605 = vmax.xlane.f32.xlu1 %v3782_v38  ;;  %v1817_v18 = vsel %vm1801_vm1, %v3782_v38, 0.0  ;;  %v2325_v33 = vpop.eup %2324 }
 0x368   :  { %1845 = vadd.xlane.f32.xlu0 %v1817_v18  ;;  %1661 = vadd.xlane.f32.xlu2 %v2321_v25  ;;  %v1633_v25 = vmul.f32 1.442695, %v1615_v5  ;;  %v3806_v18 = vpop.xlane.xlu1 %1835  ;;  %v2327_v58 = vpop.eup %2326 }
 0x369   :  { %4231 = vst [vmem:[#allocation17_spill] sm:$0xff] %v3806_v18 }
 0x36a   :  { %2328 = vpow2.f32 %v1633_v25  ;;  %v1180_v25 = vsub.f32 %v3565_v39, %v3737_v60 }
 0x36c   :  { %v1573_v29 = vpop.f32.mrf.mxu3  ;;  %v1200_v53 = vmul.f32 1.442695, %v1180_v25 }
 0x36d   :  { %v3797_v37 = vadd.f32 %v3469_v62, %v1573_v29  ;;  %v3819_v26 = vpop.xlane.xlu0 %1837 }
 0x36f   :  { %1226 = vadd.xlane.f32.xlu1 %v2323_v40  ;;  %v1198_v40 = vmul.f32 1.442695, %v1179_v24  ;;  %v1818_v3 = vsel %vm1802_vm2, %v3797_v37, 0.0 }
 0x370   :  { %1663 = vadd.xlane.f32.xlu0 %v2325_v33  ;;  %1607 = vmax.xlane.f32.xlu2 %v3797_v37  ;;  %v3813_v33 = vpop.xlane.xlu2 %1839  ;;  %v2329_v5 = vpop.eup %2328 }
 0x371   :  { %4232 = vst [vmem:[#allocation18_spill] sm:$0xff] %v3813_v33  ;;  %2330 = vpow2.f32 %v1198_v40  ;;  %v3823_v24 = vpop.xlane.xlu1 %1160  ;;  %v1617_v40 = vsub.f32 %v3571_v14, %v3729_v46 }
 0x372   :  { %2332 = vpow2.f32 %v1635_v0 }
 0x373   :  { %v1637_v39 = vmul.f32 1.442695, %v1617_v40  ;;  %2334 = vpow2.f32 %v1200_v53 }
 0x374   :  { %v1576_v31 = vpop.f32.mrf.mxu3 }
 0x375   :  { %v3811_v29 = vadd.f32 %v3469_v62, %v1576_v31  ;;  %v3837_v33 = vpop.xlane.xlu0 %1402  ;;  %2336 = vpow2.f32 %v1637_v39 }
 0x377   :  { %1847 = vadd.xlane.f32.xlu1 %v1818_v3  ;;  %v2331_v31 = vpop.eup %2330 }
 0x378   :  { %1609 = vmax.xlane.f32.xlu0 %v3811_v29  ;;  %1228 = vadd.xlane.f32.xlu2 %v2327_v58  ;;  %v1819_v58 = vsel %vm1803_vm3, %v3811_v29, 0.0  ;;  %v3830_v34 = vpop.xlane.xlu2 %1601  ;;  %v2333_v14 = vpop.eup %2332 }
 0x379   :  { %v3847_v0 = vpop.xlane.xlu1 %1599  ;;  %v2335_v40 = vpop.eup %2334 }
 0x37a   :  { %v1622_v23 = vsub.f32 %v3643_v50, %v3847_v0  ;;  %v1623_v50 = vsub.f32 %v3660_v20, %v3830_v34 }
 0x37c   :  { %v1578_v3 = vpop.f32.mrf.mxu3 }
 0x37d   :  { %v3835_v18 = vadd.f32 %v3469_v62, %v1578_v3  ;;  %v1182_v62 = vsub.f32 %v3598_v32, %v3741_v8  ;;  %v1641_v3 = vmul.f32 1.442695, %v1619_v19  ;;  %v1183_v32 = vsub.f32 %v3609_v61, %v3790_v30  ;;  %v3855_v39 = vpop.xlane.xlu0 %1164 }
 0x37e   :  { %v1210_v19 = vmul.f32 1.442695, %v1185_v47  ;;  %v1647_v47 = vmul.f32 1.442695, %v1622_v23 }
 0x37f   :  { %1665 = vadd.xlane.f32.xlu1 %v2329_v5  ;;  %v1202_v5 = vmul.f32 1.442695, %v1181_v44  ;;  %v1820_v63 = vsel %vm1804_vm4, %v3835_v18, 0.0  ;;  %v2337_v44 = vpop.eup %2336  ;;  %vm1965_vm4 = vcmask 7168  }
 0x380   :  { %1230 = vadd.xlane.f32.xlu0 %v2331_v31  ;;  %1849 = vadd.xlane.f32.xlu2 %v1819_v58  ;;  %v1618_v31 = vsub.f32 %v3582_v13, %v3743_v1  ;;  %v3851_v25 = vpop.xlane.xlu2 %1406  ;;  %v1204_v13 = vmul.f32 1.442695, %v1182_v62 }
 0x381   :  { %2338 = vpow2.f32 %v1202_v5  ;;  %v1620_v5 = vsub.f32 %v3619_v52, %v3760_v28  ;;  %v1621_v52 = vsub.f32 %v3630_v35, %v3804_v48 }
 0x382   :  { %v1639_v58 = vmul.f32 1.442695, %v1618_v31  ;;  %v1206_v31 = vmul.f32 1.442695, %v1183_v32 }
 0x384   :  { %2340 = vpow2.f32 %v1639_v58 }
 0x385   :  { %2342 = vpow2.f32 %v1204_v13  ;;  %v1184_v13 = vsub.f32 %v3624_v36, %v3823_v24  ;;  %v1186_v36 = vsub.f32 %v3654_v6, %v3855_v39 }
 0x386   :  { %2344 = vpow2.f32 %v1641_v3  ;;  %v3871_v3 = vpop.xlane.xlu0 %1603 }
 0x387   :  { %1611 = vmax.xlane.f32.xlu1 %v3835_v18  ;;  %v2339_v53 = vpop.eup %2338  ;;  %2346 = vpow2.f32 %v1206_v31  ;;  %v1624_v20 = vsub.f32 %v3674_v4, %v3871_v3 }
 0x388   :  { %1851 = vadd.xlane.f32.xlu0 %v1820_v63  ;;  %1667 = vadd.xlane.f32.xlu2 %v2333_v14  ;;  %v3861_v14 = vpop.xlane.xlu1 %1404  ;;  %v1643_v63 = vmul.f32 1.442695, %v1620_v5  ;;  %v3863_v62 = vpop.xlane.xlu2 %1843 }
 0x38a   :  { %v2341_v61 = vpop.eup %2340  ;;  %2348 = vpow2.f32 %v1643_v63 }
 0x38b   :  { %v2343_v58 = vpop.eup %2342  ;;  %2350 = vpow2.f32 %v1210_v19  ;;  %v1212_v19 = vmul.f32 1.442695, %v1186_v36 }
 0x38f   :  { %1232 = vadd.xlane.f32.xlu1 %v2335_v40  ;;  %v2345_v40 = vpop.eup %2344 }
 0x390   :  { %1669 = vadd.xlane.f32.xlu0 %v2337_v44  ;;  %1234 = vadd.xlane.f32.xlu2 %v2339_v53  ;;  %v1645_v44 = vmul.f32 1.442695, %v1621_v52  ;;  %v1208_v53 = vmul.f32 1.442695, %v1184_v13  ;;  %v3873_v32 = vpop.xlane.xlu1 %1841  ;;  %v2347_v5 = vpop.eup %2346 }
 0x391   :  { %v2349_v35 = vpop.eup %2348  ;;  %v3875_v31 = vpop.xlane.xlu2 %1168 }
 0x392   :  { %v2351_v63 = vpop.eup %2350  ;;  %2352 = vpow2.f32 %v1645_v44 }
 0x393   :  { %2354 = vpow2.f32 %v1208_v53  ;;  %v1651_v53 = vmul.f32 1.442695, %v1624_v20 }
 0x394   :  { %2356 = vpow2.f32 %v1647_v47 }
 0x395   :  { %2358 = vpow2.f32 %v1212_v19 }
 0x397   :  { %1671 = vadd.xlane.f32.xlu1 %v2341_v61  ;;  %v1188_v61 = vsub.f32 %v3681_v57, %v3875_v31 }
 0x398   :  { %1236 = vadd.xlane.f32.xlu0 %v2343_v58  ;;  %1673 = vadd.xlane.f32.xlu2 %v2345_v40  ;;  %v3883_v58 = vpop.xlane.xlu0 %1408  ;;  %v1649_v40 = vmul.f32 1.442695, %v1623_v50  ;;  %v2353_v52 = vpop.eup %2352 }
 0x399   :  { %v1216_v13 = vmul.f32 1.442695, %v1188_v61  ;;  %v2355_v23 = vpop.eup %2354  ;;  %v3885_v44 = vpop.xlane.xlu1 %1166 }
 0x39a   :  { %v2357_v6 = vpop.eup %2356  ;;  %2360 = vpow2.f32 %v1649_v40  ;;  %v1187_v57 = vsub.f32 %v3667_v49, %v3885_v44 }
 0x39b   :  { %2362 = vpow2.f32 %v1216_v13 }
 0x39c   :  { %v1214_v47 = vmul.f32 1.442695, %v1187_v57  ;;  %2364 = vpow2.f32 %v1651_v53 }
 0x39e   :  { %2366 = vpow2.f32 %v1214_v47 }
 0x39f   :  { %1238 = vadd.xlane.f32.xlu1 %v2347_v5  ;;  %v2359_v5 = vpop.eup %2358 }
 0x3a0   :  { %1242 = vadd.xlane.f32.xlu0 %v2351_v63  ;;  %1675 = vadd.xlane.f32.xlu2 %v2349_v35  ;;  %v3891_v35 = vpop.xlane.xlu0 %1170  ;;  %v2361_v63 = vpop.eup %2360 }
 0x3a1   :  { %v2363_v36 = vpop.eup %2362  ;;  %v1189_v50 = vsub.f32 %v3694_v21, %v3891_v35  ;;  %v3895_v40 = vpop.xlane.xlu1 %1410 }
 0x3a2   :  { %v2365_v61 = vpop.eup %2364 }
 0x3a3   :  { %v1218_v4 = vmul.f32 1.442695, %v1189_v50 }
 0x3a4   :  { %v2367_v19 = vpop.eup %2366 }
 0x3a5   :  { %2368 = vpow2.f32 %v1218_v4 }
 0x3a7   :  { %1677 = vadd.xlane.f32.xlu1 %v2353_v52 }
 0x3a8   :  { %1679 = vadd.xlane.f32.xlu0 %v2357_v6  ;;  %1240 = vadd.xlane.f32.xlu2 %v2355_v23  ;;  %v3899_v13 = vpop.xlane.xlu0 %1224 }
 0x3ab   :  { %v2369_v49 = vpop.eup %2368 }
 0x3af   :  { %1244 = vadd.xlane.f32.xlu1 %v2359_v5 }
 0x3b0   :  { %1248 = vadd.xlane.f32.xlu0 %v2363_v36  ;;  %1681 = vadd.xlane.f32.xlu2 %v2361_v63 }
 0x3b7   :  { %1683 = vadd.xlane.f32.xlu1 %v2365_v61 }
 0x3b8   :  { %1246 = vadd.xlane.f32.xlu2 %v2367_v19 }
 0x3bf   :  { %1250 = vadd.xlane.f32.xlu1 %v2369_v49 }
 0x3ca   :  { %v3897_v52 = vpop.xlane.xlu1 %1172 }
 0x3cb   :  { %v1190_v21 = vsub.f32 %v3750_v10, %v3897_v52  ;;  %v3903_v23 = vpop.xlane.xlu2 %1412 }
 0x3cd   :  { %v1220_v6 = vmul.f32 1.442695, %v1190_v21 }
 0x3cf   :  { %2370 = vpow2.f32 %v1220_v6 }
 0x3d3   :  { %v3905_v20 = vpop.xlane.xlu2 %1174  ;;  %v3907_v57 = vpop.xlane.xlu0 %1414 }
 0x3d4   :  { %4233 = vst [vmem:[#allocation19_spill] sm:$0xff] %v3905_v20  ;;  %v1191_v53 = vsub.f32 %v3765_v59, %v3905_v20 }
 0x3d5   :  { %4234 = vst [vmem:[#allocation20_spill] sm:$0xff] %v3907_v57  ;;  %v2371_v5 = vpop.eup %2370 }
 0x3d6   :  { %v1222_v47 = vmul.f32 1.442695, %v1191_v53  ;;  %1252 = vadd.xlane.f32.xlu2 %v2371_v5 }
 0x3d8   :  { %2372 = vpow2.f32 %v1222_v47 }
 0x3da   :  { %v3911_v63 = vpop.xlane.xlu1 %1605 }
 0x3db   :  { %v1625_v10 = vsub.f32 %v3782_v38, %v3911_v63  ;;  %v1662_v36 = vpop.xlane.xlu2 %1661  ;;  %v3915_v50 = vpop.xlane.xlu0 %1845  ;;  %v4235_v38 = vunpack.c.0.s8 %v2937_v45 }
 0x3dc   :  { %2374 = vlog2.f32 %v1662_v36 }
 0x3dd   :  { %v1653_v4 = vmul.f32 1.442695, %v1625_v10  ;;  %vm1080_vm5 = vcmp.gt.s32.totalorder %v4235_v38, 0 }
 0x3de   :  { %v2373_v61 = vpop.eup %2372 }
 0x3df   :  { %2376 = vpow2.f32 %v1653_v4  ;;  %1254 = vadd.xlane.f32.xlu0 %v2373_v61  ;;  %v2451_v4 = vmov 0.0  }
 0x3e0   :  { %v3926_v61 = vsel %vm1080_vm5, 1.0, %v2451_v4 }
 0x3e2   :  { %v2375_v19 = vpop.eup %2374  ;;  %v1227_v49 = vpop.xlane.xlu1 %1226 }
 0x3e3   :  { %v1694_v59 = vmul.f32 0.6931472, %v2375_v19  ;;  %2378 = vlog2.f32 %v1227_v49  ;;  %v3917_v21 = vpop.xlane.xlu2 %1607  ;;  %v1664_v6 = vpop.xlane.xlu0 %1663 }
 0x3e4   :  { %v1626_v53 = vsub.f32 %v3797_v37, %v3917_v21  ;;  %v4236_v37 = vunpack.c.1.s8 %v2937_v45 }
 0x3e5   :  { %v2377_v5 = vpop.eup %2376  ;;  %v1725_v47 = vadd.f32 %v1694_v59, %v3709_v42 }
 0x3e6   :  { %v1655_v10 = vmul.f32 1.442695, %v1626_v53  ;;  %vm1081_vm6 = vcmp.gt.s32.totalorder %v4236_v37, 0 }
 0x3e7   :  { %v1853_v36 = vsub.f32 %v1725_v47, %v3707_v27  ;;  %1685 = vadd.xlane.f32.xlu0 %v2377_v5  ;;  %v2067_v59 = vsel %vm1081_vm6, 1.0, %v2451_v4 }
 0x3e8   :  { %2380 = vpow2.f32 %v1655_v10 }
 0x3e9   :  { %v2379_v19 = vpop.eup %2378  ;;  %v1869_v49 = vmul.f32 %v3926_v61, %v1853_v36 }
 0x3ea   :  { %v1259_v56 = vmul.f32 0.6931472, %v2379_v19  ;;  %v3931_v57 = vpop.xlane.xlu1 %1847  ;;  %v4238_v19 = vunpack.c.2.s8 %v2937_v45 }
 0x3eb   :  { %4237 = vst [vmem:[#allocation21_spill] sm:$0xff] %v3931_v57  ;;  %v1229_v38 = vpop.xlane.xlu2 %1228  ;;  %1901 = vrot.lane.b32.xlu1 %v1869_v49, %s2452_s5  ;;  %v3934_v27 = vpop.xlane.xlu0 %1609 }
 0x3ec   :  { %v1289_v42 = vadd.f32 %v1259_v56, %v3713_v55  ;;  %2382 = vlog2.f32 %v1229_v38  ;;  %vm1082_vm7 = vcmp.gt.s32.totalorder %v4238_v19, 0 }
 0x3ed   :  { %2384 = vlog2.f32 %v1664_v6 }
 0x3ee   :  { %v2381_v53 = vpop.eup %2380  ;;  %v1417_v5 = vsub.f32 %v1289_v42, %v3715_v22  ;;  %v2068_v22 = vsel %vm1082_vm7, 1.0, %v2451_v4 }
 0x3ef   :  { %1687 = vadd.xlane.f32.xlu2 %v2381_v53 }
 0x3f0   :  { %v3939_v47 = vmul.f32 %v2067_v59, %v1417_v5 }
 0x3f2   :  { %v2383_v10 = vpop.eup %2382  ;;  %v1666_v36 = vpop.xlane.xlu1 %1665 }
 0x3f3   :  { %v1261_v49 = vmul.f32 0.6931472, %v2383_v10  ;;  %2386 = vlog2.f32 %v1666_v36  ;;  %v3943_v37 = vpop.xlane.xlu2 %1849  ;;  %v1231_v56 = vpop.xlane.xlu0 %1230  ;;  %v4240_v10 = vunpack.c.3.s8 %v2937_v45 }
 0x3f4   :  { %4239 = vst [vmem:[#allocation22_spill] sm:$0xff] %v3943_v37  ;;  %2388 = vlog2.f32 %v1231_v56  ;;  %v2385_v38 = vpop.eup %2384 }
 0x3f5   :  { %v1290_v55 = vadd.f32 %v1261_v49, %v3727_v51  ;;  %v1696_v53 = vmul.f32 0.6931472, %v2385_v38  ;;  %vm1083_vm8 = vcmp.gt.s32.totalorder %v4240_v10, 0 }
 0x3f6   :  { %v3961_v38 = vsel %vm1083_vm8, 1.0, %v2451_v4 }
 0x3f7   :  { %v1418_v6 = vsub.f32 %v1290_v55, %v3719_v41  ;;  %v1726_v49 = vadd.f32 %v1696_v53, %v3703_v7 }
 0x3f9   :  { %v2387_v42 = vpop.eup %2386  ;;  %v3948_v5 = vmul.f32 %v2068_v22, %v1418_v6  ;;  %v1854_v45 = vsub.f32 %v1726_v49, %v3721_v15  ;;  %v4241_v15 = vld [vmem:[#allocation2_spill] sm:$0xff] }
 0x3fa   :  { %v2389_v20 = vpop.eup %2388  ;;  %v1698_v57 = vmul.f32 0.6931472, %v2387_v42  ;;  %v3950_v19 = vpop.xlane.xlu1 %1611  ;;  %v4242_v53 = vunpack.c.0.s8 %v4241_v15  ;;  %v4243_v49 = vunpack.c.1.s8 %v4241_v15 }
 0x3fb   :  { %v1263_v36 = vmul.f32 0.6931472, %v2389_v20  ;;  %v1668_v56 = vpop.xlane.xlu2 %1667  ;;  %v3954_v37 = vpop.xlane.xlu0 %1851 }
 0x3fc   :  { %v1727_v51 = vadd.f32 %v1698_v57, %v3725_v11  ;;  %vm1084_vm9 = vcmp.gt.s32.totalorder %v4242_v53, 0  ;;  %vm1085_vm10 = vcmp.gt.s32.totalorder %v4243_v49, 0 }
 0x3fd   :  { %v1291_v41 = vadd.f32 %v1263_v36, %v3711_v54  ;;  %v1870_v54 = vmul.f32 %v2067_v59, %v1854_v45  ;;  %v2071_v45 = vsel %vm1085_vm10, 1.0, %v2451_v4 }
 0x3fe   :  { %v1855_v55 = vsub.f32 %v1727_v51, %v3731_v16  ;;  %v1627_v16 = vsub.f32 %v3811_v29, %v3934_v27 }
 0x3ff   :  { %v1419_v6 = vsub.f32 %v1291_v41, %v3717_v17 }
 0x400   :  { %v1871_v42 = vmul.f32 %v2068_v22, %v1855_v55  ;;  %v1657_v10 = vmul.f32 1.442695, %v1627_v16 }
 0x401   :  { %v3966_v20 = vmul.f32 %v3961_v38, %v1419_v6 }
 0x402   :  { %1905 = vrot.lane.b32.xlu0 %v1871_v42, %s2452_s5  ;;  %v1233_v11 = vpop.xlane.xlu1 %1232  ;;  %v3981_v42 = vsel %vm1084_vm9, 1.0, %v2451_v4 }
 0x403   :  { %2390 = vlog2.f32 %v1233_v11  ;;  %v1235_v7 = vpop.xlane.xlu2 %1234  ;;  %v3969_v57 = vpop.xlane.xlu0 %1669  ;;  %v4244_v11 = vld [vmem:[#allocation10_spill] sm:$0xff] }
 0x404   :  { %2392 = vlog2.f32 %v1235_v7 }
 0x407   :  { %1903 = vrot.lane.b32.xlu2 %v1870_v54, %s2452_s5  ;;  %v4245_v54 = vld [vmem:[#allocation9_spill] sm:$0xff] }
 0x409   :  { %v2391_v17 = vpop.eup %2390 }
 0x40a   :  { %v2393_v22 = vpop.eup %2392  ;;  %v1265_v36 = vmul.f32 0.6931472, %v2391_v17  ;;  %v1672_v51 = vpop.xlane.xlu1 %1671 }
 0x40b   :  { %v1267_v41 = vmul.f32 0.6931472, %v2393_v22  ;;  %2394 = vlog2.f32 %v1672_v51  ;;  %v1674_v55 = vpop.xlane.xlu2 %1673  ;;  %v1237_v59 = vpop.xlane.xlu0 %1236 }
 0x40c   :  { %v1292_v6 = vadd.f32 %v1265_v36, %v3737_v60  ;;  %2396 = vlog2.f32 %v1237_v59 }
 0x40d   :  { %v1293_v29 = vadd.f32 %v1267_v41, %v3758_v2  ;;  %2398 = vpow2.f32 %v1657_v10  ;;  %v4248_v41 = vunpack.c.2.s8 %v4241_v15 }
 0x40e   :  { %v1420_v7 = vsub.f32 %v1292_v6, %v4244_v11 }
 0x40f   :  { %v1421_v16 = vsub.f32 %v1293_v29, %v4245_v54  ;;  %vm1086_vm0 = vcmp.gt.s32.totalorder %v4248_v41, 0  ;;  %v4249_v29 = vld [vmem:[#allocation13_spill] sm:$0xff] }
 0x410   :  { %v3987_v17 = vmul.f32 %v3981_v42, %v1420_v7  ;;  %v3999_v54 = vsel %vm1086_vm0, 1.0, %v2451_v4 }
 0x411   :  { %v2395_v22 = vpop.eup %2394  ;;  %v3989_v53 = vmul.f32 %v2071_v45, %v1421_v16 }
 0x412   :  { %4246 = vst [vmem:[#allocation2_spill] sm:$0xff] %v3987_v17  ;;  %v1704_v60 = vmul.f32 0.6931472, %v2395_v22  ;;  %v1239_v36 = vpop.xlane.xlu1 %1238  ;;  %v2397_v2 = vpop.eup %2396  ;;  %v4250_v22 = vld [vmem:[#allocation14_spill] sm:$0xff] }
 0x413   :  { %4247 = vst [vmem:[#allocation10_spill] sm:$0xff] %v3989_v53  ;;  %2400 = vlog2.f32 %v1239_v36  ;;  %v3991_v51 = vpop.xlane.xlu2 %1675  ;;  %v1243_v49 = vpop.xlane.xlu0 %1242  ;;  %v1269_v6 = vmul.f32 0.6931472, %v2397_v2  ;;  %v4251_v53 = vunpack.c.3.s8 %v4241_v15  ;;  %v4252_v2 = vld [vmem:[#allocation3_spill] sm:$0xff] }
 0x414   :  { %v2399_v10 = vpop.eup %2398  ;;  %v1730_v59 = vadd.f32 %v1704_v60, %v3743_v1  ;;  %2402 = vlog2.f32 %v1243_v49 }
 0x415   :  { %1689 = vadd.xlane.f32.xlu1 %v2399_v10  ;;  %2404 = vlog2.f32 %v1668_v56  ;;  %v1294_v7 = vadd.f32 %v1269_v6, %v3741_v8  ;;  %vm1087_vm11 = vcmp.gt.s32.totalorder %v4251_v53, 0  ;;  %v4253_v8 = vunpack.c.1.s8 %v4252_v2 }
 0x416   :  { %v1858_v11 = vsub.f32 %v1730_v59, %v4249_v29  ;;  %v1628_v59 = vsub.f32 %v3835_v18, %v3950_v19  ;;  %v4014_v53 = vsel %vm1087_vm11, 1.0, %v2451_v4  ;;  %v4254_v29 = vld [vmem:[#allocation16_spill] sm:$0xff] }
 0x417   :  { %v1422_v36 = vsub.f32 %v1294_v7, %v4250_v22  ;;  %vm1089_vm12 = vcmp.gt.s32.totalorder %v4253_v8, 0 }
 0x418   :  { %v1874_v16 = vmul.f32 %v2071_v45, %v1858_v11  ;;  %v1659_v22 = vmul.f32 1.442695, %v1628_v59 }
 0x419   :  { %v2401_v17 = vpop.eup %2400  ;;  %v4006_v56 = vmul.f32 %v3999_v54, %v1422_v36 }
 0x41a   :  { %v1271_v41 = vmul.f32 0.6931472, %v2401_v17  ;;  %v1678_v1 = vpop.xlane.xlu1 %1677  ;;  %1911 = vrot.lane.b32.xlu2 %v1874_v16, %s2452_s5  ;;  %v2403_v60 = vpop.eup %2402  ;;  %v4019_v16 = vsel %vm1089_vm12, 1.0, %v2451_v4 }
 0x41b   :  { %2406 = vlog2.f32 %v1678_v1  ;;  %v1241_v49 = vpop.xlane.xlu2 %1240  ;;  %v1680_v45 = vpop.xlane.xlu0 %1679  ;;  %v1275_v17 = vmul.f32 0.6931472, %v2403_v60  ;;  %v4255_v1 = vunpack.c.0.s8 %v4252_v2 }
 0x41c   :  { %v2405_v10 = vpop.eup %2404  ;;  %v1295_v15 = vadd.f32 %v1271_v41, %v3790_v30  ;;  %2408 = vlog2.f32 %v1241_v49 }
 0x41d   :  { %v1297_v6 = vadd.f32 %v1275_v17, %v3794_v12  ;;  %v1700_v7 = vmul.f32 0.6931472, %v2405_v10  ;;  %2410 = vlog2.f32 %v1674_v55  ;;  %vm1088_vm13 = vcmp.gt.s32.totalorder %v4255_v1, 0 }
 0x41e   :  { %v1423_v11 = vsub.f32 %v1295_v15, %v4254_v29 }
 0x41f   :  { %v1425_v36 = vsub.f32 %v1297_v6, %v3837_v33  ;;  %v1728_v55 = vadd.f32 %v1700_v7, %v3733_v9  ;;  %v2074_v6 = vsel %vm1088_vm13, 1.0, %v2451_v4  ;;  %v4257_v9 = vld [vmem:[#allocation15_spill] sm:$0xff] }
 0x420   :  { %v4023_v18 = vmul.f32 %v4014_v53, %v1423_v11  ;;  %v4256_v11 = vld [vmem:[#allocation8_spill] sm:$0xff] }
 0x421   :  { %v2407_v30 = vpop.eup %2406  ;;  %v4028_v8 = vmul.f32 %v4019_v16, %v1425_v36  ;;  %v1856_v36 = vsub.f32 %v1728_v55, %v4256_v11  ;;  %v4259_v55 = vld [vmem:[#allocation4_spill] sm:$0xff] }
 0x422   :  { %v2409_v41 = vpop.eup %2408  ;;  %v1710_v60 = vmul.f32 0.6931472, %v2407_v30  ;;  %v1245_v12 = vpop.xlane.xlu1 %1244 }
 0x423   :  { %v1273_v49 = vmul.f32 0.6931472, %v2409_v41  ;;  %2412 = vlog2.f32 %v1245_v12  ;;  %v4031_v10 = vpop.xlane.xlu2 %1681  ;;  %v1249_v33 = vpop.xlane.xlu0 %1248 }
 0x424   :  { %2414 = vpow2.f32 %v1659_v22  ;;  %v1733_v59 = vadd.f32 %v1710_v60, %v3804_v48  ;;  %v2411_v15 = vpop.eup %2410 }
 0x425   :  { %v1296_v17 = vadd.f32 %v1273_v49, %v3823_v24  ;;  %2416 = vlog2.f32 %v1249_v33  ;;  %v1706_v30 = vmul.f32 0.6931472, %v2411_v15  ;;  %v4258_v24 = vunpack.c.2.s8 %v4252_v2 }
 0x426   :  { %v1861_v29 = vsub.f32 %v1733_v59, %v3819_v26  ;;  %2418 = vlog2.f32 %v1680_v45  ;;  %v4260_v45 = vunpack.c.0.s8 %v4259_v55  ;;  %v1872_v33 = vmul.f32 %v3961_v38, %v1856_v36  ;;  %v4261_v38 = vld [vmem:[#allocation12_spill] sm:$0xff] }
 0x427   :  { %v1424_v7 = vsub.f32 %v1296_v17, %v4257_v9  ;;  %2420 = vlog2.f32 %v3969_v57  ;;  %vm1090_vm14 = vcmp.gt.s32.totalorder %v4258_v24, 0  ;;  %v1731_v57 = vadd.f32 %v1706_v30, %v3774_v43 }
 0x428   :  { %v1877_v41 = vmul.f32 %v2074_v6, %v1861_v29  ;;  %vm1092_vm15 = vcmp.gt.s32.totalorder %v4260_v45, 0 }
 0x429   :  { %v2413_v1 = vpop.eup %2412  ;;  %v4040_v22 = vmul.f32 %v2074_v6, %v1424_v7  ;;  %v2076_v6 = vsel %vm1090_vm14, 1.0, %v2451_v4  ;;  %v4055_v7 = vsel %vm1092_vm15, 1.0, %v2451_v4  ;;  %v1859_v43 = vsub.f32 %v1731_v57, %v4261_v38 }
 0x42a   :  { %v2415_v48 = vpop.eup %2414  ;;  %v1277_v60 = vmul.f32 0.6931472, %v2413_v1  ;;  %v1684_v12 = vpop.xlane.xlu1 %1683  ;;  %1917 = vrot.lane.b32.xlu2 %v1877_v41, %s2452_s5 }
 0x42b   :  { %v2417_v26 = vpop.eup %2416  ;;  %2422 = vlog2.f32 %v1684_v12  ;;  %v1247_v49 = vpop.xlane.xlu2 %1246 }
 0x42c   :  { %v1298_v59 = vadd.f32 %v1277_v60, %v3855_v39  ;;  %v1281_v15 = vmul.f32 0.6931472, %v2417_v26  ;;  %2424 = vlog2.f32 %v1247_v49  ;;  %1691 = vadd.xlane.f32.xlu0 %v2415_v48  ;;  %v2419_v17 = vpop.eup %2418 }
 0x42d   :  { %v2421_v9 = vpop.eup %2420  ;;  %v1712_v36 = vmul.f32 0.6931472, %v2419_v17  ;;  %2426 = vlog2.f32 %v3991_v51 }
 0x42e   :  { %v1300_v29 = vadd.f32 %v1281_v15, %v3875_v31  ;;  %1907 = vrot.lane.b32.xlu1 %v1872_v33, %s2452_s5  ;;  %v1426_v11 = vsub.f32 %v1298_v59, %v3861_v14  ;;  %v4262_v31 = vunpack.c.3.s8 %v4252_v2  ;;  %v1702_v48 = vmul.f32 0.6931472, %v2421_v9  ;;  %v4263_v15 = vld [vmem:[#allocation18_spill] sm:$0xff] }
 0x42f   :  { %v1734_v26 = vadd.f32 %v1712_v36, %v3847_v0 }
 0x430   :  { %v4058_v39 = vmul.f32 %v2076_v6, %v1426_v11  ;;  %v1428_v30 = vsub.f32 %v1300_v29, %v3883_v58  ;;  %vm1091_vm1 = vcmp.gt.s32.totalorder %v4262_v31, 0  ;;  %v1875_v58 = vmul.f32 %v3999_v54, %v1859_v43  ;;  %v4265_v54 = vld [vmem:[#allocation11_spill] sm:$0xff] }
 0x431   :  { %v2423_v41 = vpop.eup %2422  ;;  %v2077_v49 = vsel %vm1091_vm1, 1.0, %v2451_v4  ;;  %v1729_v2 = vadd.f32 %v1702_v48, %v3729_v46  ;;  %v1862_v17 = vsub.f32 %v1734_v26, %v4263_v15 }
 0x432   :  { %v2425_v1 = vpop.eup %2424  ;;  %v1716_v14 = vmul.f32 0.6931472, %v2423_v41  ;;  %v1251_v24 = vpop.xlane.xlu1 %1250  ;;  %v4065_v60 = vmul.f32 %v4055_v7, %v1428_v30 }
 0x433   :  { %v1279_v12 = vmul.f32 0.6931472, %v2425_v1  ;;  %2428 = vlog2.f32 %v1251_v24  ;;  %v2427_v57 = vpop.eup %2426  ;;  %v1857_v46 = vsub.f32 %v1729_v2, %v4265_v54  ;;  %v4266_v1 = vld [vmem:[#allocation17_spill] sm:$0xff]  ;;  %v4267_v24 = vunpack.c.2.s8 %v4259_v55 }
 0x434   :  { %v1736_v45 = vadd.f32 %v1716_v14, %v3871_v3  ;;  %2430 = vlog2.f32 %v4031_v10  ;;  %v1708_v11 = vmul.f32 0.6931472, %v2427_v57 }
 0x435   :  { %v1299_v51 = vadd.f32 %v1279_v12, %v3885_v44  ;;  %v4264_v44 = vunpack.c.1.s8 %v4259_v55  ;;  %v1873_v10 = vmul.f32 %v3981_v42, %v1857_v46  ;;  %vm1094_vm3 = vcmp.gt.s32.totalorder %v4267_v24, 0 }
 0x436   :  { %v1864_v33 = vsub.f32 %v1736_v45, %v3863_v62  ;;  %1913 = vrot.lane.b32.xlu1 %v1875_v58, %s2452_s5  ;;  %v1732_v43 = vadd.f32 %v1708_v11, %v3760_v28 }
 0x437   :  { %v1427_v59 = vsub.f32 %v1299_v51, %v3851_v25  ;;  %vm1093_vm2 = vcmp.gt.s32.totalorder %v4264_v44, 0  ;;  %v1878_v25 = vmul.f32 %v4019_v16, %v1862_v17 }
 0x438   :  { %v1880_v0 = vmul.f32 %v2077_v49, %v1864_v33  ;;  %v2079_v38 = vsel %vm1093_vm2, 1.0, %v2451_v4  ;;  %v1860_v31 = vsub.f32 %v1732_v43, %v4266_v1 }
 0x439   :  { %v2429_v29 = vpop.eup %2428  ;;  %v4078_v3 = vmul.f32 %v2077_v49, %v1427_v59  ;;  %v4268_v49 = vld [vmem:[#allocation6_spill] sm:$0xff] }
 0x43a   :  { %v1283_v62 = vmul.f32 0.6931472, %v2429_v29  ;;  %1923 = vrot.lane.b32.xlu2 %v1880_v0, %s2452_s5  ;;  %v2431_v30 = vpop.eup %2430  ;;  %v1876_v48 = vmul.f32 %v4014_v53, %v1860_v31  ;;  %v2080_v53 = vsel %vm1094_vm3, 1.0, %v2451_v4 }
 0x43c   :  { %v1301_v9 = vadd.f32 %v1283_v62, %v3891_v35  ;;  %v1714_v35 = vmul.f32 0.6931472, %v2431_v30 }
 0x43e   :  { %1919 = vrot.lane.b32.xlu1 %v1878_v25, %s2452_s5  ;;  %v1429_v36 = vsub.f32 %v1301_v9, %v3895_v40  ;;  %v1735_v16 = vadd.f32 %v1714_v35, %v3830_v34  ;;  %v4270_v25 = vld [vmem:[#allocation21_spill] sm:$0xff] }
 0x440   :  { %1909 = vrot.lane.b32.xlu0 %v1873_v10, %s2452_s5  ;;  %v4092_v41 = vmul.f32 %v2079_v38, %v1429_v36  ;;  %v1863_v14 = vsub.f32 %v1735_v16, %v3873_v32  ;;  %v4271_v16 = vld [vmem:[#allocation22_spill] sm:$0xff] }
 0x442   :  { %v1879_v42 = vmul.f32 %v2076_v6, %v1863_v14 }
 0x448   :  { %1915 = vrot.lane.b32.xlu0 %v1876_v48, %s2452_s5 }
 0x449   :  { %v1253_v28 = vpop.xlane.xlu2 %1252 }
 0x44a   :  { %2432 = vlog2.f32 %v1253_v28 }
 0x44b   :  { %2434 = vlog2.f32 %v3899_v13  ;;  %v4269_v13 = vld [vmem:[#allocation7_spill] sm:$0xff] }
 0x450   :  { %v2433_v40 = vpop.eup %2432  ;;  %1921 = vrot.lane.b32.xlu0 %v1879_v42, %s2452_s5 }
 0x451   :  { %v1285_v12 = vmul.f32 0.6931472, %v2433_v40  ;;  %v2435_v6 = vpop.eup %2434 }
 0x452   :  { %v4103_v26 = vpop.xlane.xlu0 %1254  ;;  %v1257_v51 = vmul.f32 0.6931472, %v2435_v6 }
 0x453   :  { %v1302_v34 = vadd.f32 %v1285_v12, %v3897_v52 }
 0x454   :  { %v1288_v2 = vadd.f32 %v1257_v51, %v4268_v49  ;;  %v4273_v49 = vld [vmem:[#allocation10_spill] sm:$0xff] }
 0x455   :  { %v1430_v45 = vsub.f32 %v1302_v34, %v3903_v23  ;;  %v4272_v34 = vunpack.c.3.s8 %v4259_v55 }
 0x456   :  { %v1416_v15 = vsub.f32 %v1288_v2, %v4269_v13 }
 0x457   :  { %v4108_v32 = vmul.f32 %v2080_v53, %v1430_v45  ;;  %vm1095_vm5 = vcmp.gt.s32.totalorder %v4272_v34, 0 }
 0x458   :  { %v1432_v23 = vmul.f32 %v3926_v61, %v1416_v15 }
 0x45a   :  { %v1686_v58 = vpop.xlane.xlu0 %1685 }
 0x45b   :  { %2436 = vlog2.f32 %v1686_v58 }
 0x45d   :  { %v1902_v0 = vpop.permute.xlu1 %1901 }
 0x45e   :  { %v1949_v54 = vadd.f32 %v1902_v0, %v1432_v23 }
 0x461   :  { %v2437_v33 = vpop.eup %2436 }
 0x462   :  { %v1718_v57 = vmul.f32 0.6931472, %v2437_v33  ;;  %v1688_v59 = vpop.xlane.xlu2 %1687  ;;  %v4274_v33 = vld [vmem:[#allocation2_spill] sm:$0xff] }
 0x463   :  { %2438 = vlog2.f32 %v1688_v59 }
 0x464   :  { %v1737_v52 = vadd.f32 %v1718_v57, %v3911_v63  ;;  %v1966_v63 = vsel %vm1965_vm4, %v1949_v54, 0.0 }
 0x466   :  { %v1865_v17 = vsub.f32 %v1737_v52, %v3915_v50 }
 0x468   :  { %v1881_v29 = vmul.f32 %v4055_v7, %v1865_v17 }
 0x469   :  { %v2439_v44 = vpop.eup %2438 }
 0x46a   :  { %v1720_v46 = vmul.f32 0.6931472, %v2439_v44  ;;  %v1904_v11 = vpop.permute.xlu2 %1903  ;;  %1925 = vrot.lane.b32.xlu1 %v1881_v29, %s2452_s5 }
 0x46b   :  { %v1950_v62 = vadd.f32 %v1904_v11, %v3939_v47 }
 0x46c   :  { %v1738_v9 = vadd.f32 %v1720_v46, %v3917_v21 }
 0x46d   :  { %v1967_v50 = vsel %vm1965_vm4, %v1950_v62, 0.0 }
 0x46e   :  { %v1866_v43 = vsub.f32 %v1738_v9, %v4270_v25  ;;  %v1968_v61 = vadd.f32 %v1967_v50, %v1966_v63 }
 0x470   :  { %v1882_v10 = vmul.f32 %v2079_v38, %v1866_v43 }
 0x472   :  { %1927 = vrot.lane.b32.xlu0 %v1882_v10, %s2452_s5 }
 0x474   :  { %v1906_v7 = vpop.permute.xlu0 %1905  ;;  %v1912_v58 = vpop.permute.xlu2 %1911 }
 0x475   :  { %v1951_v36 = vadd.f32 %v1906_v7, %v3948_v5  ;;  %v1954_v2 = vadd.f32 %v1912_v58, %v4273_v49  ;;  %v4278_v49 = vld [vmem:[#allocation5_spill] sm:$0xff] }
 0x476   :  { %vm2009_vm7 = vcmp.eq.s32.totalorder %v4278_v49, 0 }
 0x477   :  { %v1969_v30 = vsel %vm1965_vm4, %v1951_v36, 0.0 }
 0x478   :  { %v1970_v1 = vadd.f32 %v1969_v30, %v1968_v61 }
 0x488   :  { %v1690_v31 = vpop.xlane.xlu1 %1689 }
 0x489   :  { %2440 = vlog2.f32 %v1690_v31 }
 0x48f   :  { %v2441_v47 = vpop.eup %2440 }
 0x490   :  { %v1722_v21 = vmul.f32 0.6931472, %v2441_v47 }
 0x492   :  { %v1739_v35 = vadd.f32 %v1722_v21, %v3934_v27 }
 0x494   :  { %v1867_v48 = vsub.f32 %v1739_v35, %v4271_v16 }
 0x496   :  { %v1883_v28 = vmul.f32 %v2080_v53, %v1867_v48  ;;  %v2081_v53 = vsel %vm1095_vm5, 1.0, %v2451_v4 }
 0x498   :  { %1929 = vrot.lane.b32.xlu2 %v1883_v28, %s2452_s5 }
 0x49f   :  { %v1692_v38 = vpop.xlane.xlu0 %1691 }
 0x4a0   :  { %2442 = vlog2.f32 %v1692_v38  ;;  %v1908_v14 = vpop.permute.xlu1 %1907 }
 0x4a1   :  { %v1952_v42 = vadd.f32 %v1908_v14, %v3966_v20  ;;  %2444 = vlog2.f32 %v4103_v26  ;;  %v4276_v14 = vld [vmem:[#allocation20_spill] sm:$0xff] }
 0x4a3   :  { %v1971_v5 = vsel %vm1965_vm4, %v1952_v42, 0.0 }
 0x4a4   :  { %v1972_v40 = vadd.f32 %v1971_v5, %v1970_v1 }
 0x4a6   :  { %v2443_v24 = vpop.eup %2442 }
 0x4a7   :  { %v1724_v12 = vmul.f32 0.6931472, %v2443_v24  ;;  %v2445_v48 = vpop.eup %2444 }
 0x4a8   :  { %v1914_v51 = vpop.permute.xlu1 %1913  ;;  %v1287_v28 = vmul.f32 0.6931472, %v2445_v48 }
 0x4a9   :  { %v1740_v27 = vadd.f32 %v1724_v12, %v3950_v19  ;;  %v1955_v59 = vadd.f32 %v1914_v51, %v4006_v56  ;;  %v1975_v19 = vsel %vm1965_vm4, %v1954_v2, 0.0  ;;  %v4277_v51 = vlaneseq }
 0x4ab   :  { %v1868_v45 = vsub.f32 %v1740_v27, %v3954_v37  ;;  %v1918_v37 = vpop.permute.xlu2 %1917  ;;  %v1977_v4 = vsel %vm1965_vm4, %v1955_v59, 0.0 }
 0x4ac   :  { %v1957_v23 = vadd.f32 %v1918_v37, %v4040_v22 }
 0x4ad   :  { %v1884_v6 = vmul.f32 %v2081_v53, %v1868_v45 }
 0x4ae   :  { %v1981_v46 = vsel %vm1965_vm4, %v1957_v23, 0.0 }
 0x4af   :  { %1931 = vrot.lane.b32.xlu1 %v1884_v6, %s2452_s5 }
 0x4b0   :  { %v1920_v52 = vpop.permute.xlu1 %1919 }
 0x4b1   :  { %v1958_v44 = vadd.f32 %v1920_v52, %v4028_v8 }
 0x4b2   :  { %v1910_v20 = vpop.permute.xlu0 %1909 }
 0x4b3   :  { %v1953_v57 = vadd.f32 %v1910_v20, %v4274_v33  ;;  %v1924_v11 = vpop.permute.xlu2 %1923  ;;  %v1983_v9 = vsel %vm1965_vm4, %v1958_v44, 0.0  ;;  %v2007_v20 = vshrl.u32 %v4277_v51, 7 }
 0x4b4   :  { %v1960_v25 = vadd.f32 %v1924_v11, %v4078_v3 }
 0x4b5   :  { %v1973_v55 = vsel %vm1965_vm4, %v1953_v57, 0.0  ;;  %vm2008_vm6 = vcmp.eq.s32.totalorder %v2007_v20, 0 }
 0x4b6   :  { %v1974_v13 = vadd.f32 %v1973_v55, %v1972_v40  ;;  %v1987_v8 = vsel %vm1965_vm4, %v1960_v25, 0.0  ;;  %vm2010_vm8 = vmand %vm2008_vm6, %vm2009_vm7 }
 0x4b8   :  { %v1976_v15 = vadd.f32 %v1975_v19, %v1974_v13 }
 0x4ba   :  { %v1978_v17 = vadd.f32 %v1977_v4, %v1976_v15  ;;  %v1916_v0 = vpop.permute.xlu0 %1915 }
 0x4bb   :  { %v1956_v29 = vadd.f32 %v1916_v0, %v4023_v18 }
 0x4bd   :  { %v1979_v56 = vsel %vm1965_vm4, %v1956_v29, 0.0 }
 0x4be   :  { %v1980_v54 = vadd.f32 %v1979_v56, %v1978_v17 }
 0x4c0   :  { %v1982_v62 = vadd.f32 %v1981_v46, %v1980_v54 }
 0x4c2   :  { %v1984_v63 = vadd.f32 %v1983_v9, %v1982_v62  ;;  %v1922_v50 = vpop.permute.xlu0 %1921 }
 0x4c3   :  { %v1959_v43 = vadd.f32 %v1922_v50, %v4058_v39 }
 0x4c5   :  { %v1985_v22 = vsel %vm1965_vm4, %v1959_v43, 0.0 }
 0x4c6   :  { %v1986_v18 = vadd.f32 %v1985_v22, %v1984_v63 }
 0x4c8   :  { %v1988_v61 = vadd.f32 %v1987_v8, %v1986_v18 }
 0x4dc   :  { %v1926_v10 = vpop.permute.xlu1 %1925 }
 0x4dd   :  { %v1961_v7 = vadd.f32 %v1926_v10, %v4065_v60  ;;  %v4275_v60 = vld [vmem:[#allocation19_spill] sm:$0xff] }
 0x4de   :  { %v1303_v38 = vadd.f32 %v1287_v28, %v4275_v60 }
 0x4df   :  { %v1989_v36 = vsel %vm1965_vm4, %v1961_v7, 0.0 }
 0x4e0   :  { %v1990_v30 = vadd.f32 %v1989_v36, %v1988_v61  ;;  %v1431_v42 = vsub.f32 %v1303_v38, %v4276_v14 }
 0x4e2   :  { %v1447_v5 = vmul.f32 %v2081_v53, %v1431_v42 }
 0x4e4   :  { %v1928_v1 = vpop.permute.xlu0 %1927 }
 0x4e5   :  { %v1962_v31 = vadd.f32 %v1928_v1, %v4092_v41 }
 0x4e7   :  { %v1991_v47 = vsel %vm1965_vm4, %v1962_v31, 0.0 }
 0x4e8   :  { %v1992_v3 = vadd.f32 %v1991_v47, %v1990_v30 }
 0x4f2   :  { %v1930_v21 = vpop.permute.xlu2 %1929 }
 0x4f3   :  { %v1963_v39 = vadd.f32 %v1930_v21, %v4108_v32 }
 0x4f5   :  { %v1993_v35 = vsel %vm1965_vm4, %v1963_v39, 0.0 }
 0x4f6   :  { %v1994_v16 = vadd.f32 %v1993_v35, %v1992_v3 }
 0x521   :  { %v1932_v40 = vpop.permute.xlu1 %1931 }
 0x522   :  { %v1964_v41 = vadd.f32 %v1932_v40, %v1447_v5 }
 0x524   :  { %v1995_v24 = vsel %vm1965_vm4, %v1964_v41, 0.0 }
 0x525   :  { %v1996_v12 = vadd.f32 %v1995_v24, %v1994_v16 }
 0x527   :  { %1997 = vadd.xlane.f32.xlu0 %v1996_v12 }
 0x59a   :  { %v1998_v34 = vpop.xlane.xlu0 %1997 }
 0x59b   :  { %v1999_v32 = vrot.slane %v1998_v34, 4 }
 0x59d   :  { %v2000_v27 = vadd.f32 %v1999_v32, %v1998_v34 }
 0x59f   :  { %v2001_v45 = vrot.slane %v2000_v27, 2 }
 0x5a1   :  { %v2002_v6 = vadd.f32 %v2001_v45, %v2000_v27 }
 0x5a3   :  { %v2003_v58 = vrot.slane %v2002_v6, 1 }
 0x5a5   :  { %v2004_v26 = vadd.f32 %v2003_v58, %v2002_v6 }
 0x5a7   :  { %2203 = vpush %v2004_v26 }
 0x5d8   :  { %s2204_s16 = spop %2203 }
 0x5d9   :  { %v2011_v53 = vstv %s2204_s16 }
 0x5da   :  { %v2012_v2 = vsel %vm2010_vm8, %v2011_v53, 0.0 }
 0x5db   :  { %2013 = vst [vmem:[%s4173_s6] sm:$0xff] %v2012_v2 }

</bundles_post_ra>
